<compile_context>
chip_gen: v5e
topology: v5e:2x2
jax: 0.10.0
libtpu: 0.0.40
codegen_flags: <defaults>
</compile_context>

<pallas_src>
import functools

import jax
import jax.numpy as jnp
from jax import lax
from jax.experimental import pallas as pl
from jax.experimental.pallas import tpu as pltpu

EPS = 1e-5
MXU_DTYPE = jnp.bfloat16      # matmul operand dtype (accumulation is always f32)


# ----------------------------------------------------------------------------
# Small in-kernel helpers
# ----------------------------------------------------------------------------
def _mm(x, w):
    """MXU matmul: bf16 operands, f32 accumulation."""
    return jnp.dot(x.astype(MXU_DTYPE), w.astype(MXU_DTYPE),
                   preferred_element_type=jnp.float32)


def _layernorm(x):
    """LayerNorm over the last dim, no affine (two-pass variance, f32)."""
    mu = jnp.mean(x, axis=-1, keepdims=True)
    xm = x - mu
    var = jnp.mean(xm * xm, axis=-1, keepdims=True)
    return xm * lax.rsqrt(var + EPS)


def _softmax(s):
    m = jnp.max(s, axis=-1, keepdims=True)
    e = jnp.exp(s - m)
    return e * pl.reciprocal(jnp.sum(e, axis=-1, keepdims=True), approx=True)


# ----------------------------------------------------------------------------
# Fused encoder kernel: all (ms_depth * enc_depth) layers of one token stream.
# State carried in VMEM scratch x_s of shape (batch_tile, 2N, D):
# rows [0, N) = real part, rows [N, 2N) = imag part, per batch element.
# ----------------------------------------------------------------------------
def _encoder_kernel(a_ref, b_ref,
                    wqkv_ref, wo_ref, bo_ref,
                    w1_ref, b1_ref, w2_ref, b2_ref,
                    out_ref, x_s, o_buf, *, heads, enc_depth):
    layer = pl.program_id(1)
    bt, n2, d = x_s.shape
    n = n2 // 2
    inner = wo_ref.shape[0]
    mlp = w2_ref.shape[0]
    dh = inner // heads
    scale = dh ** -0.5

    # ---- load initial tokens once per batch tile ----------------------------
    @pl.when(layer == 0)
    def _():
        x_s[:, :n, :] = a_ref[...]
        x_s[:, n:, :] = b_ref[...]

    x = x_s[...]                                       # (bt, 2N, D) f32

    # ===================== PreNorm + Attention0 + residual ===================
    xn = _layernorm(x)
    # fused Q|K|V projection: one matmul with M = bt*2N, N = 3*inner
    qkv = _mm(xn.reshape(bt * n2, d), wqkv_ref[...]).reshape(bt, n2, 3 * inner)
    q = qkv[..., :inner] * scale                       # softmax scale folded once
    k = qkv[..., inner:2 * inner]
    v = qkv[..., 2 * inner:]

    for h in range(heads):                             # static trace-time loop
        s0 = h * dh
        qh = q[..., s0:s0 + dh]
        kh = k[..., s0:s0 + dh]
        vh = v[..., s0:s0 + dh]

        # one (2N, 2N) score matmul holds all four blocks [[AA, AB], [BA, BB]]
        sc = jnp.einsum('bqd,bkd->bqk',
                        qh.astype(MXU_DTYPE), kh.astype(MXU_DTYPE),
                        preferred_element_type=jnp.float32)
        # softmax independently over each key-source half (keys have length N)
        p = jnp.concatenate([_softmax(sc[..., :n]), _softmax(sc[..., n:])],
                            axis=-1)                   # (bt, 2N, 2N)

        va = vh[:, :n, :]
        vb = vh[:, n:, :]
        # V2 = [[vA, vB], [-vB, vA]]  ->  a single PV matmul gives s1|s2
        v2 = jnp.concatenate(
            [jnp.concatenate([va, vb], axis=-1),
             jnp.concatenate([-vb, va], axis=-1)], axis=1)      # (bt, 2N, 2*dh)
        s12 = jnp.einsum('bqk,bkd->bqd',
                         p.astype(MXU_DTYPE), v2.astype(MXU_DTYPE),
                         preferred_element_type=jnp.float32)    # (bt, 2N, 2*dh)
        s1 = s12[..., :dh]          # = P @ [vA; -vB]
        s2 = s12[..., dh:]          # = P @ [vB;  vA]

        # real:  pAA vA - pAB vB - pBA vB - pBB vA
        # imag:  pAA vB + pAB vA + pBA vA - pBB vB
        o_buf[:, :n, s0:s0 + dh] = s1[:, :n] - s2[:, n:]
        o_buf[:, n:, s0:s0 + dh] = s2[:, :n] + s1[:, n:]

    attn = _mm(o_buf[...].reshape(bt * n2, inner),
               wo_ref[...]).reshape(bt, n2, d)
    bo = bo_ref[...]                                   # (1, D), broadcast directly
    # net to_out bias over the 8 shared-Attention passes: -2*bo (real), +2*bo (imag)
    x_s[:, :n, :] = x[:, :n] + attn[:, :n] - 2.0 * bo
    x_s[:, n:, :] = x[:, n:] + attn[:, n:] + 2.0 * bo

    # ===================== PreNorm + FeedForward + residual ==================
    x = x_s[...]
    xn2 = _layernorm(x)
    # fused first ComplexLinear: [fr | fi] in one matmul
    u = (_mm(xn2.reshape(bt * n2, d), w1_ref[...]).reshape(bt, n2, 2 * mlp)
         + b1_ref[...])
    u_r = u[..., :mlp]                                 # fr(Re) / fr(Im) rows
    u_i = u[..., mlp:]                                 # fi(Re) / fi(Im) rows
    hr = jnp.maximum(u_r[:, :n] - u_i[:, n:], 0.0)     # ComplexReLU, real part
    hi = jnp.maximum(u_r[:, n:] + u_i[:, :n], 0.0)     # ComplexReLU, imag part
    hcat = jnp.concatenate([hr, hi], axis=1)           # (bt, 2N, mlp)
    # fused second ComplexLinear
    g = (_mm(hcat.reshape(bt * n2, mlp), w2_ref[...]).reshape(bt, n2, 2 * d)
         + b2_ref[...])
    g_r = g[..., :d]
    g_i = g[..., d:]
    x_s[:, :n, :] = x[:, :n] + g_r[:, :n] - g_i[:, n:]
    x_s[:, n:, :] = x[:, n:] + g_r[:, n:] + g_i[:, :n]

    # ========= per-Transformer final norm (+ output at the very end) =========
    is_tf_end = ((layer + 1) % enc_depth) == 0

    @pl.when(is_tf_end)
    def _():
        y = _layernorm(x_s[...])
        x_s[...] = y                                   # normed state feeds next TF

        @pl.when(layer == pl.num_programs(1) - 1)
        def _():
            # pack real|imag along lanes -> lane-dense (N, 2D) output block
            out_ref[...] = jnp.concatenate([y[:, :n], y[:, n:]], axis=-1)


# ----------------------------------------------------------------------------
# Wrapper: one pallas_call per token stream for the whole MultiScaleEncoder
# ----------------------------------------------------------------------------
def run_stream(packed, a, b, *, heads, enc_depth, batch_tile=None):
    bsz, n, d = a.shape
    total_depth, _, three_inner = packed["wqkv"].shape
    inner = three_inner // 3
    mlp = packed["w2"].shape[1]
    assert total_depth % enc_depth == 0

    if batch_tile is None:
        # keep a >=2-step "parallel" axis when possible (v7x has 2 TensorCores);
        # larger batch_tile further amortizes weight DMA at bigger batch sizes.
        batch_tile = bsz // 2 if (bsz % 2 == 0 and bsz >= 2) else bsz
    assert bsz % batch_tile == 0
    nb = bsz // batch_tile

    def tok(last):
        return pl.BlockSpec((batch_tile, n, last), lambda bb, ll: (bb, 0, 0))

    def per_layer(shape):
        ndim = len(shape)
        return pl.BlockSpec((None,) + shape,
                            lambda bb, ll, _nd=ndim: (ll,) + (0,) * _nd)

    # ---- VMEM budget: double-buffered weights + token I/O + scratch + slack ----
    w_bytes = ((d * 3 * inner + inner * d + d * 2 * mlp + mlp * 2 * d) * 2
               + (d + 2 * mlp + 2 * d) * 4)
    io_bytes = (2 * batch_tile * n * d + batch_tile * n * 2 * d) * 4
    scratch_bytes = (batch_tile * 2 * n * d + batch_tile * 2 * n * inner) * 4
    vmem_limit = int(min(64 << 20,                      # stay within v7x physical VMEM
                         max(32 << 20,
                             2 * (w_bytes + io_bytes) + scratch_bytes + (8 << 20))))

    # ---- advisory cost estimate for XLA scheduling around the two calls ----
    n2 = 2 * n
    flops_layer = (2 * n2 * d * 3 * inner            # fused QKV
                   + 2 * n2 * n2 * inner             # scores (all heads)
                   + 2 * n2 * n2 * 2 * inner         # PV (all heads, doubled lanes)
                   + 2 * n2 * inner * d              # out projection
                   + 2 * n2 * d * 2 * mlp            # FFN 1 (fused)
                   + 2 * n2 * mlp * 2 * d)           # FFN 2 (fused)
    cost = pl.CostEstimate(
        flops=int(bsz * total_depth * flops_layer),
        transcendentals=int(bsz * total_depth * (heads * n2 * n2 + 8 * n2)),
        bytes_accessed=int(nb * total_depth * w_bytes + nb * io_bytes))

    kernel = functools.partial(_encoder_kernel, heads=heads, enc_depth=enc_depth)

    out = pl.pallas_call(
        kernel,
        grid=(nb, total_depth),
        in_specs=[tok(d), tok(d),
                  per_layer((d, 3 * inner)),
                  per_layer((inner, d)), per_layer((1, d)),
                  per_layer((d, 2 * mlp)), per_layer((1, 2 * mlp)),
                  per_layer((mlp, 2 * d)), per_layer((1, 2 * d))],
        out_specs=tok(2 * d),
        out_shape=jax.ShapeDtypeStruct((bsz, n, 2 * d), jnp.float32),
        scratch_shapes=[pltpu.VMEM((batch_tile, 2 * n, d), jnp.float32),
                        pltpu.VMEM((batch_tile, 2 * n, inner), jnp.float32)],
        compiler_params=pltpu.CompilerParams(
            dimension_semantics=("parallel", "arbitrary"),
            vmem_limit_bytes=vmem_limit),
        cost_estimate=cost,
    )(a, b, packed["wqkv"], packed["wo"], packed["bo"],
      packed["w1"], packed["b1"], packed["w2"], packed["b2"])
    return out[..., :d], out[..., d:]


def multi_scale_encoder(sm_packed, lg_packed, sm_a, sm_b, lg_a, lg_b,
                        *, heads, enc_depth):
    sm_a, sm_b = run_stream(sm_packed, sm_a, sm_b, heads=heads, enc_depth=enc_depth)
    lg_a, lg_b = run_stream(lg_packed, lg_a, lg_b, heads=heads, enc_depth=enc_depth)
    return sm_a, sm_b, lg_a, lg_b


# ----------------------------------------------------------------------------
# Parameter construction + packing (fused / depth-stacked kernel weights)
# ----------------------------------------------------------------------------
def init_layer(key, dim, heads, dim_head, mlp_dim):
    inner = heads * dim_head
    ks = jax.random.split(key, 13)

    def w(k, *shape):
        return jax.random.normal(k, shape, jnp.float32) * 0.05

    return {
        "wq": w(ks[0], dim, inner), "wk": w(ks[1], dim, inner), "wv": w(ks[2], dim, inner),
        "wo": w(ks[3], inner, dim), "bo": w(ks[4], 1, dim),
        "w1r": w(ks[5], dim, mlp_dim), "w1i": w(ks[6], dim, mlp_dim),
        "b1r": w(ks[7], 1, mlp_dim), "b1i": w(ks[8], 1, mlp_dim),
        "w2r": w(ks[9], mlp_dim, dim), "w2i": w(ks[10], mlp_dim, dim),
        "b2r": w(ks[11], 1, dim), "b2i": w(ks[12], 1, dim),
    }


def init_transformer_layers(key, dim, depth, heads, dim_head, mlp_dim):
    return [init_layer(k, dim, heads, dim_head, mlp_dim)
            for k in jax.random.split(key, depth)]


def pack_stream(layer_lists):
    """Stack all ms_depth*enc_depth layers on a depth axis; fuse QKV / FFN pairs."""
    layers = [p for sub in layer_lists for p in sub]

    def stack(fn, dtype):
        return jnp.stack([fn(p) for p in layers], axis=0).astype(dtype)

    return {
        "wqkv": stack(lambda p: jnp.concatenate([p["wq"], p["wk"], p["wv"]], -1), MXU_DTYPE),
        "wo":   stack(lambda p: p["wo"], MXU_DTYPE),
        "bo":   stack(lambda p: p["bo"], jnp.float32),
        "w1":   stack(lambda p: jnp.concatenate([p["w1r"], p["w1i"]], -1), MXU_DTYPE),
        "b1":   stack(lambda p: jnp.concatenate([p["b1r"], p["b1i"]], -1), jnp.float32),
        "w2":   stack(lambda p: jnp.concatenate([p["w2r"], p["w2i"]], -1), MXU_DTYPE),
        "b2":   stack(lambda p: jnp.concatenate([p["b2r"], p["b2i"]], -1), jnp.float32),
    }


# ----------------------------------------------------------------------------
# Pure-JAX f32 reference (same assumed complex semantics) for validation
# ----------------------------------------------------------------------------
def _ref_ln(x):
    mu = jnp.mean(x, axis=-1, keepdims=True)
    xm = x - mu
    return xm * lax.rsqrt(jnp.mean(xm * xm, axis=-1, keepdims=True) + EPS)


def _ref_attn_pass(xq, xk, xv, p, heads):
    bsz, n, _ = xq.shape
    inner = p["wq"].shape[1]
    dh = inner // heads
    q = (xq @ p["wq"]).reshape(bsz, n, heads, dh).transpose(0, 2, 1, 3)
    k = (xk @ p["wk"]).reshape(bsz, n, heads, dh).transpose(0, 2, 1, 3)
    v = (xv @ p["wv"]).reshape(bsz, n, heads, dh).transpose(0, 2, 1, 3)
    dots = jnp.einsum('bhid,bhjd->bhij', q, k) * dh ** -0.5
    attn = jax.nn.softmax(dots, axis=-1)
    o = jnp.einsum('bhij,bhjd->bhid', attn, v)
    o = o.transpose(0, 2, 1, 3).reshape(bsz, n, inner)
    return o @ p["wo"] + p["bo"]


def _ref_clinear(xr, xi, wr, wi, br, bi):
    return (xr @ wr + br) - (xi @ wi + bi), (xi @ wr + br) + (xr @ wi + bi)


def ref_transformer(layers, xr, xi, heads):
    for p in layers:
        nr, ni = _ref_ln(xr), _ref_ln(xi)
        aaa = _ref_attn_pass(nr, nr, nr, p, heads)
        aab = _ref_attn_pass(nr, nr, ni, p, heads)
        aba = _ref_attn_pass(nr, ni, nr, p, heads)
        abb = _ref_attn_pass(nr, ni, ni, p, heads)
        baa = _ref_attn_pass(ni, nr, nr, p, heads)
        bab = _ref_attn_pass(ni, nr, ni, p, heads)
        bba = _ref_attn_pass(ni, ni, nr, p, heads)
        bbb = _ref_attn_pass(ni, ni, ni, p, heads)
        xr = xr + (aaa - abb - bab - bba)
        xi = xi + (-bbb + baa + aba + aab)
        nr, ni = _ref_ln(xr), _ref_ln(xi)
        hr, hi = _ref_clinear(nr, ni, p["w1r"], p["w1i"], p["b1r"], p["b1i"])
        hr, hi = jnp.maximum(hr, 0.0), jnp.maximum(hi, 0.0)
        gr, gi = _ref_clinear(hr, hi, p["w2r"], p["w2i"], p["b2r"], p["b2i"])
        xr = xr + gr
        xi = xi + gi
    return _ref_ln(xr), _ref_ln(xi)


# ----------------------------------------------------------------------------
if __name__ == "__main__":
    key = jax.random.PRNGKey(0)

    batch = 2
    n_sm, sm_dim = 8, 32
    n_lg, lg_dim = 8, 64
    heads, dim_head, mlp_dim = 2, 16, 64
    enc_depth = 2          # depth inside each Transformer
    ms_depth = 2           # MultiScaleEncoder depth (pairs of Transformers)

    k_in, k_p = jax.random.split(key)
    k1, k2, k3, k4 = jax.random.split(k_in, 4)
    sm_a = jax.random.normal(k1, (batch, n_sm, sm_dim), jnp.float32)
    sm_b = jax.random.normal(k2, (batch, n_sm, sm_dim), jnp.float32)
    lg_a = jax.random.normal(k3, (batch, n_lg, lg_dim), jnp.float32)
    lg_b = jax.random.normal(k4, (batch, n_lg, lg_dim), jnp.float32)

    sm_layers_all, lg_layers_all = [], []
    pk = k_p
    for _ in range(ms_depth):
        pk, ks, kl = jax.random.split(pk, 3)
        sm_layers_all.append(init_transformer_layers(ks, sm_dim, enc_depth,
                                                     heads, dim_head, mlp_dim))
        lg_layers_all.append(init_transformer_layers(kl, lg_dim, enc_depth,
                                                     heads, dim_head, mlp_dim))

    sm_packed = pack_stream(sm_layers_all)
    lg_packed = pack_stream(lg_layers_all)

    fwd = jax.jit(functools.partial(multi_scale_encoder,
                                    heads=heads, enc_depth=enc_depth))
    sm_r, sm_i, lg_r, lg_i = fwd(sm_packed, lg_packed, sm_a, sm_b, lg_a, lg_b)
    jax.block_until_ready((sm_r, sm_i, lg_r, lg_i))

    sm_tokens = sm_r + 1j * sm_i        # complex64 outputs of the two streams
    lg_tokens = lg_r + 1j * lg_i
    assert sm_tokens.shape == (batch, n_sm, sm_dim)
    assert lg_tokens.shape == (batch, n_lg, lg_dim)

    # ---- pure-JAX f32 reference check (bf16-MXU kernel vs f32 reference) ----
    ref_sm_r, ref_sm_i = sm_a, sm_b
    ref_lg_r, ref_lg_i = lg_a, lg_b
    for sm_layers, lg_layers in zip(sm_layers_all, lg_layers_all):
        ref_sm_r, ref_sm_i = ref_transformer(sm_layers, ref_sm_r, ref_sm_i, heads)
        ref_lg_r, ref_lg_i = ref_transformer(lg_layers, ref_lg_r, ref_lg_i, heads)

    for got, want in ((sm_r, ref_sm_r), (sm_i, ref_sm_i),
                      (lg_r, ref_lg_r), (lg_i, ref_lg_i)):
        err = float(jnp.max(jnp.abs(got - want)))
        assert bool(jnp.allclose(got, want, atol=6e-2, rtol=6e-2)), f"max abs err {err}"
    assert bool(jnp.all(jnp.isfinite(sm_r))) and bool(jnp.all(jnp.isfinite(lg_r)))

    print("KERNEL_OK")
</pallas_src>

<mosaic_0001>
module attributes {stable_mosaic.version = 11 : i64} {
  func.func @_encoder_kernel(%arg0: i32, %arg1: i32, %arg2: memref<1x8x64xf32, #tpu.memory_space<vmem>>, %arg3: memref<1x8x64xf32, #tpu.memory_space<vmem>>, %arg4: memref<1x64x96xbf16, #tpu.memory_space<vmem>>, %arg5: memref<1x32x64xbf16, #tpu.memory_space<vmem>>, %arg6: memref<1x1x64xf32, #tpu.memory_space<vmem>>, %arg7: memref<1x64x128xbf16, #tpu.memory_space<vmem>>, %arg8: memref<1x1x128xf32, #tpu.memory_space<vmem>>, %arg9: memref<1x64x128xbf16, #tpu.memory_space<vmem>>, %arg10: memref<1x1x128xf32, #tpu.memory_space<vmem>>, %arg11: memref<1x8x128xf32, #tpu.memory_space<vmem>>, %arg12: memref<1x16x64xf32, #tpu.memory_space<vmem>>, %arg13: memref<1x16x32xf32, #tpu.memory_space<vmem>>) attributes {dimension_semantics = [#tpu.dimension_semantics<parallel>, #tpu.dimension_semantics<arbitrary>], iteration_bounds = array<i64: 2, 4>, scalar_prefetch = 0 : i64, scratch_operands = 2 : i64, tpu.core_type = #tpu.core_type<tc>, window_params = [{transform_indices = @transform_0, window_bounds = array<i64: 1, 8, 64>}, {transform_indices = @transform_1, window_bounds = array<i64: 1, 8, 64>}, {transform_indices = @transform_2, window_bounds = array<i64: 1, 64, 96>}, {transform_indices = @transform_3, window_bounds = array<i64: 1, 32, 64>}, {transform_indices = @transform_4, window_bounds = array<i64: 1, 1, 64>}, {transform_indices = @transform_5, window_bounds = array<i64: 1, 64, 128>}, {transform_indices = @transform_6, window_bounds = array<i64: 1, 1, 128>}, {transform_indices = @transform_7, window_bounds = array<i64: 1, 64, 128>}, {transform_indices = @transform_8, window_bounds = array<i64: 1, 1, 128>}, {transform_indices = @transform_9, window_bounds = array<i64: 1, 8, 128>}]} {
    %c0_i32 = arith.constant 0 : i32
    %0 = arith.cmpi eq, %arg1, %c0_i32 : i32
    %1 = arith.extui %0 : i1 to i32
    %c0_i32_0 = arith.constant 0 : i32
    %2 = arith.cmpi ne, %1, %c0_i32_0 : i32
    scf.if %2 {
      %c0_91 = arith.constant 0 : index
      %c0_92 = arith.constant 0 : index
      %c0_93 = arith.constant 0 : index
      %236 = vector.load %arg2[%c0_91, %c0_92, %c0_93] : memref<1x8x64xf32, #tpu.memory_space<vmem>>, vector<1x8x64xf32>
      %c0_94 = arith.constant 0 : index
      %c0_95 = arith.constant 0 : index
      %c0_96 = arith.constant 0 : index
      %237 = vector.load %arg12[%c0_94, %c0_95, %c0_96] : memref<1x16x64xf32, #tpu.memory_space<vmem>>, vector<1x8x64xf32>
      tpu.vector_store %arg12[%c0_94, %c0_95, %c0_96], %236 {strides = array<i32>} : memref<1x16x64xf32, #tpu.memory_space<vmem>>, vector<1x8x64xf32>,
      %c0_97 = arith.constant 0 : index
      %c0_98 = arith.constant 0 : index
      %c0_99 = arith.constant 0 : index
      %238 = vector.load %arg3[%c0_97, %c0_98, %c0_99] : memref<1x8x64xf32, #tpu.memory_space<vmem>>, vector<1x8x64xf32>
      %c0_100 = arith.constant 0 : index
      %c8_101 = arith.constant 8 : index
      %c0_102 = arith.constant 0 : index
      %239 = vector.load %arg12[%c0_100, %c8_101, %c0_102] : memref<1x16x64xf32, #tpu.memory_space<vmem>>, vector<1x8x64xf32>
      tpu.vector_store %arg12[%c0_100, %c8_101, %c0_102], %238 {strides = array<i32>} : memref<1x16x64xf32, #tpu.memory_space<vmem>>, vector<1x8x64xf32>,
    } else {
    }
    %c0 = arith.constant 0 : index
    %c0_1 = arith.constant 0 : index
    %c0_2 = arith.constant 0 : index
    %3 = vector.load %arg12[%c0, %c0_1, %c0_2] : memref<1x16x64xf32, #tpu.memory_space<vmem>>, vector<1x16x64xf32>
    %cst = arith.constant dense<0.000000e+00> : vector<1x16xf32>
    %4 = vector.multi_reduction <add>, %3, %cst [2] : vector<1x16x64xf32> to vector<1x16xf32>
    %5 = vector.shape_cast %4 : vector<1x16xf32> to vector<1x16x1xf32>
    %cst_3 = arith.constant 6.400000e+01 : f32
    %6 = vector.broadcast %cst_3 : f32 to vector<1x16x1xf32>
    %7 = arith.divf %5, %6 : vector<1x16x1xf32>
    %8 = vector.broadcast %7 : vector<1x16x1xf32> to vector<1x16x64xf32>
    %9 = arith.subf %3, %8 : vector<1x16x64xf32>
    %10 = arith.mulf %9, %9 : vector<1x16x64xf32>
    %cst_4 = arith.constant dense<0.000000e+00> : vector<1x16xf32>
    %11 = vector.multi_reduction <add>, %10, %cst_4 [2] : vector<1x16x64xf32> to vector<1x16xf32>
    %12 = vector.shape_cast %11 : vector<1x16xf32> to vector<1x16x1xf32>
    %cst_5 = arith.constant 6.400000e+01 : f32
    %13 = vector.broadcast %cst_5 : f32 to vector<1x16x1xf32>
    %14 = arith.divf %12, %13 : vector<1x16x1xf32>
    %cst_6 = arith.constant 9.99999974E-6 : f32
    %15 = vector.broadcast %cst_6 : f32 to vector<1x16x1xf32>
    %16 = arith.addf %14, %15 : vector<1x16x1xf32>
    %17 = math.rsqrt %16 : vector<1x16x1xf32>
    %18 = vector.broadcast %17 : vector<1x16x1xf32> to vector<1x16x64xf32>
    %19 = arith.mulf %9, %18 : vector<1x16x64xf32>
    %20 = vector.shape_cast %19 : vector<1x16x64xf32> to vector<16x64xf32>
    %c0_7 = arith.constant 0 : index
    %c0_8 = arith.constant 0 : index
    %c0_9 = arith.constant 0 : index
    %21 = vector.load %arg4[%c0_7, %c0_8, %c0_9] : memref<1x64x96xbf16, #tpu.memory_space<vmem>>, vector<1x64x96xbf16>
    %22 = vector.shape_cast %21 : vector<1x64x96xbf16> to vector<64x96xbf16>
    %23 = arith.truncf %20 : vector<16x64xf32> to vector<16x64xbf16>
    %cst_10 = arith.constant dense<0.000000e+00> : vector<16x96xf32>
    %24 = tpu.matmul %23, %22, %cst_10 {dimension_numbers = #tpu.dot_dimension_numbers<[1], [0], [0], [1], [0, 0, 1, 1], [], []>} : vector<16x64xbf16>, vector<64x96xbf16>, vector<16x96xf32> -> vector<16x96xf32>
    %25 = vector.shape_cast %24 : vector<16x96xf32> to vector<1x16x96xf32>
    %26 = vector.extract_strided_slice %25 {offsets = [0, 0, 0], sizes = [1, 16, 32], strides = [1, 1, 1]} : vector<1x16x96xf32> to vector<1x16x32xf32>
    %cst_11 = arith.constant 2.500000e-01 : f32
    %27 = vector.broadcast %cst_11 : f32 to vector<1x16x32xf32>
    %28 = arith.mulf %26, %27 : vector<1x16x32xf32>
    %29 = vector.extract_strided_slice %25 {offsets = [0, 0, 32], sizes = [1, 16, 32], strides = [1, 1, 1]} : vector<1x16x96xf32> to vector<1x16x32xf32>
    %30 = vector.extract_strided_slice %25 {offsets = [0, 0, 64], sizes = [1, 16, 32], strides = [1, 1, 1]} : vector<1x16x96xf32> to vector<1x16x32xf32>
    %31 = vector.extract_strided_slice %28 {offsets = [0, 0, 0], sizes = [1, 16, 16], strides = [1, 1, 1]} : vector<1x16x32xf32> to vector<1x16x16xf32>
    %32 = vector.extract_strided_slice %29 {offsets = [0, 0, 0], sizes = [1, 16, 16], strides = [1, 1, 1]} : vector<1x16x32xf32> to vector<1x16x16xf32>
    %33 = vector.extract_strided_slice %30 {offsets = [0, 0, 0], sizes = [1, 16, 16], strides = [1, 1, 1]} : vector<1x16x32xf32> to vector<1x16x16xf32>
    %34 = arith.truncf %31 : vector<1x16x16xf32> to vector<1x16x16xbf16>
    %35 = arith.truncf %32 : vector<1x16x16xf32> to vector<1x16x16xbf16>
    "tpu.trace_start"() <{level = 10 : i32, message = "bqd,bkd->bqk"}> : () -> ()
    %cst_12 = arith.constant dense<0.000000e+00> : vector<1x16x16xf32>
    %36 = tpu.matmul %34, %35, %cst_12 {dimension_numbers = #tpu.dot_dimension_numbers<[2], [2], [1], [1], [0, 0, 0, 1, 1, 1], [0], [0]>} : vector<1x16x16xbf16>, vector<1x16x16xbf16>, vector<1x16x16xf32> -> vector<1x16x16xf32>
    "tpu.trace_stop"() : () -> ()
    %37 = vector.extract_strided_slice %36 {offsets = [0, 0, 0], sizes = [1, 16, 8], strides = [1, 1, 1]} : vector<1x16x16xf32> to vector<1x16x8xf32>
    %cst_13 = arith.constant dense<0xFF800000> : vector<1x16xf32>
    %38 = vector.multi_reduction <maximumf>, %37, %cst_13 [2] : vector<1x16x8xf32> to vector<1x16xf32>
    %39 = vector.shape_cast %38 : vector<1x16xf32> to vector<1x16x1xf32>
    %40 = vector.broadcast %39 : vector<1x16x1xf32> to vector<1x16x8xf32>
    %41 = arith.subf %37, %40 : vector<1x16x8xf32>
    %42 = math.exp %41 : vector<1x16x8xf32>
    %cst_14 = arith.constant dense<0.000000e+00> : vector<1x16xf32>
    %43 = vector.multi_reduction <add>, %42, %cst_14 [2] : vector<1x16x8xf32> to vector<1x16xf32>
    %44 = vector.shape_cast %43 : vector<1x16xf32> to vector<1x16x1xf32>
    %45 = tpu.reciprocal %44 {approx = true} : vector<1x16x1xf32> -> vector<1x16x1xf32>
    %46 = vector.broadcast %45 : vector<1x16x1xf32> to vector<1x16x8xf32>
    %47 = arith.mulf %42, %46 : vector<1x16x8xf32>
    %48 = vector.extract_strided_slice %36 {offsets = [0, 0, 8], sizes = [1, 16, 8], strides = [1, 1, 1]} : vector<1x16x16xf32> to vector<1x16x8xf32>
    %cst_15 = arith.constant dense<0xFF800000> : vector<1x16xf32>
    %49 = vector.multi_reduction <maximumf>, %48, %cst_15 [2] : vector<1x16x8xf32> to vector<1x16xf32>
    %50 = vector.shape_cast %49 : vector<1x16xf32> to vector<1x16x1xf32>
    %51 = vector.broadcast %50 : vector<1x16x1xf32> to vector<1x16x8xf32>
    %52 = arith.subf %48, %51 : vector<1x16x8xf32>
    %53 = math.exp %52 : vector<1x16x8xf32>
    %cst_16 = arith.constant dense<0.000000e+00> : vector<1x16xf32>
    %54 = vector.multi_reduction <add>, %53, %cst_16 [2] : vector<1x16x8xf32> to vector<1x16xf32>
    %55 = vector.shape_cast %54 : vector<1x16xf32> to vector<1x16x1xf32>
    %56 = tpu.reciprocal %55 {approx = true} : vector<1x16x1xf32> -> vector<1x16x1xf32>
    %57 = vector.broadcast %56 : vector<1x16x1xf32> to vector<1x16x8xf32>
    %58 = arith.mulf %53, %57 : vector<1x16x8xf32>
    %59 = tpu.concatenate %47, %58 in 2 : vector<1x16x8xf32>, vector<1x16x8xf32> -> vector<1x16x16xf32>
    %60 = vector.extract_strided_slice %33 {offsets = [0, 0, 0], sizes = [1, 8, 16], strides = [1, 1, 1]} : vector<1x16x16xf32> to vector<1x8x16xf32>
    %61 = vector.extract_strided_slice %33 {offsets = [0, 8, 0], sizes = [1, 8, 16], strides = [1, 1, 1]} : vector<1x16x16xf32> to vector<1x8x16xf32>
    %62 = tpu.concatenate %60, %61 in 2 : vector<1x8x16xf32>, vector<1x8x16xf32> -> vector<1x8x32xf32>
    %cst_17 = arith.constant 0.000000e+00 : f32
    %63 = vector.broadcast %cst_17 : f32 to vector<1x8x16xf32>
    %64 = arith.subf %63, %61 : vector<1x8x16xf32>
    %65 = tpu.concatenate %64, %60 in 2 : vector<1x8x16xf32>, vector<1x8x16xf32> -> vector<1x8x32xf32>
    %66 = tpu.concatenate %62, %65 in 1 : vector<1x8x32xf32>, vector<1x8x32xf32> -> vector<1x16x32xf32>
    %67 = arith.truncf %59 : vector<1x16x16xf32> to vector<1x16x16xbf16>
    %68 = arith.truncf %66 : vector<1x16x32xf32> to vector<1x16x32xbf16>
    "tpu.trace_start"() <{level = 10 : i32, message = "bqk,bkd->bqd"}> : () -> ()
    %cst_18 = arith.constant dense<0.000000e+00> : vector<1x16x32xf32>
    %69 = tpu.matmul %67, %68, %cst_18 {dimension_numbers = #tpu.dot_dimension_numbers<[2], [1], [1], [2], [0, 0, 0, 1, 1, 2], [0], [0]>} : vector<1x16x16xbf16>, vector<1x16x32xbf16>, vector<1x16x32xf32> -> vector<1x16x32xf32>
    "tpu.trace_stop"() : () -> ()
    %70 = vector.extract_strided_slice %69 {offsets = [0, 0, 0], sizes = [1, 16, 16], strides = [1, 1, 1]} : vector<1x16x32xf32> to vector<1x16x16xf32>
    %71 = vector.extract_strided_slice %69 {offsets = [0, 0, 16], sizes = [1, 16, 16], strides = [1, 1, 1]} : vector<1x16x32xf32> to vector<1x16x16xf32>
    %72 = vector.extract_strided_slice %70 {offsets = [0, 0, 0], sizes = [1, 8, 16], strides = [1, 1, 1]} : vector<1x16x16xf32> to vector<1x8x16xf32>
    %73 = vector.extract_strided_slice %71 {offsets = [0, 8, 0], sizes = [1, 8, 16], strides = [1, 1, 1]} : vector<1x16x16xf32> to vector<1x8x16xf32>
    %74 = arith.subf %72, %73 : vector<1x8x16xf32>
    %c0_19 = arith.constant 0 : index
    %c0_20 = arith.constant 0 : index
    %c0_21 = arith.constant 0 : index
    %75 = vector.load %arg13[%c0_19, %c0_20, %c0_21] : memref<1x16x32xf32, #tpu.memory_space<vmem>>, vector<1x8x16xf32>
    tpu.vector_store %arg13[%c0_19, %c0_20, %c0_21], %74 {strides = array<i32>} : memref<1x16x32xf32, #tpu.memory_space<vmem>>, vector<1x8x16xf32>,
    %76 = vector.extract_strided_slice %71 {offsets = [0, 0, 0], sizes = [1, 8, 16], strides = [1, 1, 1]} : vector<1x16x16xf32> to vector<1x8x16xf32>
    %77 = vector.extract_strided_slice %70 {offsets = [0, 8, 0], sizes = [1, 8, 16], strides = [1, 1, 1]} : vector<1x16x16xf32> to vector<1x8x16xf32>
    %78 = arith.addf %76, %77 : vector<1x8x16xf32>
    %c0_22 = arith.constant 0 : index
    %c8 = arith.constant 8 : index
    %c0_23 = arith.constant 0 : index
    %79 = vector.load %arg13[%c0_22, %c8, %c0_23] : memref<1x16x32xf32, #tpu.memory_space<vmem>>, vector<1x8x16xf32>
    tpu.vector_store %arg13[%c0_22, %c8, %c0_23], %78 {strides = array<i32>} : memref<1x16x32xf32, #tpu.memory_space<vmem>>, vector<1x8x16xf32>,
    %80 = vector.extract_strided_slice %28 {offsets = [0, 0, 16], sizes = [1, 16, 16], strides = [1, 1, 1]} : vector<1x16x32xf32> to vector<1x16x16xf32>
    %81 = vector.extract_strided_slice %29 {offsets = [0, 0, 16], sizes = [1, 16, 16], strides = [1, 1, 1]} : vector<1x16x32xf32> to vector<1x16x16xf32>
    %82 = vector.extract_strided_slice %30 {offsets = [0, 0, 16], sizes = [1, 16, 16], strides = [1, 1, 1]} : vector<1x16x32xf32> to vector<1x16x16xf32>
    %83 = arith.truncf %80 : vector<1x16x16xf32> to vector<1x16x16xbf16>
    %84 = arith.truncf %81 : vector<1x16x16xf32> to vector<1x16x16xbf16>
    "tpu.trace_start"() <{level = 10 : i32, message = "bqd,bkd->bqk"}> : () -> ()
    %cst_24 = arith.constant dense<0.000000e+00> : vector<1x16x16xf32>
    %85 = tpu.matmul %83, %84, %cst_24 {dimension_numbers = #tpu.dot_dimension_numbers<[2], [2], [1], [1], [0, 0, 0, 1, 1, 1], [0], [0]>} : vector<1x16x16xbf16>, vector<1x16x16xbf16>, vector<1x16x16xf32> -> vector<1x16x16xf32>
    "tpu.trace_stop"() : () -> ()
    %86 = vector.extract_strided_slice %85 {offsets = [0, 0, 0], sizes = [1, 16, 8], strides = [1, 1, 1]} : vector<1x16x16xf32> to vector<1x16x8xf32>
    %cst_25 = arith.constant dense<0xFF800000> : vector<1x16xf32>
    %87 = vector.multi_reduction <maximumf>, %86, %cst_25 [2] : vector<1x16x8xf32> to vector<1x16xf32>
    %88 = vector.shape_cast %87 : vector<1x16xf32> to vector<1x16x1xf32>
    %89 = vector.broadcast %88 : vector<1x16x1xf32> to vector<1x16x8xf32>
    %90 = arith.subf %86, %89 : vector<1x16x8xf32>
    %91 = math.exp %90 : vector<1x16x8xf32>
    %cst_26 = arith.constant dense<0.000000e+00> : vector<1x16xf32>
    %92 = vector.multi_reduction <add>, %91, %cst_26 [2] : vector<1x16x8xf32> to vector<1x16xf32>
    %93 = vector.shape_cast %92 : vector<1x16xf32> to vector<1x16x1xf32>
    %94 = tpu.reciprocal %93 {approx = true} : vector<1x16x1xf32> -> vector<1x16x1xf32>
    %95 = vector.broadcast %94 : vector<1x16x1xf32> to vector<1x16x8xf32>
    %96 = arith.mulf %91, %95 : vector<1x16x8xf32>
    %97 = vector.extract_strided_slice %85 {offsets = [0, 0, 8], sizes = [1, 16, 8], strides = [1, 1, 1]} : vector<1x16x16xf32> to vector<1x16x8xf32>
    %cst_27 = arith.constant dense<0xFF800000> : vector<1x16xf32>
    %98 = vector.multi_reduction <maximumf>, %97, %cst_27 [2] : vector<1x16x8xf32> to vector<1x16xf32>
    %99 = vector.shape_cast %98 : vector<1x16xf32> to vector<1x16x1xf32>
    %100 = vector.broadcast %99 : vector<1x16x1xf32> to vector<1x16x8xf32>
    %101 = arith.subf %97, %100 : vector<1x16x8xf32>
    %102 = math.exp %101 : vector<1x16x8xf32>
    %cst_28 = arith.constant dense<0.000000e+00> : vector<1x16xf32>
    %103 = vector.multi_reduction <add>, %102, %cst_28 [2] : vector<1x16x8xf32> to vector<1x16xf32>
    %104 = vector.shape_cast %103 : vector<1x16xf32> to vector<1x16x1xf32>
    %105 = tpu.reciprocal %104 {approx = true} : vector<1x16x1xf32> -> vector<1x16x1xf32>
    %106 = vector.broadcast %105 : vector<1x16x1xf32> to vector<1x16x8xf32>
    %107 = arith.mulf %102, %106 : vector<1x16x8xf32>
    %108 = tpu.concatenate %96, %107 in 2 : vector<1x16x8xf32>, vector<1x16x8xf32> -> vector<1x16x16xf32>
    %109 = vector.extract_strided_slice %82 {offsets = [0, 0, 0], sizes = [1, 8, 16], strides = [1, 1, 1]} : vector<1x16x16xf32> to vector<1x8x16xf32>
    %110 = vector.extract_strided_slice %82 {offsets = [0, 8, 0], sizes = [1, 8, 16], strides = [1, 1, 1]} : vector<1x16x16xf32> to vector<1x8x16xf32>
    %111 = tpu.concatenate %109, %110 in 2 : vector<1x8x16xf32>, vector<1x8x16xf32> -> vector<1x8x32xf32>
    %cst_29 = arith.constant 0.000000e+00 : f32
    %112 = vector.broadcast %cst_29 : f32 to vector<1x8x16xf32>
    %113 = arith.subf %112, %110 : vector<1x8x16xf32>
    %114 = tpu.concatenate %113, %109 in 2 : vector<1x8x16xf32>, vector<1x8x16xf32> -> vector<1x8x32xf32>
    %115 = tpu.concatenate %111, %114 in 1 : vector<1x8x32xf32>, vector<1x8x32xf32> -> vector<1x16x32xf32>
    %116 = arith.truncf %108 : vector<1x16x16xf32> to vector<1x16x16xbf16>
    %117 = arith.truncf %115 : vector<1x16x32xf32> to vector<1x16x32xbf16>
    "tpu.trace_start"() <{level = 10 : i32, message = "bqk,bkd->bqd"}> : () -> ()
    %cst_30 = arith.constant dense<0.000000e+00> : vector<1x16x32xf32>
    %118 = tpu.matmul %116, %117, %cst_30 {dimension_numbers = #tpu.dot_dimension_numbers<[2], [1], [1], [2], [0, 0, 0, 1, 1, 2], [0], [0]>} : vector<1x16x16xbf16>, vector<1x16x32xbf16>, vector<1x16x32xf32> -> vector<1x16x32xf32>
    "tpu.trace_stop"() : () -> ()
    %119 = vector.extract_strided_slice %118 {offsets = [0, 0, 0], sizes = [1, 16, 16], strides = [1, 1, 1]} : vector<1x16x32xf32> to vector<1x16x16xf32>
    %120 = vector.extract_strided_slice %118 {offsets = [0, 0, 16], sizes = [1, 16, 16], strides = [1, 1, 1]} : vector<1x16x32xf32> to vector<1x16x16xf32>
    %121 = vector.extract_strided_slice %119 {offsets = [0, 0, 0], sizes = [1, 8, 16], strides = [1, 1, 1]} : vector<1x16x16xf32> to vector<1x8x16xf32>
    %122 = vector.extract_strided_slice %120 {offsets = [0, 8, 0], sizes = [1, 8, 16], strides = [1, 1, 1]} : vector<1x16x16xf32> to vector<1x8x16xf32>
    %123 = arith.subf %121, %122 : vector<1x8x16xf32>
    %c0_31 = arith.constant 0 : index
    %c0_32 = arith.constant 0 : index
    %c16 = arith.constant 16 : index
    %124 = vector.load %arg13[%c0_31, %c0_32, %c16] : memref<1x16x32xf32, #tpu.memory_space<vmem>>, vector<1x8x16xf32>
    tpu.vector_store %arg13[%c0_31, %c0_32, %c16], %123 {strides = array<i32>} : memref<1x16x32xf32, #tpu.memory_space<vmem>>, vector<1x8x16xf32>,
    %125 = vector.extract_strided_slice %120 {offsets = [0, 0, 0], sizes = [1, 8, 16], strides = [1, 1, 1]} : vector<1x16x16xf32> to vector<1x8x16xf32>
    %126 = vector.extract_strided_slice %119 {offsets = [0, 8, 0], sizes = [1, 8, 16], strides = [1, 1, 1]} : vector<1x16x16xf32> to vector<1x8x16xf32>
    %127 = arith.addf %125, %126 : vector<1x8x16xf32>
    %c0_33 = arith.constant 0 : index
    %c8_34 = arith.constant 8 : index
    %c16_35 = arith.constant 16 : index
    %128 = vector.load %arg13[%c0_33, %c8_34, %c16_35] : memref<1x16x32xf32, #tpu.memory_space<vmem>>, vector<1x8x16xf32>
    tpu.vector_store %arg13[%c0_33, %c8_34, %c16_35], %127 {strides = array<i32>} : memref<1x16x32xf32, #tpu.memory_space<vmem>>, vector<1x8x16xf32>,
    %c0_36 = arith.constant 0 : index
    %c0_37 = arith.constant 0 : index
    %c0_38 = arith.constant 0 : index
    %129 = vector.load %arg13[%c0_36, %c0_37, %c0_38] : memref<1x16x32xf32, #tpu.memory_space<vmem>>, vector<1x16x32xf32>
    %130 = vector.shape_cast %129 : vector<1x16x32xf32> to vector<16x32xf32>
    %c0_39 = arith.constant 0 : index
    %c0_40 = arith.constant 0 : index
    %c0_41 = arith.constant 0 : index
    %131 = vector.load %arg5[%c0_39, %c0_40, %c0_41] : memref<1x32x64xbf16, #tpu.memory_space<vmem>>, vector<1x32x64xbf16>
    %132 = vector.shape_cast %131 : vector<1x32x64xbf16> to vector<32x64xbf16>
    %133 = arith.truncf %130 : vector<16x32xf32> to vector<16x32xbf16>
    %cst_42 = arith.constant dense<0.000000e+00> : vector<16x64xf32>
    %134 = tpu.matmul %133, %132, %cst_42 {dimension_numbers = #tpu.dot_dimension_numbers<[1], [0], [0], [1], [0, 0, 1, 1], [], []>} : vector<16x32xbf16>, vector<32x64xbf16>, vector<16x64xf32> -> vector<16x64xf32>
    %135 = vector.shape_cast %134 : vector<16x64xf32> to vector<1x16x64xf32>
    %c0_43 = arith.constant 0 : index
    %c0_44 = arith.constant 0 : index
    %c0_45 = arith.constant 0 : index
    %136 = vector.load %arg6[%c0_43, %c0_44, %c0_45] : memref<1x1x64xf32, #tpu.memory_space<vmem>>, vector<1x1x64xf32>
    %137 = vector.shape_cast %136 : vector<1x1x64xf32> to vector<1x64xf32>
    %138 = vector.extract_strided_slice %3 {offsets = [0, 0, 0], sizes = [1, 8, 64], strides = [1, 1, 1]} : vector<1x16x64xf32> to vector<1x8x64xf32>
    %139 = vector.extract_strided_slice %135 {offsets = [0, 0, 0], sizes = [1, 8, 64], strides = [1, 1, 1]} : vector<1x16x64xf32> to vector<1x8x64xf32>
    %140 = arith.addf %138, %139 : vector<1x8x64xf32>
    %cst_46 = arith.constant 2.000000e+00 : f32
    %141 = vector.broadcast %cst_46 : f32 to vector<1x64xf32>
    %142 = arith.mulf %141, %137 : vector<1x64xf32>
    %143 = vector.shape_cast %142 : vector<1x64xf32> to vector<1x1x64xf32>
    %144 = vector.broadcast %143 : vector<1x1x64xf32> to vector<1x8x64xf32>
    %145 = arith.subf %140, %144 : vector<1x8x64xf32>
    %c0_47 = arith.constant 0 : index
    %c0_48 = arith.constant 0 : index
    %c0_49 = arith.constant 0 : index
    %146 = vector.load %arg12[%c0_47, %c0_48, %c0_49] : memref<1x16x64xf32, #tpu.memory_space<vmem>>, vector<1x8x64xf32>
    tpu.vector_store %arg12[%c0_47, %c0_48, %c0_49], %145 {strides = array<i32>} : memref<1x16x64xf32, #tpu.memory_space<vmem>>, vector<1x8x64xf32>,
    %147 = vector.extract_strided_slice %3 {offsets = [0, 8, 0], sizes = [1, 8, 64], strides = [1, 1, 1]} : vector<1x16x64xf32> to vector<1x8x64xf32>
    %148 = vector.extract_strided_slice %135 {offsets = [0, 8, 0], sizes = [1, 8, 64], strides = [1, 1, 1]} : vector<1x16x64xf32> to vector<1x8x64xf32>
    %149 = arith.addf %147, %148 : vector<1x8x64xf32>
    %cst_50 = arith.constant 2.000000e+00 : f32
    %150 = vector.broadcast %cst_50 : f32 to vector<1x64xf32>
    %151 = arith.mulf %150, %137 : vector<1x64xf32>
    %152 = vector.shape_cast %151 : vector<1x64xf32> to vector<1x1x64xf32>
    %153 = vector.broadcast %152 : vector<1x1x64xf32> to vector<1x8x64xf32>
    %154 = arith.addf %149, %153 : vector<1x8x64xf32>
    %c0_51 = arith.constant 0 : index
    %c8_52 = arith.constant 8 : index
    %c0_53 = arith.constant 0 : index
    %155 = vector.load %arg12[%c0_51, %c8_52, %c0_53] : memref<1x16x64xf32, #tpu.memory_space<vmem>>, vector<1x8x64xf32>
    tpu.vector_store %arg12[%c0_51, %c8_52, %c0_53], %154 {strides = array<i32>} : memref<1x16x64xf32, #tpu.memory_space<vmem>>, vector<1x8x64xf32>,
    %c0_54 = arith.constant 0 : index
    %c0_55 = arith.constant 0 : index
    %c0_56 = arith.constant 0 : index
    %156 = vector.load %arg12[%c0_54, %c0_55, %c0_56] : memref<1x16x64xf32, #tpu.memory_space<vmem>>, vector<1x16x64xf32>
    %cst_57 = arith.constant dense<0.000000e+00> : vector<1x16xf32>
    %157 = vector.multi_reduction <add>, %156, %cst_57 [2] : vector<1x16x64xf32> to vector<1x16xf32>
    %158 = vector.shape_cast %157 : vector<1x16xf32> to vector<1x16x1xf32>
    %cst_58 = arith.constant 6.400000e+01 : f32
    %159 = vector.broadcast %cst_58 : f32 to vector<1x16x1xf32>
    %160 = arith.divf %158, %159 : vector<1x16x1xf32>
    %161 = vector.broadcast %160 : vector<1x16x1xf32> to vector<1x16x64xf32>
    %162 = arith.subf %156, %161 : vector<1x16x64xf32>
    %163 = arith.mulf %162, %162 : vector<1x16x64xf32>
    %cst_59 = arith.constant dense<0.000000e+00> : vector<1x16xf32>
    %164 = vector.multi_reduction <add>, %163, %cst_59 [2] : vector<1x16x64xf32> to vector<1x16xf32>
    %165 = vector.shape_cast %164 : vector<1x16xf32> to vector<1x16x1xf32>
    %cst_60 = arith.constant 6.400000e+01 : f32
    %166 = vector.broadcast %cst_60 : f32 to vector<1x16x1xf32>
    %167 = arith.divf %165, %166 : vector<1x16x1xf32>
    %cst_61 = arith.constant 9.99999974E-6 : f32
    %168 = vector.broadcast %cst_61 : f32 to vector<1x16x1xf32>
    %169 = arith.addf %167, %168 : vector<1x16x1xf32>
    %170 = math.rsqrt %169 : vector<1x16x1xf32>
    %171 = vector.broadcast %170 : vector<1x16x1xf32> to vector<1x16x64xf32>
    %172 = arith.mulf %162, %171 : vector<1x16x64xf32>
    %173 = vector.shape_cast %172 : vector<1x16x64xf32> to vector<16x64xf32>
    %c0_62 = arith.constant 0 : index
    %c0_63 = arith.constant 0 : index
    %c0_64 = arith.constant 0 : index
    %174 = vector.load %arg7[%c0_62, %c0_63, %c0_64] : memref<1x64x128xbf16, #tpu.memory_space<vmem>>, vector<1x64x128xbf16>
    %175 = vector.shape_cast %174 : vector<1x64x128xbf16> to vector<64x128xbf16>
    %176 = arith.truncf %173 : vector<16x64xf32> to vector<16x64xbf16>
    %cst_65 = arith.constant dense<0.000000e+00> : vector<16x128xf32>
    %177 = tpu.matmul %176, %175, %cst_65 {dimension_numbers = #tpu.dot_dimension_numbers<[1], [0], [0], [1], [0, 0, 1, 1], [], []>} : vector<16x64xbf16>, vector<64x128xbf16>, vector<16x128xf32> -> vector<16x128xf32>
    %178 = vector.shape_cast %177 : vector<16x128xf32> to vector<1x16x128xf32>
    %c0_66 = arith.constant 0 : index
    %c0_67 = arith.constant 0 : index
    %c0_68 = arith.constant 0 : index
    %179 = vector.load %arg8[%c0_66, %c0_67, %c0_68] : memref<1x1x128xf32, #tpu.memory_space<vmem>>, vector<1x1x128xf32>
    %180 = vector.shape_cast %179 : vector<1x1x128xf32> to vector<1x128xf32>
    %181 = vector.shape_cast %180 : vector<1x128xf32> to vector<1x1x128xf32>
    %182 = vector.broadcast %181 : vector<1x1x128xf32> to vector<1x16x128xf32>
    %183 = arith.addf %178, %182 : vector<1x16x128xf32>
    %184 = vector.extract_strided_slice %183 {offsets = [0, 0, 0], sizes = [1, 16, 64], strides = [1, 1, 1]} : vector<1x16x128xf32> to vector<1x16x64xf32>
    %185 = vector.extract_strided_slice %183 {offsets = [0, 0, 64], sizes = [1, 16, 64], strides = [1, 1, 1]} : vector<1x16x128xf32> to vector<1x16x64xf32>
    %186 = vector.extract_strided_slice %184 {offsets = [0, 0, 0], sizes = [1, 8, 64], strides = [1, 1, 1]} : vector<1x16x64xf32> to vector<1x8x64xf32>
    %187 = vector.extract_strided_slice %185 {offsets = [0, 8, 0], sizes = [1, 8, 64], strides = [1, 1, 1]} : vector<1x16x64xf32> to vector<1x8x64xf32>
    %188 = arith.subf %186, %187 : vector<1x8x64xf32>
    %cst_69 = arith.constant 0.000000e+00 : f32
    %189 = vector.broadcast %cst_69 : f32 to vector<1x8x64xf32>
    %190 = arith.maximumf %188, %189 : vector<1x8x64xf32>
    %191 = vector.extract_strided_slice %184 {offsets = [0, 8, 0], sizes = [1, 8, 64], strides = [1, 1, 1]} : vector<1x16x64xf32> to vector<1x8x64xf32>
    %192 = vector.extract_strided_slice %185 {offsets = [0, 0, 0], sizes = [1, 8, 64], strides = [1, 1, 1]} : vector<1x16x64xf32> to vector<1x8x64xf32>
    %193 = arith.addf %191, %192 : vector<1x8x64xf32>
    %cst_70 = arith.constant 0.000000e+00 : f32
    %194 = vector.broadcast %cst_70 : f32 to vector<1x8x64xf32>
    %195 = arith.maximumf %193, %194 : vector<1x8x64xf32>
    %196 = tpu.concatenate %190, %195 in 1 : vector<1x8x64xf32>, vector<1x8x64xf32> -> vector<1x16x64xf32>
    %197 = vector.shape_cast %196 : vector<1x16x64xf32> to vector<16x64xf32>
    %c0_71 = arith.constant 0 : index
    %c0_72 = arith.constant 0 : index
    %c0_73 = arith.constant 0 : index
    %198 = vector.load %arg9[%c0_71, %c0_72, %c0_73] : memref<1x64x128xbf16, #tpu.memory_space<vmem>>, vector<1x64x128xbf16>
    %199 = vector.shape_cast %198 : vector<1x64x128xbf16> to vector<64x128xbf16>
    %200 = arith.truncf %197 : vector<16x64xf32> to vector<16x64xbf16>
    %cst_74 = arith.constant dense<0.000000e+00> : vector<16x128xf32>
    %201 = tpu.matmul %200, %199, %cst_74 {dimension_numbers = #tpu.dot_dimension_numbers<[1], [0], [0], [1], [0, 0, 1, 1], [], []>} : vector<16x64xbf16>, vector<64x128xbf16>, vector<16x128xf32> -> vector<16x128xf32>
    %202 = vector.shape_cast %201 : vector<16x128xf32> to vector<1x16x128xf32>
    %c0_75 = arith.constant 0 : index
    %c0_76 = arith.constant 0 : index
    %c0_77 = arith.constant 0 : index
    %203 = vector.load %arg10[%c0_75, %c0_76, %c0_77] : memref<1x1x128xf32, #tpu.memory_space<vmem>>, vector<1x1x128xf32>
    %204 = vector.shape_cast %203 : vector<1x1x128xf32> to vector<1x128xf32>
    %205 = vector.shape_cast %204 : vector<1x128xf32> to vector<1x1x128xf32>
    %206 = vector.broadcast %205 : vector<1x1x128xf32> to vector<1x16x128xf32>
    %207 = arith.addf %202, %206 : vector<1x16x128xf32>
    %208 = vector.extract_strided_slice %207 {offsets = [0, 0, 0], sizes = [1, 16, 64], strides = [1, 1, 1]} : vector<1x16x128xf32> to vector<1x16x64xf32>
    %209 = vector.extract_strided_slice %207 {offsets = [0, 0, 64], sizes = [1, 16, 64], strides = [1, 1, 1]} : vector<1x16x128xf32> to vector<1x16x64xf32>
    %210 = vector.extract_strided_slice %156 {offsets = [0, 0, 0], sizes = [1, 8, 64], strides = [1, 1, 1]} : vector<1x16x64xf32> to vector<1x8x64xf32>
    %211 = vector.extract_strided_slice %208 {offsets = [0, 0, 0], sizes = [1, 8, 64], strides = [1, 1, 1]} : vector<1x16x64xf32> to vector<1x8x64xf32>
    %212 = arith.addf %210, %211 : vector<1x8x64xf32>
    %213 = vector.extract_strided_slice %209 {offsets = [0, 8, 0], sizes = [1, 8, 64], strides = [1, 1, 1]} : vector<1x16x64xf32> to vector<1x8x64xf32>
    %214 = arith.subf %212, %213 : vector<1x8x64xf32>
    %c0_78 = arith.constant 0 : index
    %c0_79 = arith.constant 0 : index
    %c0_80 = arith.constant 0 : index
    %215 = vector.load %arg12[%c0_78, %c0_79, %c0_80] : memref<1x16x64xf32, #tpu.memory_space<vmem>>, vector<1x8x64xf32>
    tpu.vector_store %arg12[%c0_78, %c0_79, %c0_80], %214 {strides = array<i32>} : memref<1x16x64xf32, #tpu.memory_space<vmem>>, vector<1x8x64xf32>,
    %216 = vector.extract_strided_slice %156 {offsets = [0, 8, 0], sizes = [1, 8, 64], strides = [1, 1, 1]} : vector<1x16x64xf32> to vector<1x8x64xf32>
    %217 = vector.extract_strided_slice %208 {offsets = [0, 8, 0], sizes = [1, 8, 64], strides = [1, 1, 1]} : vector<1x16x64xf32> to vector<1x8x64xf32>
    %218 = arith.addf %216, %217 : vector<1x8x64xf32>
    %219 = vector.extract_strided_slice %209 {offsets = [0, 0, 0], sizes = [1, 8, 64], strides = [1, 1, 1]} : vector<1x16x64xf32> to vector<1x8x64xf32>
    %220 = arith.addf %218, %219 : vector<1x8x64xf32>
    %c0_81 = arith.constant 0 : index
    %c8_82 = arith.constant 8 : index
    %c0_83 = arith.constant 0 : index
    %221 = vector.load %arg12[%c0_81, %c8_82, %c0_83] : memref<1x16x64xf32, #tpu.memory_space<vmem>>, vector<1x8x64xf32>
    tpu.vector_store %arg12[%c0_81, %c8_82, %c0_83], %220 {strides = array<i32>} : memref<1x16x64xf32, #tpu.memory_space<vmem>>, vector<1x8x64xf32>,
    %c1_i32 = arith.constant 1 : i32
    %222 = arith.addi %arg1, %c1_i32 : i32
    %c2_i32 = arith.constant 2 : i32
    %c0_i32_84 = arith.constant 0 : i32
    %223 = arith.cmpi eq, %c2_i32, %c0_i32_84 : i32
    %c1_i32_85 = arith.constant 1 : i32
    %224 = arith.select %223, %c1_i32_85, %c2_i32 : i32
    %225 = arith.remsi %222, %224 : i32
    %c0_i32_86 = arith.constant 0 : i32
    %226 = arith.cmpi ne, %225, %c0_i32_86 : i32
    %c0_i32_87 = arith.constant 0 : i32
    %227 = arith.cmpi slt, %225, %c0_i32_87 : i32
    %c0_i32_88 = arith.constant 0 : i32
    %228 = arith.cmpi slt, %224, %c0_i32_88 : i32
    %229 = arith.xori %227, %228 : i1
    %230 = arith.andi %229, %226 : i1
    %231 = arith.addi %225, %224 : i32
    %232 = arith.select %230, %231, %225 : i32
    %c0_i32_89 = arith.constant 0 : i32
    %233 = arith.cmpi eq, %232, %c0_i32_89 : i32
    %234 = arith.extui %233 : i1 to i32
    %c0_i32_90 = arith.constant 0 : i32
    %235 = arith.cmpi ne, %234, %c0_i32_90 : i32
    scf.if %235 {
      %c0_91 = arith.constant 0 : index
      %c0_92 = arith.constant 0 : index
      %c0_93 = arith.constant 0 : index
      %236 = vector.load %arg12[%c0_91, %c0_92, %c0_93] : memref<1x16x64xf32, #tpu.memory_space<vmem>>, vector<1x16x64xf32>
      %cst_94 = arith.constant dense<0.000000e+00> : vector<1x16xf32>
      %237 = vector.multi_reduction <add>, %236, %cst_94 [2] : vector<1x16x64xf32> to vector<1x16xf32>
      %238 = vector.shape_cast %237 : vector<1x16xf32> to vector<1x16x1xf32>
      %cst_95 = arith.constant 6.400000e+01 : f32
      %239 = vector.broadcast %cst_95 : f32 to vector<1x16x1xf32>
      %240 = arith.divf %238, %239 : vector<1x16x1xf32>
      %241 = vector.broadcast %240 : vector<1x16x1xf32> to vector<1x16x64xf32>
      %242 = arith.subf %236, %241 : vector<1x16x64xf32>
      %243 = arith.mulf %242, %242 : vector<1x16x64xf32>
      %cst_96 = arith.constant dense<0.000000e+00> : vector<1x16xf32>
      %244 = vector.multi_reduction <add>, %243, %cst_96 [2] : vector<1x16x64xf32> to vector<1x16xf32>
      %245 = vector.shape_cast %244 : vector<1x16xf32> to vector<1x16x1xf32>
      %cst_97 = arith.constant 6.400000e+01 : f32
      %246 = vector.broadcast %cst_97 : f32 to vector<1x16x1xf32>
      %247 = arith.divf %245, %246 : vector<1x16x1xf32>
      %cst_98 = arith.constant 9.99999974E-6 : f32
      %248 = vector.broadcast %cst_98 : f32 to vector<1x16x1xf32>
      %249 = arith.addf %247, %248 : vector<1x16x1xf32>
      %250 = math.rsqrt %249 : vector<1x16x1xf32>
      %251 = vector.broadcast %250 : vector<1x16x1xf32> to vector<1x16x64xf32>
      %252 = arith.mulf %242, %251 : vector<1x16x64xf32>
      %c0_99 = arith.constant 0 : index
      %c0_100 = arith.constant 0 : index
      %c0_101 = arith.constant 0 : index
      %253 = vector.load %arg12[%c0_99, %c0_100, %c0_101] : memref<1x16x64xf32, #tpu.memory_space<vmem>>, vector<1x16x64xf32>
      tpu.vector_store %arg12[%c0_99, %c0_100, %c0_101], %252 {strides = array<i32>} : memref<1x16x64xf32, #tpu.memory_space<vmem>>, vector<1x16x64xf32>,
      %c3_i32 = arith.constant 3 : i32
      %254 = arith.cmpi eq, %arg1, %c3_i32 : i32
      %255 = arith.extui %254 : i1 to i32
      %c0_i32_102 = arith.constant 0 : i32
      %256 = arith.cmpi ne, %255, %c0_i32_102 : i32
      scf.if %256 {
        %257 = vector.extract_strided_slice %252 {offsets = [0, 0, 0], sizes = [1, 8, 64], strides = [1, 1, 1]} : vector<1x16x64xf32> to vector<1x8x64xf32>
        %258 = vector.extract_strided_slice %252 {offsets = [0, 8, 0], sizes = [1, 8, 64], strides = [1, 1, 1]} : vector<1x16x64xf32> to vector<1x8x64xf32>
        %259 = tpu.concatenate %257, %258 in 2 : vector<1x8x64xf32>, vector<1x8x64xf32> -> vector<1x8x128xf32>
        %c0_103 = arith.constant 0 : index
        %c0_104 = arith.constant 0 : index
        %c0_105 = arith.constant 0 : index
        %260 = vector.load %arg11[%c0_103, %c0_104, %c0_105] : memref<1x8x128xf32, #tpu.memory_space<vmem>>, vector<1x8x128xf32>
        tpu.vector_store %arg11[%c0_103, %c0_104, %c0_105], %259 {strides = array<i32>} : memref<1x8x128xf32, #tpu.memory_space<vmem>>, vector<1x8x128xf32>,
      } else {
      }
    } else {
    }
    return
  }
  func.func @transform_0(%arg0: i32, %arg1: i32) -> (i32, i32, i32) {
    %c0_i32 = arith.constant 0 : i32
    %c0_i32_0 = arith.constant 0 : i32
    %c0_i32_1 = arith.constant 0 : i32
    return %arg0, %c0_i32, %c0_i32_0 : i32, i32, i32
  }
  func.func @transform_1(%arg0: i32, %arg1: i32) -> (i32, i32, i32) {
    %c0_i32 = arith.constant 0 : i32
    %c0_i32_0 = arith.constant 0 : i32
    %c0_i32_1 = arith.constant 0 : i32
    return %arg0, %c0_i32, %c0_i32_0 : i32, i32, i32
  }
  func.func @transform_2(%arg0: i32, %arg1: i32) -> (i32, i32, i32) {
    %c0_i32 = arith.constant 0 : i32
    %c0_i32_0 = arith.constant 0 : i32
    %c0_i32_1 = arith.constant 0 : i32
    return %arg1, %c0_i32, %c0_i32_0 : i32, i32, i32
  }
  func.func @transform_3(%arg0: i32, %arg1: i32) -> (i32, i32, i32) {
    %c0_i32 = arith.constant 0 : i32
    %c0_i32_0 = arith.constant 0 : i32
    %c0_i32_1 = arith.constant 0 : i32
    return %arg1, %c0_i32, %c0_i32_0 : i32, i32, i32
  }
  func.func @transform_4(%arg0: i32, %arg1: i32) -> (i32, i32, i32) {
    %c0_i32 = arith.constant 0 : i32
    %c0_i32_0 = arith.constant 0 : i32
    %c0_i32_1 = arith.constant 0 : i32
    return %arg1, %c0_i32, %c0_i32_0 : i32, i32, i32
  }
  func.func @transform_5(%arg0: i32, %arg1: i32) -> (i32, i32, i32) {
    %c0_i32 = arith.constant 0 : i32
    %c0_i32_0 = arith.constant 0 : i32
    %c0_i32_1 = arith.constant 0 : i32
    return %arg1, %c0_i32, %c0_i32_0 : i32, i32, i32
  }
  func.func @transform_6(%arg0: i32, %arg1: i32) -> (i32, i32, i32) {
    %c0_i32 = arith.constant 0 : i32
    %c0_i32_0 = arith.constant 0 : i32
    %c0_i32_1 = arith.constant 0 : i32
    return %arg1, %c0_i32, %c0_i32_0 : i32, i32, i32
  }
  func.func @transform_7(%arg0: i32, %arg1: i32) -> (i32, i32, i32) {
    %c0_i32 = arith.constant 0 : i32
    %c0_i32_0 = arith.constant 0 : i32
    %c0_i32_1 = arith.constant 0 : i32
    return %arg1, %c0_i32, %c0_i32_0 : i32, i32, i32
  }
  func.func @transform_8(%arg0: i32, %arg1: i32) -> (i32, i32, i32) {
    %c0_i32 = arith.constant 0 : i32
    %c0_i32_0 = arith.constant 0 : i32
    %c0_i32_1 = arith.constant 0 : i32
    return %arg1, %c0_i32, %c0_i32_0 : i32, i32, i32
  }
  func.func @transform_9(%arg0: i32, %arg1: i32) -> (i32, i32, i32) {
    %c0_i32 = arith.constant 0 : i32
    %c0_i32_0 = arith.constant 0 : i32
    %c0_i32_1 = arith.constant 0 : i32
    return %arg0, %c0_i32, %c0_i32_0 : i32, i32, i32
  }
}

module attributes {stable_mosaic.version = 11 : i64} {
  func.func @_encoder_kernel(%arg0: i32, %arg1: i32, %arg2: memref<1x8x32xf32, #tpu.memory_space<vmem>>, %arg3: memref<1x8x32xf32, #tpu.memory_space<vmem>>, %arg4: memref<1x32x96xbf16, #tpu.memory_space<vmem>>, %arg5: memref<1x32x32xbf16, #tpu.memory_space<vmem>>, %arg6: memref<1x1x32xf32, #tpu.memory_space<vmem>>, %arg7: memref<1x32x128xbf16, #tpu.memory_space<vmem>>, %arg8: memref<1x1x128xf32, #tpu.memory_space<vmem>>, %arg9: memref<1x64x64xbf16, #tpu.memory_space<vmem>>, %arg10: memref<1x1x64xf32, #tpu.memory_space<vmem>>, %arg11: memref<1x8x64xf32, #tpu.memory_space<vmem>>, %arg12: memref<1x16x32xf32, #tpu.memory_space<vmem>>, %arg13: memref<1x16x32xf32, #tpu.memory_space<vmem>>) attributes {dimension_semantics = [#tpu.dimension_semantics<parallel>, #tpu.dimension_semantics<arbitrary>], iteration_bounds = array<i64: 2, 4>, scalar_prefetch = 0 : i64, scratch_operands = 2 : i64, tpu.core_type = #tpu.core_type<tc>, window_params = [{transform_indices = @transform_0, window_bounds = array<i64: 1, 8, 32>}, {transform_indices = @transform_1, window_bounds = array<i64: 1, 8, 32>}, {transform_indices = @transform_2, window_bounds = array<i64: 1, 32, 96>}, {transform_indices = @transform_3, window_bounds = array<i64: 1, 32, 32>}, {transform_indices = @transform_4, window_bounds = array<i64: 1, 1, 32>}, {transform_indices = @transform_5, window_bounds = array<i64: 1, 32, 128>}, {transform_indices = @transform_6, window_bounds = array<i64: 1, 1, 128>}, {transform_indices = @transform_7, window_bounds = array<i64: 1, 64, 64>}, {transform_indices = @transform_8, window_bounds = array<i64: 1, 1, 64>}, {transform_indices = @transform_9, window_bounds = array<i64: 1, 8, 64>}]} {
    %c0_i32 = arith.constant 0 : i32
    %0 = arith.cmpi eq, %arg1, %c0_i32 : i32
    %1 = arith.extui %0 : i1 to i32
    %c0_i32_0 = arith.constant 0 : i32
    %2 = arith.cmpi ne, %1, %c0_i32_0 : i32
    scf.if %2 {
      %c0_91 = arith.constant 0 : index
      %c0_92 = arith.constant 0 : index
      %c0_93 = arith.constant 0 : index
      %236 = vector.load %arg2[%c0_91, %c0_92, %c0_93] : memref<1x8x32xf32, #tpu.memory_space<vmem>>, vector<1x8x32xf32>
      %c0_94 = arith.constant 0 : index
      %c0_95 = arith.constant 0 : index
      %c0_96 = arith.constant 0 : index
      %237 = vector.load %arg12[%c0_94, %c0_95, %c0_96] : memref<1x16x32xf32, #tpu.memory_space<vmem>>, vector<1x8x32xf32>
      tpu.vector_store %arg12[%c0_94, %c0_95, %c0_96], %236 {strides = array<i32>} : memref<1x16x32xf32, #tpu.memory_space<vmem>>, vector<1x8x32xf32>,
      %c0_97 = arith.constant 0 : index
      %c0_98 = arith.constant 0 : index
      %c0_99 = arith.constant 0 : index
      %238 = vector.load %arg3[%c0_97, %c0_98, %c0_99] : memref<1x8x32xf32, #tpu.memory_space<vmem>>, vector<1x8x32xf32>
      %c0_100 = arith.constant 0 : index
      %c8_101 = arith.constant 8 : index
      %c0_102 = arith.constant 0 : index
      %239 = vector.load %arg12[%c0_100, %c8_101, %c0_102] : memref<1x16x32xf32, #tpu.memory_space<vmem>>, vector<1x8x32xf32>
      tpu.vector_store %arg12[%c0_100, %c8_101, %c0_102], %238 {strides = array<i32>} : memref<1x16x32xf32, #tpu.memory_space<vmem>>, vector<1x8x32xf32>,
    } else {
    }
    %c0 = arith.constant 0 : index
    %c0_1 = arith.constant 0 : index
    %c0_2 = arith.constant 0 : index
    %3 = vector.load %arg12[%c0, %c0_1, %c0_2] : memref<1x16x32xf32, #tpu.memory_space<vmem>>, vector<1x16x32xf32>
    %cst = arith.constant dense<0.000000e+00> : vector<1x16xf32>
    %4 = vector.multi_reduction <add>, %3, %cst [2] : vector<1x16x32xf32> to vector<1x16xf32>
    %5 = vector.shape_cast %4 : vector<1x16xf32> to vector<1x16x1xf32>
    %cst_3 = arith.constant 3.200000e+01 : f32
    %6 = vector.broadcast %cst_3 : f32 to vector<1x16x1xf32>
    %7 = arith.divf %5, %6 : vector<1x16x1xf32>
    %8 = vector.broadcast %7 : vector<1x16x1xf32> to vector<1x16x32xf32>
    %9 = arith.subf %3, %8 : vector<1x16x32xf32>
    %10 = arith.mulf %9, %9 : vector<1x16x32xf32>
    %cst_4 = arith.constant dense<0.000000e+00> : vector<1x16xf32>
    %11 = vector.multi_reduction <add>, %10, %cst_4 [2] : vector<1x16x32xf32> to vector<1x16xf32>
    %12 = vector.shape_cast %11 : vector<1x16xf32> to vector<1x16x1xf32>
    %cst_5 = arith.constant 3.200000e+01 : f32
    %13 = vector.broadcast %cst_5 : f32 to vector<1x16x1xf32>
    %14 = arith.divf %12, %13 : vector<1x16x1xf32>
    %cst_6 = arith.constant 9.99999974E-6 : f32
    %15 = vector.broadcast %cst_6 : f32 to vector<1x16x1xf32>
    %16 = arith.addf %14, %15 : vector<1x16x1xf32>
    %17 = math.rsqrt %16 : vector<1x16x1xf32>
    %18 = vector.broadcast %17 : vector<1x16x1xf32> to vector<1x16x32xf32>
    %19 = arith.mulf %9, %18 : vector<1x16x32xf32>
    %20 = vector.shape_cast %19 : vector<1x16x32xf32> to vector<16x32xf32>
    %c0_7 = arith.constant 0 : index
    %c0_8 = arith.constant 0 : index
    %c0_9 = arith.constant 0 : index
    %21 = vector.load %arg4[%c0_7, %c0_8, %c0_9] : memref<1x32x96xbf16, #tpu.memory_space<vmem>>, vector<1x32x96xbf16>
    %22 = vector.shape_cast %21 : vector<1x32x96xbf16> to vector<32x96xbf16>
    %23 = arith.truncf %20 : vector<16x32xf32> to vector<16x32xbf16>
    %cst_10 = arith.constant dense<0.000000e+00> : vector<16x96xf32>
    %24 = tpu.matmul %23, %22, %cst_10 {dimension_numbers = #tpu.dot_dimension_numbers<[1], [0], [0], [1], [0, 0, 1, 1], [], []>} : vector<16x32xbf16>, vector<32x96xbf16>, vector<16x96xf32> -> vector<16x96xf32>
    %25 = vector.shape_cast %24 : vector<16x96xf32> to vector<1x16x96xf32>
    %26 = vector.extract_strided_slice %25 {offsets = [0, 0, 0], sizes = [1, 16, 32], strides = [1, 1, 1]} : vector<1x16x96xf32> to vector<1x16x32xf32>
    %cst_11 = arith.constant 2.500000e-01 : f32
    %27 = vector.broadcast %cst_11 : f32 to vector<1x16x32xf32>
    %28 = arith.mulf %26, %27 : vector<1x16x32xf32>
    %29 = vector.extract_strided_slice %25 {offsets = [0, 0, 32], sizes = [1, 16, 32], strides = [1, 1, 1]} : vector<1x16x96xf32> to vector<1x16x32xf32>
    %30 = vector.extract_strided_slice %25 {offsets = [0, 0, 64], sizes = [1, 16, 32], strides = [1, 1, 1]} : vector<1x16x96xf32> to vector<1x16x32xf32>
    %31 = vector.extract_strided_slice %28 {offsets = [0, 0, 0], sizes = [1, 16, 16], strides = [1, 1, 1]} : vector<1x16x32xf32> to vector<1x16x16xf32>
    %32 = vector.extract_strided_slice %29 {offsets = [0, 0, 0], sizes = [1, 16, 16], strides = [1, 1, 1]} : vector<1x16x32xf32> to vector<1x16x16xf32>
    %33 = vector.extract_strided_slice %30 {offsets = [0, 0, 0], sizes = [1, 16, 16], strides = [1, 1, 1]} : vector<1x16x32xf32> to vector<1x16x16xf32>
    %34 = arith.truncf %31 : vector<1x16x16xf32> to vector<1x16x16xbf16>
    %35 = arith.truncf %32 : vector<1x16x16xf32> to vector<1x16x16xbf16>
    "tpu.trace_start"() <{level = 10 : i32, message = "bqd,bkd->bqk"}> : () -> ()
    %cst_12 = arith.constant dense<0.000000e+00> : vector<1x16x16xf32>
    %36 = tpu.matmul %34, %35, %cst_12 {dimension_numbers = #tpu.dot_dimension_numbers<[2], [2], [1], [1], [0, 0, 0, 1, 1, 1], [0], [0]>} : vector<1x16x16xbf16>, vector<1x16x16xbf16>, vector<1x16x16xf32> -> vector<1x16x16xf32>
    "tpu.trace_stop"() : () -> ()
    %37 = vector.extract_strided_slice %36 {offsets = [0, 0, 0], sizes = [1, 16, 8], strides = [1, 1, 1]} : vector<1x16x16xf32> to vector<1x16x8xf32>
    %cst_13 = arith.constant dense<0xFF800000> : vector<1x16xf32>
    %38 = vector.multi_reduction <maximumf>, %37, %cst_13 [2] : vector<1x16x8xf32> to vector<1x16xf32>
    %39 = vector.shape_cast %38 : vector<1x16xf32> to vector<1x16x1xf32>
    %40 = vector.broadcast %39 : vector<1x16x1xf32> to vector<1x16x8xf32>
    %41 = arith.subf %37, %40 : vector<1x16x8xf32>
    %42 = math.exp %41 : vector<1x16x8xf32>
    %cst_14 = arith.constant dense<0.000000e+00> : vector<1x16xf32>
    %43 = vector.multi_reduction <add>, %42, %cst_14 [2] : vector<1x16x8xf32> to vector<1x16xf32>
    %44 = vector.shape_cast %43 : vector<1x16xf32> to vector<1x16x1xf32>
    %45 = tpu.reciprocal %44 {approx = true} : vector<1x16x1xf32> -> vector<1x16x1xf32>
    %46 = vector.broadcast %45 : vector<1x16x1xf32> to vector<1x16x8xf32>
    %47 = arith.mulf %42, %46 : vector<1x16x8xf32>
    %48 = vector.extract_strided_slice %36 {offsets = [0, 0, 8], sizes = [1, 16, 8], strides = [1, 1, 1]} : vector<1x16x16xf32> to vector<1x16x8xf32>
    %cst_15 = arith.constant dense<0xFF800000> : vector<1x16xf32>
    %49 = vector.multi_reduction <maximumf>, %48, %cst_15 [2] : vector<1x16x8xf32> to vector<1x16xf32>
    %50 = vector.shape_cast %49 : vector<1x16xf32> to vector<1x16x1xf32>
    %51 = vector.broadcast %50 : vector<1x16x1xf32> to vector<1x16x8xf32>
    %52 = arith.subf %48, %51 : vector<1x16x8xf32>
    %53 = math.exp %52 : vector<1x16x8xf32>
    %cst_16 = arith.constant dense<0.000000e+00> : vector<1x16xf32>
    %54 = vector.multi_reduction <add>, %53, %cst_16 [2] : vector<1x16x8xf32> to vector<1x16xf32>
    %55 = vector.shape_cast %54 : vector<1x16xf32> to vector<1x16x1xf32>
    %56 = tpu.reciprocal %55 {approx = true} : vector<1x16x1xf32> -> vector<1x16x1xf32>
    %57 = vector.broadcast %56 : vector<1x16x1xf32> to vector<1x16x8xf32>
    %58 = arith.mulf %53, %57 : vector<1x16x8xf32>
    %59 = tpu.concatenate %47, %58 in 2 : vector<1x16x8xf32>, vector<1x16x8xf32> -> vector<1x16x16xf32>
    %60 = vector.extract_strided_slice %33 {offsets = [0, 0, 0], sizes = [1, 8, 16], strides = [1, 1, 1]} : vector<1x16x16xf32> to vector<1x8x16xf32>
    %61 = vector.extract_strided_slice %33 {offsets = [0, 8, 0], sizes = [1, 8, 16], strides = [1, 1, 1]} : vector<1x16x16xf32> to vector<1x8x16xf32>
    %62 = tpu.concatenate %60, %61 in 2 : vector<1x8x16xf32>, vector<1x8x16xf32> -> vector<1x8x32xf32>
    %cst_17 = arith.constant 0.000000e+00 : f32
    %63 = vector.broadcast %cst_17 : f32 to vector<1x8x16xf32>
    %64 = arith.subf %63, %61 : vector<1x8x16xf32>
    %65 = tpu.concatenate %64, %60 in 2 : vector<1x8x16xf32>, vector<1x8x16xf32> -> vector<1x8x32xf32>
    %66 = tpu.concatenate %62, %65 in 1 : vector<1x8x32xf32>, vector<1x8x32xf32> -> vector<1x16x32xf32>
    %67 = arith.truncf %59 : vector<1x16x16xf32> to vector<1x16x16xbf16>
    %68 = arith.truncf %66 : vector<1x16x32xf32> to vector<1x16x32xbf16>
    "tpu.trace_start"() <{level = 10 : i32, message = "bqk,bkd->bqd"}> : () -> ()
    %cst_18 = arith.constant dense<0.000000e+00> : vector<1x16x32xf32>
    %69 = tpu.matmul %67, %68, %cst_18 {dimension_numbers = #tpu.dot_dimension_numbers<[2], [1], [1], [2], [0, 0, 0, 1, 1, 2], [0], [0]>} : vector<1x16x16xbf16>, vector<1x16x32xbf16>, vector<1x16x32xf32> -> vector<1x16x32xf32>
    "tpu.trace_stop"() : () -> ()
    %70 = vector.extract_strided_slice %69 {offsets = [0, 0, 0], sizes = [1, 16, 16], strides = [1, 1, 1]} : vector<1x16x32xf32> to vector<1x16x16xf32>
    %71 = vector.extract_strided_slice %69 {offsets = [0, 0, 16], sizes = [1, 16, 16], strides = [1, 1, 1]} : vector<1x16x32xf32> to vector<1x16x16xf32>
    %72 = vector.extract_strided_slice %70 {offsets = [0, 0, 0], sizes = [1, 8, 16], strides = [1, 1, 1]} : vector<1x16x16xf32> to vector<1x8x16xf32>
    %73 = vector.extract_strided_slice %71 {offsets = [0, 8, 0], sizes = [1, 8, 16], strides = [1, 1, 1]} : vector<1x16x16xf32> to vector<1x8x16xf32>
    %74 = arith.subf %72, %73 : vector<1x8x16xf32>
    %c0_19 = arith.constant 0 : index
    %c0_20 = arith.constant 0 : index
    %c0_21 = arith.constant 0 : index
    %75 = vector.load %arg13[%c0_19, %c0_20, %c0_21] : memref<1x16x32xf32, #tpu.memory_space<vmem>>, vector<1x8x16xf32>
    tpu.vector_store %arg13[%c0_19, %c0_20, %c0_21], %74 {strides = array<i32>} : memref<1x16x32xf32, #tpu.memory_space<vmem>>, vector<1x8x16xf32>,
    %76 = vector.extract_strided_slice %71 {offsets = [0, 0, 0], sizes = [1, 8, 16], strides = [1, 1, 1]} : vector<1x16x16xf32> to vector<1x8x16xf32>
    %77 = vector.extract_strided_slice %70 {offsets = [0, 8, 0], sizes = [1, 8, 16], strides = [1, 1, 1]} : vector<1x16x16xf32> to vector<1x8x16xf32>
    %78 = arith.addf %76, %77 : vector<1x8x16xf32>
    %c0_22 = arith.constant 0 : index
    %c8 = arith.constant 8 : index
    %c0_23 = arith.constant 0 : index
    %79 = vector.load %arg13[%c0_22, %c8, %c0_23] : memref<1x16x32xf32, #tpu.memory_space<vmem>>, vector<1x8x16xf32>
    tpu.vector_store %arg13[%c0_22, %c8, %c0_23], %78 {strides = array<i32>} : memref<1x16x32xf32, #tpu.memory_space<vmem>>, vector<1x8x16xf32>,
    %80 = vector.extract_strided_slice %28 {offsets = [0, 0, 16], sizes = [1, 16, 16], strides = [1, 1, 1]} : vector<1x16x32xf32> to vector<1x16x16xf32>
    %81 = vector.extract_strided_slice %29 {offsets = [0, 0, 16], sizes = [1, 16, 16], strides = [1, 1, 1]} : vector<1x16x32xf32> to vector<1x16x16xf32>
    %82 = vector.extract_strided_slice %30 {offsets = [0, 0, 16], sizes = [1, 16, 16], strides = [1, 1, 1]} : vector<1x16x32xf32> to vector<1x16x16xf32>
    %83 = arith.truncf %80 : vector<1x16x16xf32> to vector<1x16x16xbf16>
    %84 = arith.truncf %81 : vector<1x16x16xf32> to vector<1x16x16xbf16>
    "tpu.trace_start"() <{level = 10 : i32, message = "bqd,bkd->bqk"}> : () -> ()
    %cst_24 = arith.constant dense<0.000000e+00> : vector<1x16x16xf32>
    %85 = tpu.matmul %83, %84, %cst_24 {dimension_numbers = #tpu.dot_dimension_numbers<[2], [2], [1], [1], [0, 0, 0, 1, 1, 1], [0], [0]>} : vector<1x16x16xbf16>, vector<1x16x16xbf16>, vector<1x16x16xf32> -> vector<1x16x16xf32>
    "tpu.trace_stop"() : () -> ()
    %86 = vector.extract_strided_slice %85 {offsets = [0, 0, 0], sizes = [1, 16, 8], strides = [1, 1, 1]} : vector<1x16x16xf32> to vector<1x16x8xf32>
    %cst_25 = arith.constant dense<0xFF800000> : vector<1x16xf32>
    %87 = vector.multi_reduction <maximumf>, %86, %cst_25 [2] : vector<1x16x8xf32> to vector<1x16xf32>
    %88 = vector.shape_cast %87 : vector<1x16xf32> to vector<1x16x1xf32>
    %89 = vector.broadcast %88 : vector<1x16x1xf32> to vector<1x16x8xf32>
    %90 = arith.subf %86, %89 : vector<1x16x8xf32>
    %91 = math.exp %90 : vector<1x16x8xf32>
    %cst_26 = arith.constant dense<0.000000e+00> : vector<1x16xf32>
    %92 = vector.multi_reduction <add>, %91, %cst_26 [2] : vector<1x16x8xf32> to vector<1x16xf32>
    %93 = vector.shape_cast %92 : vector<1x16xf32> to vector<1x16x1xf32>
    %94 = tpu.reciprocal %93 {approx = true} : vector<1x16x1xf32> -> vector<1x16x1xf32>
    %95 = vector.broadcast %94 : vector<1x16x1xf32> to vector<1x16x8xf32>
    %96 = arith.mulf %91, %95 : vector<1x16x8xf32>
    %97 = vector.extract_strided_slice %85 {offsets = [0, 0, 8], sizes = [1, 16, 8], strides = [1, 1, 1]} : vector<1x16x16xf32> to vector<1x16x8xf32>
    %cst_27 = arith.constant dense<0xFF800000> : vector<1x16xf32>
    %98 = vector.multi_reduction <maximumf>, %97, %cst_27 [2] : vector<1x16x8xf32> to vector<1x16xf32>
    %99 = vector.shape_cast %98 : vector<1x16xf32> to vector<1x16x1xf32>
    %100 = vector.broadcast %99 : vector<1x16x1xf32> to vector<1x16x8xf32>
    %101 = arith.subf %97, %100 : vector<1x16x8xf32>
    %102 = math.exp %101 : vector<1x16x8xf32>
    %cst_28 = arith.constant dense<0.000000e+00> : vector<1x16xf32>
    %103 = vector.multi_reduction <add>, %102, %cst_28 [2] : vector<1x16x8xf32> to vector<1x16xf32>
    %104 = vector.shape_cast %103 : vector<1x16xf32> to vector<1x16x1xf32>
    %105 = tpu.reciprocal %104 {approx = true} : vector<1x16x1xf32> -> vector<1x16x1xf32>
    %106 = vector.broadcast %105 : vector<1x16x1xf32> to vector<1x16x8xf32>
    %107 = arith.mulf %102, %106 : vector<1x16x8xf32>
    %108 = tpu.concatenate %96, %107 in 2 : vector<1x16x8xf32>, vector<1x16x8xf32> -> vector<1x16x16xf32>
    %109 = vector.extract_strided_slice %82 {offsets = [0, 0, 0], sizes = [1, 8, 16], strides = [1, 1, 1]} : vector<1x16x16xf32> to vector<1x8x16xf32>
    %110 = vector.extract_strided_slice %82 {offsets = [0, 8, 0], sizes = [1, 8, 16], strides = [1, 1, 1]} : vector<1x16x16xf32> to vector<1x8x16xf32>
    %111 = tpu.concatenate %109, %110 in 2 : vector<1x8x16xf32>, vector<1x8x16xf32> -> vector<1x8x32xf32>
    %cst_29 = arith.constant 0.000000e+00 : f32
    %112 = vector.broadcast %cst_29 : f32 to vector<1x8x16xf32>
    %113 = arith.subf %112, %110 : vector<1x8x16xf32>
    %114 = tpu.concatenate %113, %109 in 2 : vector<1x8x16xf32>, vector<1x8x16xf32> -> vector<1x8x32xf32>
    %115 = tpu.concatenate %111, %114 in 1 : vector<1x8x32xf32>, vector<1x8x32xf32> -> vector<1x16x32xf32>
    %116 = arith.truncf %108 : vector<1x16x16xf32> to vector<1x16x16xbf16>
    %117 = arith.truncf %115 : vector<1x16x32xf32> to vector<1x16x32xbf16>
    "tpu.trace_start"() <{level = 10 : i32, message = "bqk,bkd->bqd"}> : () -> ()
    %cst_30 = arith.constant dense<0.000000e+00> : vector<1x16x32xf32>
    %118 = tpu.matmul %116, %117, %cst_30 {dimension_numbers = #tpu.dot_dimension_numbers<[2], [1], [1], [2], [0, 0, 0, 1, 1, 2], [0], [0]>} : vector<1x16x16xbf16>, vector<1x16x32xbf16>, vector<1x16x32xf32> -> vector<1x16x32xf32>
    "tpu.trace_stop"() : () -> ()
    %119 = vector.extract_strided_slice %118 {offsets = [0, 0, 0], sizes = [1, 16, 16], strides = [1, 1, 1]} : vector<1x16x32xf32> to vector<1x16x16xf32>
    %120 = vector.extract_strided_slice %118 {offsets = [0, 0, 16], sizes = [1, 16, 16], strides = [1, 1, 1]} : vector<1x16x32xf32> to vector<1x16x16xf32>
    %121 = vector.extract_strided_slice %119 {offsets = [0, 0, 0], sizes = [1, 8, 16], strides = [1, 1, 1]} : vector<1x16x16xf32> to vector<1x8x16xf32>
    %122 = vector.extract_strided_slice %120 {offsets = [0, 8, 0], sizes = [1, 8, 16], strides = [1, 1, 1]} : vector<1x16x16xf32> to vector<1x8x16xf32>
    %123 = arith.subf %121, %122 : vector<1x8x16xf32>
    %c0_31 = arith.constant 0 : index
    %c0_32 = arith.constant 0 : index
    %c16 = arith.constant 16 : index
    %124 = vector.load %arg13[%c0_31, %c0_32, %c16] : memref<1x16x32xf32, #tpu.memory_space<vmem>>, vector<1x8x16xf32>
    tpu.vector_store %arg13[%c0_31, %c0_32, %c16], %123 {strides = array<i32>} : memref<1x16x32xf32, #tpu.memory_space<vmem>>, vector<1x8x16xf32>,
    %125 = vector.extract_strided_slice %120 {offsets = [0, 0, 0], sizes = [1, 8, 16], strides = [1, 1, 1]} : vector<1x16x16xf32> to vector<1x8x16xf32>
    %126 = vector.extract_strided_slice %119 {offsets = [0, 8, 0], sizes = [1, 8, 16], strides = [1, 1, 1]} : vector<1x16x16xf32> to vector<1x8x16xf32>
    %127 = arith.addf %125, %126 : vector<1x8x16xf32>
    %c0_33 = arith.constant 0 : index
    %c8_34 = arith.constant 8 : index
    %c16_35 = arith.constant 16 : index
    %128 = vector.load %arg13[%c0_33, %c8_34, %c16_35] : memref<1x16x32xf32, #tpu.memory_space<vmem>>, vector<1x8x16xf32>
    tpu.vector_store %arg13[%c0_33, %c8_34, %c16_35], %127 {strides = array<i32>} : memref<1x16x32xf32, #tpu.memory_space<vmem>>, vector<1x8x16xf32>,
    %c0_36 = arith.constant 0 : index
    %c0_37 = arith.constant 0 : index
    %c0_38 = arith.constant 0 : index
    %129 = vector.load %arg13[%c0_36, %c0_37, %c0_38] : memref<1x16x32xf32, #tpu.memory_space<vmem>>, vector<1x16x32xf32>
    %130 = vector.shape_cast %129 : vector<1x16x32xf32> to vector<16x32xf32>
    %c0_39 = arith.constant 0 : index
    %c0_40 = arith.constant 0 : index
    %c0_41 = arith.constant 0 : index
    %131 = vector.load %arg5[%c0_39, %c0_40, %c0_41] : memref<1x32x32xbf16, #tpu.memory_space<vmem>>, vector<1x32x32xbf16>
    %132 = vector.shape_cast %131 : vector<1x32x32xbf16> to vector<32x32xbf16>
    %133 = arith.truncf %130 : vector<16x32xf32> to vector<16x32xbf16>
    %cst_42 = arith.constant dense<0.000000e+00> : vector<16x32xf32>
    %134 = tpu.matmul %133, %132, %cst_42 {dimension_numbers = #tpu.dot_dimension_numbers<[1], [0], [0], [1], [0, 0, 1, 1], [], []>} : vector<16x32xbf16>, vector<32x32xbf16>, vector<16x32xf32> -> vector<16x32xf32>
    %135 = vector.shape_cast %134 : vector<16x32xf32> to vector<1x16x32xf32>
    %c0_43 = arith.constant 0 : index
    %c0_44 = arith.constant 0 : index
    %c0_45 = arith.constant 0 : index
    %136 = vector.load %arg6[%c0_43, %c0_44, %c0_45] : memref<1x1x32xf32, #tpu.memory_space<vmem>>, vector<1x1x32xf32>
    %137 = vector.shape_cast %136 : vector<1x1x32xf32> to vector<1x32xf32>
    %138 = vector.extract_strided_slice %3 {offsets = [0, 0, 0], sizes = [1, 8, 32], strides = [1, 1, 1]} : vector<1x16x32xf32> to vector<1x8x32xf32>
    %139 = vector.extract_strided_slice %135 {offsets = [0, 0, 0], sizes = [1, 8, 32], strides = [1, 1, 1]} : vector<1x16x32xf32> to vector<1x8x32xf32>
    %140 = arith.addf %138, %139 : vector<1x8x32xf32>
    %cst_46 = arith.constant 2.000000e+00 : f32
    %141 = vector.broadcast %cst_46 : f32 to vector<1x32xf32>
    %142 = arith.mulf %141, %137 : vector<1x32xf32>
    %143 = vector.shape_cast %142 : vector<1x32xf32> to vector<1x1x32xf32>
    %144 = vector.broadcast %143 : vector<1x1x32xf32> to vector<1x8x32xf32>
    %145 = arith.subf %140, %144 : vector<1x8x32xf32>
    %c0_47 = arith.constant 0 : index
    %c0_48 = arith.constant 0 : index
    %c0_49 = arith.constant 0 : index
    %146 = vector.load %arg12[%c0_47, %c0_48, %c0_49] : memref<1x16x32xf32, #tpu.memory_space<vmem>>, vector<1x8x32xf32>
    tpu.vector_store %arg12[%c0_47, %c0_48, %c0_49], %145 {strides = array<i32>} : memref<1x16x32xf32, #tpu.memory_space<vmem>>, vector<1x8x32xf32>,
    %147 = vector.extract_strided_slice %3 {offsets = [0, 8, 0], sizes = [1, 8, 32], strides = [1, 1, 1]} : vector<1x16x32xf32> to vector<1x8x32xf32>
    %148 = vector.extract_strided_slice %135 {offsets = [0, 8, 0], sizes = [1, 8, 32], strides = [1, 1, 1]} : vector<1x16x32xf32> to vector<1x8x32xf32>
    %149 = arith.addf %147, %148 : vector<1x8x32xf32>
    %cst_50 = arith.constant 2.000000e+00 : f32
    %150 = vector.broadcast %cst_50 : f32 to vector<1x32xf32>
    %151 = arith.mulf %150, %137 : vector<1x32xf32>
    %152 = vector.shape_cast %151 : vector<1x32xf32> to vector<1x1x32xf32>
    %153 = vector.broadcast %152 : vector<1x1x32xf32> to vector<1x8x32xf32>
    %154 = arith.addf %149, %153 : vector<1x8x32xf32>
    %c0_51 = arith.constant 0 : index
    %c8_52 = arith.constant 8 : index
    %c0_53 = arith.constant 0 : index
    %155 = vector.load %arg12[%c0_51, %c8_52, %c0_53] : memref<1x16x32xf32, #tpu.memory_space<vmem>>, vector<1x8x32xf32>
    tpu.vector_store %arg12[%c0_51, %c8_52, %c0_53], %154 {strides = array<i32>} : memref<1x16x32xf32, #tpu.memory_space<vmem>>, vector<1x8x32xf32>,
    %c0_54 = arith.constant 0 : index
    %c0_55 = arith.constant 0 : index
    %c0_56 = arith.constant 0 : index
    %156 = vector.load %arg12[%c0_54, %c0_55, %c0_56] : memref<1x16x32xf32, #tpu.memory_space<vmem>>, vector<1x16x32xf32>
    %cst_57 = arith.constant dense<0.000000e+00> : vector<1x16xf32>
    %157 = vector.multi_reduction <add>, %156, %cst_57 [2] : vector<1x16x32xf32> to vector<1x16xf32>
    %158 = vector.shape_cast %157 : vector<1x16xf32> to vector<1x16x1xf32>
    %cst_58 = arith.constant 3.200000e+01 : f32
    %159 = vector.broadcast %cst_58 : f32 to vector<1x16x1xf32>
    %160 = arith.divf %158, %159 : vector<1x16x1xf32>
    %161 = vector.broadcast %160 : vector<1x16x1xf32> to vector<1x16x32xf32>
    %162 = arith.subf %156, %161 : vector<1x16x32xf32>
    %163 = arith.mulf %162, %162 : vector<1x16x32xf32>
    %cst_59 = arith.constant dense<0.000000e+00> : vector<1x16xf32>
    %164 = vector.multi_reduction <add>, %163, %cst_59 [2] : vector<1x16x32xf32> to vector<1x16xf32>
    %165 = vector.shape_cast %164 : vector<1x16xf32> to vector<1x16x1xf32>
    %cst_60 = arith.constant 3.200000e+01 : f32
    %166 = vector.broadcast %cst_60 : f32 to vector<1x16x1xf32>
    %167 = arith.divf %165, %166 : vector<1x16x1xf32>
    %cst_61 = arith.constant 9.99999974E-6 : f32
    %168 = vector.broadcast %cst_61 : f32 to vector<1x16x1xf32>
    %169 = arith.addf %167, %168 : vector<1x16x1xf32>
    %170 = math.rsqrt %169 : vector<1x16x1xf32>
    %171 = vector.broadcast %170 : vector<1x16x1xf32> to vector<1x16x32xf32>
    %172 = arith.mulf %162, %171 : vector<1x16x32xf32>
    %173 = vector.shape_cast %172 : vector<1x16x32xf32> to vector<16x32xf32>
    %c0_62 = arith.constant 0 : index
    %c0_63 = arith.constant 0 : index
    %c0_64 = arith.constant 0 : index
    %174 = vector.load %arg7[%c0_62, %c0_63, %c0_64] : memref<1x32x128xbf16, #tpu.memory_space<vmem>>, vector<1x32x128xbf16>
    %175 = vector.shape_cast %174 : vector<1x32x128xbf16> to vector<32x128xbf16>
    %176 = arith.truncf %173 : vector<16x32xf32> to vector<16x32xbf16>
    %cst_65 = arith.constant dense<0.000000e+00> : vector<16x128xf32>
    %177 = tpu.matmul %176, %175, %cst_65 {dimension_numbers = #tpu.dot_dimension_numbers<[1], [0], [0], [1], [0, 0, 1, 1], [], []>} : vector<16x32xbf16>, vector<32x128xbf16>, vector<16x128xf32> -> vector<16x128xf32>
    %178 = vector.shape_cast %177 : vector<16x128xf32> to vector<1x16x128xf32>
    %c0_66 = arith.constant 0 : index
    %c0_67 = arith.constant 0 : index
    %c0_68 = arith.constant 0 : index
    %179 = vector.load %arg8[%c0_66, %c0_67, %c0_68] : memref<1x1x128xf32, #tpu.memory_space<vmem>>, vector<1x1x128xf32>
    %180 = vector.shape_cast %179 : vector<1x1x128xf32> to vector<1x128xf32>
    %181 = vector.shape_cast %180 : vector<1x128xf32> to vector<1x1x128xf32>
    %182 = vector.broadcast %181 : vector<1x1x128xf32> to vector<1x16x128xf32>
    %183 = arith.addf %178, %182 : vector<1x16x128xf32>
    %184 = vector.extract_strided_slice %183 {offsets = [0, 0, 0], sizes = [1, 16, 64], strides = [1, 1, 1]} : vector<1x16x128xf32> to vector<1x16x64xf32>
    %185 = vector.extract_strided_slice %183 {offsets = [0, 0, 64], sizes = [1, 16, 64], strides = [1, 1, 1]} : vector<1x16x128xf32> to vector<1x16x64xf32>
    %186 = vector.extract_strided_slice %184 {offsets = [0, 0, 0], sizes = [1, 8, 64], strides = [1, 1, 1]} : vector<1x16x64xf32> to vector<1x8x64xf32>
    %187 = vector.extract_strided_slice %185 {offsets = [0, 8, 0], sizes = [1, 8, 64], strides = [1, 1, 1]} : vector<1x16x64xf32> to vector<1x8x64xf32>
    %188 = arith.subf %186, %187 : vector<1x8x64xf32>
    %cst_69 = arith.constant 0.000000e+00 : f32
    %189 = vector.broadcast %cst_69 : f32 to vector<1x8x64xf32>
    %190 = arith.maximumf %188, %189 : vector<1x8x64xf32>
    %191 = vector.extract_strided_slice %184 {offsets = [0, 8, 0], sizes = [1, 8, 64], strides = [1, 1, 1]} : vector<1x16x64xf32> to vector<1x8x64xf32>
    %192 = vector.extract_strided_slice %185 {offsets = [0, 0, 0], sizes = [1, 8, 64], strides = [1, 1, 1]} : vector<1x16x64xf32> to vector<1x8x64xf32>
    %193 = arith.addf %191, %192 : vector<1x8x64xf32>
    %cst_70 = arith.constant 0.000000e+00 : f32
    %194 = vector.broadcast %cst_70 : f32 to vector<1x8x64xf32>
    %195 = arith.maximumf %193, %194 : vector<1x8x64xf32>
    %196 = tpu.concatenate %190, %195 in 1 : vector<1x8x64xf32>, vector<1x8x64xf32> -> vector<1x16x64xf32>
    %197 = vector.shape_cast %196 : vector<1x16x64xf32> to vector<16x64xf32>
    %c0_71 = arith.constant 0 : index
    %c0_72 = arith.constant 0 : index
    %c0_73 = arith.constant 0 : index
    %198 = vector.load %arg9[%c0_71, %c0_72, %c0_73] : memref<1x64x64xbf16, #tpu.memory_space<vmem>>, vector<1x64x64xbf16>
    %199 = vector.shape_cast %198 : vector<1x64x64xbf16> to vector<64x64xbf16>
    %200 = arith.truncf %197 : vector<16x64xf32> to vector<16x64xbf16>
    %cst_74 = arith.constant dense<0.000000e+00> : vector<16x64xf32>
    %201 = tpu.matmul %200, %199, %cst_74 {dimension_numbers = #tpu.dot_dimension_numbers<[1], [0], [0], [1], [0, 0, 1, 1], [], []>} : vector<16x64xbf16>, vector<64x64xbf16>, vector<16x64xf32> -> vector<16x64xf32>
    %202 = vector.shape_cast %201 : vector<16x64xf32> to vector<1x16x64xf32>
    %c0_75 = arith.constant 0 : index
    %c0_76 = arith.constant 0 : index
    %c0_77 = arith.constant 0 : index
    %203 = vector.load %arg10[%c0_75, %c0_76, %c0_77] : memref<1x1x64xf32, #tpu.memory_space<vmem>>, vector<1x1x64xf32>
    %204 = vector.shape_cast %203 : vector<1x1x64xf32> to vector<1x64xf32>
    %205 = vector.shape_cast %204 : vector<1x64xf32> to vector<1x1x64xf32>
    %206 = vector.broadcast %205 : vector<1x1x64xf32> to vector<1x16x64xf32>
    %207 = arith.addf %202, %206 : vector<1x16x64xf32>
    %208 = vector.extract_strided_slice %207 {offsets = [0, 0, 0], sizes = [1, 16, 32], strides = [1, 1, 1]} : vector<1x16x64xf32> to vector<1x16x32xf32>
    %209 = vector.extract_strided_slice %207 {offsets = [0, 0, 32], sizes = [1, 16, 32], strides = [1, 1, 1]} : vector<1x16x64xf32> to vector<1x16x32xf32>
    %210 = vector.extract_strided_slice %156 {offsets = [0, 0, 0], sizes = [1, 8, 32], strides = [1, 1, 1]} : vector<1x16x32xf32> to vector<1x8x32xf32>
    %211 = vector.extract_strided_slice %208 {offsets = [0, 0, 0], sizes = [1, 8, 32], strides = [1, 1, 1]} : vector<1x16x32xf32> to vector<1x8x32xf32>
    %212 = arith.addf %210, %211 : vector<1x8x32xf32>
    %213 = vector.extract_strided_slice %209 {offsets = [0, 8, 0], sizes = [1, 8, 32], strides = [1, 1, 1]} : vector<1x16x32xf32> to vector<1x8x32xf32>
    %214 = arith.subf %212, %213 : vector<1x8x32xf32>
    %c0_78 = arith.constant 0 : index
    %c0_79 = arith.constant 0 : index
    %c0_80 = arith.constant 0 : index
    %215 = vector.load %arg12[%c0_78, %c0_79, %c0_80] : memref<1x16x32xf32, #tpu.memory_space<vmem>>, vector<1x8x32xf32>
    tpu.vector_store %arg12[%c0_78, %c0_79, %c0_80], %214 {strides = array<i32>} : memref<1x16x32xf32, #tpu.memory_space<vmem>>, vector<1x8x32xf32>,
    %216 = vector.extract_strided_slice %156 {offsets = [0, 8, 0], sizes = [1, 8, 32], strides = [1, 1, 1]} : vector<1x16x32xf32> to vector<1x8x32xf32>
    %217 = vector.extract_strided_slice %208 {offsets = [0, 8, 0], sizes = [1, 8, 32], strides = [1, 1, 1]} : vector<1x16x32xf32> to vector<1x8x32xf32>
    %218 = arith.addf %216, %217 : vector<1x8x32xf32>
    %219 = vector.extract_strided_slice %209 {offsets = [0, 0, 0], sizes = [1, 8, 32], strides = [1, 1, 1]} : vector<1x16x32xf32> to vector<1x8x32xf32>
    %220 = arith.addf %218, %219 : vector<1x8x32xf32>
    %c0_81 = arith.constant 0 : index
    %c8_82 = arith.constant 8 : index
    %c0_83 = arith.constant 0 : index
    %221 = vector.load %arg12[%c0_81, %c8_82, %c0_83] : memref<1x16x32xf32, #tpu.memory_space<vmem>>, vector<1x8x32xf32>
    tpu.vector_store %arg12[%c0_81, %c8_82, %c0_83], %220 {strides = array<i32>} : memref<1x16x32xf32, #tpu.memory_space<vmem>>, vector<1x8x32xf32>,
    %c1_i32 = arith.constant 1 : i32
    %222 = arith.addi %arg1, %c1_i32 : i32
    %c2_i32 = arith.constant 2 : i32
    %c0_i32_84 = arith.constant 0 : i32
    %223 = arith.cmpi eq, %c2_i32, %c0_i32_84 : i32
    %c1_i32_85 = arith.constant 1 : i32
    %224 = arith.select %223, %c1_i32_85, %c2_i32 : i32
    %225 = arith.remsi %222, %224 : i32
    %c0_i32_86 = arith.constant 0 : i32
    %226 = arith.cmpi ne, %225, %c0_i32_86 : i32
    %c0_i32_87 = arith.constant 0 : i32
    %227 = arith.cmpi slt, %225, %c0_i32_87 : i32
    %c0_i32_88 = arith.constant 0 : i32
    %228 = arith.cmpi slt, %224, %c0_i32_88 : i32
    %229 = arith.xori %227, %228 : i1
    %230 = arith.andi %229, %226 : i1
    %231 = arith.addi %225, %224 : i32
    %232 = arith.select %230, %231, %225 : i32
    %c0_i32_89 = arith.constant 0 : i32
    %233 = arith.cmpi eq, %232, %c0_i32_89 : i32
    %234 = arith.extui %233 : i1 to i32
    %c0_i32_90 = arith.constant 0 : i32
    %235 = arith.cmpi ne, %234, %c0_i32_90 : i32
    scf.if %235 {
      %c0_91 = arith.constant 0 : index
      %c0_92 = arith.constant 0 : index
      %c0_93 = arith.constant 0 : index
      %236 = vector.load %arg12[%c0_91, %c0_92, %c0_93] : memref<1x16x32xf32, #tpu.memory_space<vmem>>, vector<1x16x32xf32>
      %cst_94 = arith.constant dense<0.000000e+00> : vector<1x16xf32>
      %237 = vector.multi_reduction <add>, %236, %cst_94 [2] : vector<1x16x32xf32> to vector<1x16xf32>
      %238 = vector.shape_cast %237 : vector<1x16xf32> to vector<1x16x1xf32>
      %cst_95 = arith.constant 3.200000e+01 : f32
      %239 = vector.broadcast %cst_95 : f32 to vector<1x16x1xf32>
      %240 = arith.divf %238, %239 : vector<1x16x1xf32>
      %241 = vector.broadcast %240 : vector<1x16x1xf32> to vector<1x16x32xf32>
      %242 = arith.subf %236, %241 : vector<1x16x32xf32>
      %243 = arith.mulf %242, %242 : vector<1x16x32xf32>
      %cst_96 = arith.constant dense<0.000000e+00> : vector<1x16xf32>
      %244 = vector.multi_reduction <add>, %243, %cst_96 [2] : vector<1x16x32xf32> to vector<1x16xf32>
      %245 = vector.shape_cast %244 : vector<1x16xf32> to vector<1x16x1xf32>
      %cst_97 = arith.constant 3.200000e+01 : f32
      %246 = vector.broadcast %cst_97 : f32 to vector<1x16x1xf32>
      %247 = arith.divf %245, %246 : vector<1x16x1xf32>
      %cst_98 = arith.constant 9.99999974E-6 : f32
      %248 = vector.broadcast %cst_98 : f32 to vector<1x16x1xf32>
      %249 = arith.addf %247, %248 : vector<1x16x1xf32>
      %250 = math.rsqrt %249 : vector<1x16x1xf32>
      %251 = vector.broadcast %250 : vector<1x16x1xf32> to vector<1x16x32xf32>
      %252 = arith.mulf %242, %251 : vector<1x16x32xf32>
      %c0_99 = arith.constant 0 : index
      %c0_100 = arith.constant 0 : index
      %c0_101 = arith.constant 0 : index
      %253 = vector.load %arg12[%c0_99, %c0_100, %c0_101] : memref<1x16x32xf32, #tpu.memory_space<vmem>>, vector<1x16x32xf32>
      tpu.vector_store %arg12[%c0_99, %c0_100, %c0_101], %252 {strides = array<i32>} : memref<1x16x32xf32, #tpu.memory_space<vmem>>, vector<1x16x32xf32>,
      %c3_i32 = arith.constant 3 : i32
      %254 = arith.cmpi eq, %arg1, %c3_i32 : i32
      %255 = arith.extui %254 : i1 to i32
      %c0_i32_102 = arith.constant 0 : i32
      %256 = arith.cmpi ne, %255, %c0_i32_102 : i32
      scf.if %256 {
        %257 = vector.extract_strided_slice %252 {offsets = [0, 0, 0], sizes = [1, 8, 32], strides = [1, 1, 1]} : vector<1x16x32xf32> to vector<1x8x32xf32>
        %258 = vector.extract_strided_slice %252 {offsets = [0, 8, 0], sizes = [1, 8, 32], strides = [1, 1, 1]} : vector<1x16x32xf32> to vector<1x8x32xf32>
        %259 = tpu.concatenate %257, %258 in 2 : vector<1x8x32xf32>, vector<1x8x32xf32> -> vector<1x8x64xf32>
        %c0_103 = arith.constant 0 : index
        %c0_104 = arith.constant 0 : index
        %c0_105 = arith.constant 0 : index
        %260 = vector.load %arg11[%c0_103, %c0_104, %c0_105] : memref<1x8x64xf32, #tpu.memory_space<vmem>>, vector<1x8x64xf32>
        tpu.vector_store %arg11[%c0_103, %c0_104, %c0_105], %259 {strides = array<i32>} : memref<1x8x64xf32, #tpu.memory_space<vmem>>, vector<1x8x64xf32>,
      } else {
      }
    } else {
    }
    return
  }
  func.func @transform_0(%arg0: i32, %arg1: i32) -> (i32, i32, i32) {
    %c0_i32 = arith.constant 0 : i32
    %c0_i32_0 = arith.constant 0 : i32
    %c0_i32_1 = arith.constant 0 : i32
    return %arg0, %c0_i32, %c0_i32_0 : i32, i32, i32
  }
  func.func @transform_1(%arg0: i32, %arg1: i32) -> (i32, i32, i32) {
    %c0_i32 = arith.constant 0 : i32
    %c0_i32_0 = arith.constant 0 : i32
    %c0_i32_1 = arith.constant 0 : i32
    return %arg0, %c0_i32, %c0_i32_0 : i32, i32, i32
  }
  func.func @transform_2(%arg0: i32, %arg1: i32) -> (i32, i32, i32) {
    %c0_i32 = arith.constant 0 : i32
    %c0_i32_0 = arith.constant 0 : i32
    %c0_i32_1 = arith.constant 0 : i32
    return %arg1, %c0_i32, %c0_i32_0 : i32, i32, i32
  }
  func.func @transform_3(%arg0: i32, %arg1: i32) -> (i32, i32, i32) {
    %c0_i32 = arith.constant 0 : i32
    %c0_i32_0 = arith.constant 0 : i32
    %c0_i32_1 = arith.constant 0 : i32
    return %arg1, %c0_i32, %c0_i32_0 : i32, i32, i32
  }
  func.func @transform_4(%arg0: i32, %arg1: i32) -> (i32, i32, i32) {
    %c0_i32 = arith.constant 0 : i32
    %c0_i32_0 = arith.constant 0 : i32
    %c0_i32_1 = arith.constant 0 : i32
    return %arg1, %c0_i32, %c0_i32_0 : i32, i32, i32
  }
  func.func @transform_5(%arg0: i32, %arg1: i32) -> (i32, i32, i32) {
    %c0_i32 = arith.constant 0 : i32
    %c0_i32_0 = arith.constant 0 : i32
    %c0_i32_1 = arith.constant 0 : i32
    return %arg1, %c0_i32, %c0_i32_0 : i32, i32, i32
  }
  func.func @transform_6(%arg0: i32, %arg1: i32) -> (i32, i32, i32) {
    %c0_i32 = arith.constant 0 : i32
    %c0_i32_0 = arith.constant 0 : i32
    %c0_i32_1 = arith.constant 0 : i32
    return %arg1, %c0_i32, %c0_i32_0 : i32, i32, i32
  }
  func.func @transform_7(%arg0: i32, %arg1: i32) -> (i32, i32, i32) {
    %c0_i32 = arith.constant 0 : i32
    %c0_i32_0 = arith.constant 0 : i32
    %c0_i32_1 = arith.constant 0 : i32
    return %arg1, %c0_i32, %c0_i32_0 : i32, i32, i32
  }
  func.func @transform_8(%arg0: i32, %arg1: i32) -> (i32, i32, i32) {
    %c0_i32 = arith.constant 0 : i32
    %c0_i32_0 = arith.constant 0 : i32
    %c0_i32_1 = arith.constant 0 : i32
    return %arg1, %c0_i32, %c0_i32_0 : i32, i32, i32
  }
  func.func @transform_9(%arg0: i32, %arg1: i32) -> (i32, i32, i32) {
    %c0_i32 = arith.constant 0 : i32
    %c0_i32_0 = arith.constant 0 : i32
    %c0_i32_1 = arith.constant 0 : i32
    return %arg0, %c0_i32, %c0_i32_0 : i32, i32, i32
  }
}

</mosaic_0001>

<bundles_post_ra>
// kernel: multi_scale_encoder.3
= control target key start
LH: loop header
LB: loop body
LE: loop exit
PB: predicated region body
PF: predicated region fallthrough
CT: control target
= control target key end

     0   :  { %s2362_s0 = inlined_call_operand.vmem [shape: f32[2,8,64], index: 0, kind: input, shape index: {}]   ;;  %s2363_s1 = inlined_call_operand.vmem [shape: f32[2,8,64], index: 1, kind: input, shape index: {}]   ;;  %s2364_s2 = inlined_call_operand.vmem [shape: bf16[4,64,96], index: 2, kind: input, shape index: {}]   ;;  %s2365_s3 = inlined_call_operand.hbm [shape: bf16[4,32,64], index: 3, kind: input, shape index: {}]   ;;  %s2366_s4 = inlined_call_operand.hbm [shape: f32[4,1,64], index: 4, kind: input, shape index: {}]   ;;  %s2367_s5 = inlined_call_operand.vmem [shape: bf16[4,64,128], index: 5, kind: input, shape index: {}]   ;;  %s2368_s6 = inlined_call_operand.hbm [shape: f32[4,1,128], index: 6, kind: input, shape index: {}]   ;;  %s2369_s7 = inlined_call_operand.vmem [shape: bf16[4,64,128], index: 7, kind: input, shape index: {}]   ;;  %s2370_s8 = inlined_call_operand.hbm [shape: f32[4,1,128], index: 8, kind: input, shape index: {}]   ;;  %s2371_s9 = inlined_call_operand.vmem [shape: f32[2,8,128], index: 9, kind: output, shape index: {}]  }
   0x1   :  { %2376 = sst [smem:[#allocation19_spill]] %s2362_s0 }
   0x2   :  { %2377 = sst [smem:[#allocation20_spill]] %s2364_s2 }
   0x3   :  { %2378 = sst [smem:[#allocation21_spill]] %s2365_s3 }
   0x4   :  { %2379 = sst [smem:[#allocation22_spill]] %s2366_s4 }
   0x5   :  { %2380 = sst [smem:[#allocation23_spill]] %s2367_s5 }
   0x6   :  { %2381 = sst [smem:[#allocation24_spill]] %s2369_s7 }
   0x7   :  { %2382 = sst [smem:[#allocation25_spill]] %s2371_s9 }
   0x8   :  { %14 = vsyncpa [#allocation5], 0 }
   0x9   :  { %16 = vsyncpa [#allocation5 + $0x1], 0 }
   0xa   :  { %17 = vsyncpa [#allocation7], 0 }
   0xb   :  { %19 = vsyncpa [#allocation7 + $0x1], 0 }
   0xc   :  { %20 = vsyncpa [#allocation10], 0 }
   0xd   :  { %22 = vsyncpa [#allocation10 + $0x1], 0  ;;  %s1994_s30 = smov 0   ;;  %s1996_s10 = smov 0  }
   0xe   :  { %s1998_s11 = smov 0   ;;  %s2000_s12 = smov 0  }
   0xf   :  { %s2002_s13 = smov 0   ;;  %s2004_s14 = smov 0  }
  0x10   :  { %s2006_s15 = smov 0   ;;  %s2008_s16 = smov 0  }
  0x11 LB: > { %2383 = sst [smem:[#allocation14_spill]] %s1911_s11  ;;  %s2372_s17 = sadd.s32 4294967295, %s1931_s16   ;;  %s1931_s16 = sphi %s2008_s16, %s28_s16   ;;  %s1927_s15 = sphi %s2006_s15, %s2407_s15   ;;  %s1923_s14 = sphi %s2004_s14, %s2411_s14   ;;  %s1919_s13 = sphi %s2002_s13, %s2405_s13   ;;  %s1915_s12 = sphi %s2000_s12, %s2410_s12   ;;  %s1911_s11 = sphi %s1998_s11, %s2404_s11   ;;  %s1907_s10 = sphi %s1996_s10, %s2409_s10   ;;  %s1903_s30 = sphi %s1994_s30, %s2408_s30  }
  0x12   : > { %2384 = sst [smem:[#allocation15_spill]] %s1927_s15  ;;  %s37_s18 = sadd.s32 1, %s1923_s14 }
  0x13   : > { %p38_p0 = scmp.ge.s32.totalorder %s37_s18, 4  ;;  %s40_s19 = sadd.s32 1, %s1927_s15 }
  0x14   : > { %s125_s20 = sadd.s32 1, %s1911_s11  ;;  %p132_p1 = scmp.ne.s32.totalorder %s1911_s11, %s1907_s10 }
  0x15   : > { %s2413_s18 = smov (%p38_p0, %s37_s18), 0  ;;  %s2415_s19 = smov (!%p38_p0, %s40_s19), %s1927_s15 }
  0x16   : > { %2385 = sst [smem:[#allocation16_spill]] %s2413_s18  ;;  %s122_s21 = ssub.s32 %s1923_s14, %s2413_s18 }
  0x17   : > { %p133_p2 = scmp.eq.s32.totalorder %s1931_s16, 0  ;;  %p42_p3 = scmp.ge.s32.totalorder %s2415_s19, 2 }
  0x18   : > { %p123_p4 = scmp.eq.s32.totalorder %s122_s21, 0  ;;  %p138_p6 = scmp.ne.s32.totalorder %s1907_s10, %s1903_s30 }
  0x19   : > { %p134_p5 = por %p133_p2, %p132_p1  ;;  %s2417_s19 = smov (%p42_p3, %s2415_s19), 0 }
  0x1a   : > { %2386 = sst [smem:[#allocation17_spill]] %s2417_s19  ;;  %p139_p7 = scmp.eq.s32.totalorder %s2372_s17, 0 }
  0x1b   : > { %s2048_s22 = scalar_select %p123_p4, %s1911_s11, %s125_s20  }
  0x1c   : > { %p1598_p8 = scmp.lt.s32.totalorder %s1931_s16, 8  ;;  %s2054_s23 = sand.u32 1, %s1911_s11  }
  0x1d   : > { %2387 = sst [smem:[#allocation18_spill]] %s2048_s22  ;;  %p2056_p9 = por %p139_p7, %p138_p6 }
  0x1e   : > { %s362_s25 = sand.u32 1, %s1931_s16   ;;  %p2061_p10 = pnand %p1598_p8, %p134_p5 }
  0x1f   : > { %s2390_s4 = sld [smem:[#allocation22_spill]]  ;;  %s365_s20 = scalar_lea.vmem [#allocation6], %s2054_s23 }
  0x20   : > { %s372_s21 = sshll.u32 %s365_s20, 4  ;;  %p1476_p11 = scmp.ge.s32.totalorder %s1931_s16, 1  ;;  %s373_s21 = int_to_ptr.vmem [resolvable:$true] %s372_s21 }
  0x21   : > { %s363_s17 = scalar_lea.sflag [#allocation7], %s362_s25  ;;  %p427_p12 = scmp.lt.s32.totalorder %s1931_s16, 9 }
  0x22   : > { %s1473_s27 = sshll.u32 %s2054_s23, 4  ;;  %s1559_s28 = sshll.u32 %s1923_s14, 4 }
  0x23   : > { %p2074_p13 = pnand %p1476_p11, %p427_p12  ;;  %s2392_s3 = sld [smem:[#allocation21_spill]] }
  0x24   : > { %s344_s20 = scalar_lea.vmem [#allocation4], %s1473_s27  ;;  %s1934_s22 = smov 4  }
  0x25   : > { %s368_s29 = scalar_lea.hbm %s2390_s4, %s1923_s14  ;;  %s352_s15 = sshll.u32 %s344_s20, 4  ;;  %s353_s15 = int_to_ptr.vmem [resolvable:$true] %s352_s15 }
  0x26   : > { %s370_s30 = sshll.u32 %s368_s29, 4  ;;  %s393_s4 = scalar_lea.hbm %s2368_s6, %s1923_s14  ;;  %s371_s30 = int_to_ptr.hbm [resolvable:$true] %s370_s30 }
  0x27   : > { %1591 = dma.hbm_to_vmem [thread:$0]  (!%p2061_p10), %s371_s30, 16, %s373_s21, %s363_s17  }
  0x28   : > { %s341_s30 = scalar_lea.sflag [#allocation5], %s2054_s23  ;;  %s1933_s21 = smov 64  }
  0x29   : > { %s349_s18 = scalar_lea.hbm %s2392_s3, %s1559_s28  ;;  %s390_s28 = scalar_lea.vmem [#allocation8], %s2054_s23 }
  0x2a   : > { %s350_s25 = sshll.u32 %s349_s18, 4  ;;  %s397_s29 = sshll.u32 %s390_s28, 4  ;;  %s351_s25 = int_to_ptr.hbm [resolvable:$true] %s350_s25  ;;  %s398_s29 = int_to_ptr.vmem [resolvable:$true] %s397_s29 }
  0x2b   : > { %1588 = dma.hbm_to_vmem [thread:$0]  (!%p2061_p10), %s351_s25, 256, %s353_s15, %s341_s30, %s1933_s21, %s1933_s21, %s1934_s22  }
  0x2c   : > { %s395_s27 = sshll.u32 %s393_s4, 4  ;;  %s418_s3 = scalar_lea.hbm %s2370_s8, %s1923_s14  ;;  %s396_s27 = int_to_ptr.hbm [resolvable:$true] %s395_s27 }
  0x2d   : > { %1594 = dma.hbm_to_vmem [thread:$0]  (!%p2061_p10), %s396_s27, 16, %s398_s29, %s363_s17  }
  0x2e   : > { %s420_s5 = sshll.u32 %s418_s3, 4  ;;  %s415_s2 = scalar_lea.vmem [#allocation9], %s2054_s23  ;;  %s421_s5 = int_to_ptr.hbm [resolvable:$true] %s420_s5 }
  0x2f   : > { %s422_s9 = sshll.u32 %s415_s2, 4  ;;  %s413_s15 = scalar_lea.sflag [#allocation10], %s2054_s23  ;;  %s423_s9 = int_to_ptr.vmem [resolvable:$true] %s422_s9 }
  0x30   : > { %1597 = dma.hbm_to_vmem [thread:$0]  (!%p2061_p10), %s421_s5, 16, %s423_s9, %s413_s15  }
  0x31   : > { %431 = sbr.rel (%p2074_p13) target bundleno = 2844 (0xb1c), region = 56  ;;  %s2104_s7 = sand.u32 (!%p2074_p13), 1, %s1907_s10  }
  0x32   : > { %s1477_s11 = sshll.u32 (!%p2074_p13), %s2104_s7, 4  ;;  %s434_s17 = scalar_lea.sflag (!%p2074_p13), [#allocation5], %s2104_s7 }
  0x33   : > { %s2108_s22 = scalar_lea.vmem (!%p2074_p13), [#allocation4], %s1477_s11 }
  0x36   : > { %1890 = dma.done.wait (%p2056_p9), %s434_s17, 256  }
  0x37   : > { %1892 = vsyncadd (%p2056_p9), %s434_s17, 4294967040  ;;  %s2393_s2 = sadd.s32 4294967295, %s1931_s16  }
  0x38   : > { %s443_s3 = sand.u32 1, %s2393_s2  }
  0x39   : > { %s444_s5 = scalar_lea.sflag [#allocation7], %s443_s3 }
  0x3a   : > { %1894 = dma.done.wait (%p2056_p9), %s444_s5, 32  }
  0x3b   : > { %1896 = vsyncadd (%p2056_p9), %s444_s5, 4294967264  ;;  %s462_s23 = scalar_lea.sflag [#allocation10], %s2104_s7 }
  0x3c   : > { %1898 = dma.done.wait (%p2056_p9), %s462_s23, 16  }
  0x3d   : > { %1900 = vsyncadd (%p2056_p9), %s462_s23, 4294967280  ;;  %p534_p0 = scmp.lt.s32.totalorder %s1919_s13, 1  ;;  %p542_p1 = scmp.lt.s32.totalorder %s1915_s12, 3 }
  0x3e   : > { %s2394_s0 = sld [smem:[#allocation19_spill]]  ;;  %p1487_p2 = scmp.ne.s32.totalorder %s1915_s12, 0 }
  0x3f   : > { %s2419_s13 = smov (!%p534_p0, %s1919_s13), 1  ;;  %s2395_s11 = sld [smem:[#allocation25_spill]] }
  0x40   : > { %s543_s25 = scalar_select %p542_p1, %s1915_s12, 3 }
  0x41   : > { %s2132_s30 = sshll.u32 %s2419_s13, 3  ;;  %s2396_s13 = sld [smem:[#allocation20_spill]] }
  0x42   : > { %s541_s27 = scalar_lea.vmem %s2363_s1, %s2132_s30  ;;  %s1560_s18 = sshll.u32 %s543_s25, 5 }
  0x43   : > { %s2397_s21 = sld [smem:[#allocation23_spill]] }
  0x44   : > { %s537_s28 = scalar_lea.vmem %s2394_s0, %s2132_s30  ;;  %s2398_s0 = sld [smem:[#allocation24_spill]] }
  0x45   : > { %s560_s17 = scalar_lea.vmem %s2395_s11, %s2132_s30 }
  0x46   : > { %565 = sbr.rel (%p1487_p2) target bundleno = 78 (0x4e), region = 76 }
  0x47   : > { %s2149_s5 = scalar_lea.vmem %s2396_s13, %s1560_s18 }
  0x49   : > { %s2154_s4 = scalar_lea.vmem %s2397_s21, %s1560_s18 }
  0x4a   : > { %s2159_s29 = scalar_lea.vmem %s2398_s0, %s1560_s18 }
  0x4b   : > { %v566_v0 = vld [vmem:[%s537_s28] sm:$0xff]  ;;  %vm567_vm0 = vcmask 523264  }
  0x4c   : > { %v569_v1 = vld [vmem:[%s541_s27] sm:$0xff]  ;;  %568 = vst.msk [vmem:[#allocation2] sm:$0xff] %vm567_vm0, %v566_v0 }
  0x4d   : > { %570 = vst.msk [vmem:[#allocation2 + $0x8] sm:$0xff] %vm567_vm0, %v569_v1 }
  0x4e PF: > { %vm573_vm1 = vcmask 523264   ;;  %v1935_v6 = vmov 64.0   ;;  %v1566_v23 = vld [vmem:[%s2149_s5 + $0x18] sm:$0xff]  ;;  %v1565_v24 = vld [vmem:[%s2149_s5 + $0x10] sm:$0xff]  ;;  %v1564_v25 = vld [vmem:[%s2149_s5 + $0x8] sm:$0xff]  ;;  %s1936_s0 = smov 96  }
  0x4f   : > { %1691 = vrcp.f32 %v1935_v6  ;;  %665 = vmatpush.bf16.msra.mxu0 %v1566_v23  ;;  %v1563_v26 = vld [vmem:[%s2149_s5] sm:$0xff]  ;;  %s1937_s9 = smov 112   ;;  %s1938_s19 = smov 80   ;;  %vm693_vm9 = vcmask 130048   ;;  %vm737_vm10 = vcmask 130112   ;;  %vm714_vm11 = vcmask 64512  }
  0x50   : > { %s1939_s26 = smov 120   ;;  %s1940_s25 = smov 64   ;;  %vm965_vm12 = vcmask 261248   ;;  %vm991_vm13 = vcmask 261120  }
  0x51   : > { %s1941_s28 = smov 48   ;;  %s1942_s24 = smov 16  }
  0x52   : > { %s2399_s27 = scalar_lea.vmem [#allocation6], %s2104_s7  ;;  %s1204_s18 = sadd.s32 1, %s1915_s12 }
  0x53   : > { %v2162_v2 = vld [vmem:[#allocation2] sm:$0xff]  ;;  %666 = vmatpush.bf16.msra.mxu0 %v1565_v24  ;;  %s1206_s20 = ssub.s32 0, %s1204_s18  ;;  %p1205_p3 = scmp.lt.s32.totalorder %s1204_s18, 0 }
  0x54   : > { %v574_v3 = vsel %vm573_vm1, %v2162_v2, 0.0  ;;  %v2166_v4 = vld [vmem:[#allocation2 + $0x8] sm:$0xff]  ;;  %s1552_s15 = smin.u32 %s1206_s20, %s1204_s18  ;;  %s2401_s13 = scalar_lea.vmem [#allocation9], %s2104_s7 }
  0x55   : > { %575 = vadd.xlane.f32.xlu0 %v574_v3  ;;  %v577_v5 = vsel %vm573_vm1, %v2166_v4, 0.0  ;;  %v1692_v7 = vpop.eup %1691  ;;  %s1208_s11 = sand.u32 1, %s1552_s15  }
  0x56   : > { %v581_v8 = vmul.f32 64.0, %v1692_v7  ;;  %vm585_vm2 = vweird.f32 %v1692_v7  ;;  %s1209_s2 = ssub.s32 0, %s1208_s11 }
  0x57   : > { %667 = vmatpush.bf16.msra.mxu0 %v1564_v25  ;;  %s2421_s2 = smov (!%p1205_p3, %s1209_s2), %s1208_s11 }
  0x58   : > { %v582_v9 = vsub.f32 1.0, %v581_v8  ;;  %p1554_p4 = scmp.lt.s32.totalorder %s2421_s2, 0  ;;  %s1215_s3 = sadd.s32 2, %s2421_s2 }
  0x5a   : > { %v583_v10 = vmul.f32 %v1692_v7, %v582_v9  ;;  %s2423_s3 = smov (!%p1554_p4, %s1215_s3), %s2421_s2 }
  0x5b   : > { %668 = vmatpush.bf16.msra.mxu0 %v1563_v26  ;;  %p1555_p5 = scmp.ne.s32.totalorder %s2423_s3, 0 }
  0x5c   : > { %v584_v11 = vadd.f32 %v1692_v7, %v583_v10  ;;  %p1556_p6 = scmp.ne.s32.totalorder (!%p1555_p5), %s1915_s12, 3 }
  0x5d   : > { %578 = vadd.xlane.f32.xlu0 %v577_v5 }
  0x5e   : > { %v2170_v12 = vsel %vm585_vm2, %v1692_v7, %v584_v11 }
  0xc8   : > { %v576_v13 = vpop.xlane.xlu0 %575 }
  0xc9   : > { %v587_v14 = vmul.f32 %v2170_v12, %v576_v13 }
  0xcb   : > { %v589_v15 = vsub.f32 %v2162_v2, %v587_v14 }
  0xcd   : > { %v591_v16 = vmul.f32 %v589_v15, %v589_v15 }
  0xcf   : > { %v593_v17 = vsel %vm573_vm1, %v591_v16, 0.0 }
  0xd0   : > { %594 = vadd.xlane.f32.xlu1 %v593_v17  ;;  %v579_v18 = vpop.xlane.xlu0 %578 }
  0xd1   : > { %v588_v19 = vmul.f32 %v2170_v12, %v579_v18 }
  0xd3   : > { %v590_v20 = vsub.f32 %v2166_v4, %v588_v19 }
  0xd5   : > { %v592_v21 = vmul.f32 %v590_v20, %v590_v20 }
  0xd7   : > { %v596_v22 = vsel %vm573_vm1, %v592_v21, 0.0 }
  0xd8   : > { %597 = vadd.xlane.f32.xlu1 %v596_v22 }
 0x143   : > { %v595_v27 = vpop.xlane.xlu1 %594 }
 0x144   : > { %v599_v28 = vmul.f32 %v595_v27, %v2170_v12 }
 0x146   : > { %v601_v29 = vadd.f32 1e-05, %v599_v28 }
 0x148   : > { %1693 = vrsqrt.f32 %v601_v29  ;;  %vm609_vm4 = vweird.f32 %v601_v29 }
 0x14b   : > { %v598_v30 = vpop.xlane.xlu1 %597 }
 0x14c   : > { %v600_v31 = vmul.f32 %v598_v30, %v2170_v12 }
 0x14e   : > { %v1694_v32 = vpop.eup %1693  ;;  %v602_v33 = vadd.f32 1e-05, %v600_v31 }
 0x14f   : > { %v604_v34 = vmul.f32 %v1694_v32, %v601_v29  ;;  %vm610_vm3 = vweird.f32 %v1694_v32 }
 0x150   : > { %1695 = vrsqrt.f32 %v602_v33  ;;  %vm611_vm6 = vmor %vm609_vm4, %vm610_vm3  ;;  %vm619_vm7 = vweird.f32 %v602_v33 }
 0x151   : > { %v605_v35 = vmul.f32 %v1694_v32, %v604_v34 }
 0x153   : > { %v606_v36 = vmul.f32 0.5, %v605_v35 }
 0x155   : > { %v607_v38 = vsub.f32 1.5, %v606_v36 }
 0x156   : > { %v1696_v37 = vpop.eup %1695 }
 0x157   : > { %v614_v39 = vmul.f32 %v1696_v37, %v602_v33  ;;  %v608_v41 = vmul.f32 %v1694_v32, %v607_v38  ;;  %vm620_vm5 = vweird.f32 %v1696_v37 }
 0x158   : > { %vm621_vm8 = vmor %vm619_vm7, %vm620_vm5 }
 0x159   : > { %v615_v40 = vmul.f32 %v1696_v37, %v614_v39  ;;  %v612_v45 = vsel %vm611_vm6, %v1694_v32, %v608_v41 }
 0x15a   : > { %v623_v47 = vmul.f32 %v612_v45, %v589_v15 }
 0x15b   : > { %v616_v42 = vmul.f32 0.5, %v615_v40 }
 0x15d   : > { %v617_v43 = vsub.f32 1.5, %v616_v42 }
 0x15f   : > { %v618_v44 = vmul.f32 %v1696_v37, %v617_v43 }
 0x161   : > { %v622_v46 = vsel %vm621_vm8, %v1696_v37, %v618_v44 }
 0x162   : > { %v624_v48 = vmul.f32 %v622_v46, %v590_v20 }
 0x164   : > { %v633_v49 = vpack.c.bf16 %v624_v48, %v623_v47 }
 0x166   : > { %1504 = vmatmul.msk.bf16.vlgmr.msra.gmra.mxu0 %vm573_vm1, %v633_v49 }
 0x1e3   : > { %v2185_v50 = vpop.f32.mrf.mxu0 }
 0x1e4   : > { %v675_v51 = vmul.f32 0.25, %v2185_v50  ;;  %v679_v52 = vpack.c.bf16 %v2185_v50, %v2185_v50 }
 0x1e6   : > { %v677_v56 = vpack.c.bf16 %v675_v51, %v675_v51  ;;  %v688_v57 = vunpack.c.l.b16 %v679_v52 }
 0x1e8   : > { %v683_v61 = vunpack.c.l.b16 %v677_v56 }
 0x1eb   : > { %v2190_v53 = vpop.f32.mrf.mxu0 }
 0x1ec   : > { %v680_v54 = vpack.c.bf16 %v2190_v53, %v2190_v53  ;;  %v676_v55 = vmul.f32 0.25, %v2190_v53  ;;  %v779_v49 = vsub.f32 0.0, %v2190_v53 }
 0x1ee   : > { %v689_v58 = vunpack.c.l.b16 %v680_v54  ;;  %v678_v59 = vpack.c.bf16 %v676_v55, %v676_v55  ;;  %v1674_v51 = vpack.i.bf16 %v779_v49, %v2185_v50 }
 0x1f0   : > { %v690_v60 = vpack.c.b16 %v689_v58, %v688_v57  ;;  %v684_v62 = vunpack.c.l.b16 %v678_v59 }
 0x1f2   : > { %691 = vrot.lane.b32.xlu2 %v690_v60, %s1936_s0  ;;  %v685_v63 = vpack.c.b16 %v684_v62, %v683_v61 }
 0x1f4   : > { %835 = vrot.lane.b32.xlu0 %v685_v63, %s1937_s9 }
 0x1fa   : > { %837 = vrot.lane.b32.xlu2 %v690_v60, %s1938_s19 }
 0x24c   : > { %v692_v0 = vpop.permute.xlu2 %691 }
 0x24d   : > { %v698_v1 = vsel %vm693_vm9, %v692_v0, 0 }
 0x24e   : > { %707 = vmatpush.bf16.xpose.msra.mxu1 %v698_v1 }
 0x254   : > { %v838_v3 = vpop.permute.xlu2 %837 }
 0x255   : > { %1505 = vmatmul.msk.bf16.vlgmr.msra.gmra.mxu1 %vm693_vm9, %v685_v63  ;;  %v843_v5 = vsel %vm693_vm9, %v838_v3, 0  ;;  %v1679_v3 = vpack.i.bf16 %v2185_v50, %v2190_v53 }
 0x256   : > { %852 = vmatpush.bf16.xpose.msra.mxu3 %v843_v5 }
 0x266   : > { %v836_v6 = vpop.permute.xlu0 %835 }
 0x267   : > { %1507 = vmatmul.msk.bf16.vlgmr.msra.gmra.mxu3 %vm693_vm9, %v836_v6 }
 0x2d2   : > { %v709_v7 = vpop.f32.mrf.mxu1 }
 0x2d3   : > { %v738_v8 = vsel %vm737_vm10, %v709_v7, -inf  ;;  %v715_v9 = vsel %vm714_vm11, %v709_v7, -inf }
 0x2d4   : > { %739 = vmax.xlane.f32.xlu1 %v738_v8  ;;  %716 = vmax.xlane.f32.xlu0 %v715_v9 }
 0x2da   : > { %v711_v10 = vpop.f32.mrf.mxu1 }
 0x2db   : > { %v741_v11 = vsel %vm737_vm10, %v711_v10, -inf  ;;  %v718_v18 = vsel %vm714_vm11, %v711_v10, -inf }
 0x2dc   : > { %742 = vmax.xlane.f32.xlu2 %v741_v11 }
 0x2ea   : > { %v854_v13 = vpop.f32.mrf.mxu3 }
 0x2eb   : > { %v881_v14 = vsel %vm737_vm10, %v854_v13, -inf  ;;  %v859_v16 = vsel %vm714_vm11, %v854_v13, -inf }
 0x2ec   : > { %882 = vmax.xlane.f32.xlu1 %v881_v14 }
 0x2f2   : > { %v2205_v15 = vpop.f32.mrf.mxu3 }
 0x2f3   : > { %v862_v17 = vsel %vm714_vm11, %v2205_v15, -inf  ;;  %v884_v19 = vsel %vm737_vm10, %v2205_v15, -inf }
 0x2f4   : > { %860 = vmax.xlane.f32.xlu1 %v859_v16  ;;  %863 = vmax.xlane.f32.xlu0 %v862_v17 }
 0x2fc   : > { %719 = vmax.xlane.f32.xlu1 %v718_v18 }
 0x304   : > { %885 = vmax.xlane.f32.xlu1 %v884_v19 }
 0x347   : > { %v740_v20 = vpop.xlane.xlu1 %739  ;;  %v717_v41 = vpop.xlane.xlu0 %716 }
 0x348   : > { %v744_v21 = vsub.f32 %v709_v7, %v740_v20  ;;  %v721_v42 = vsub.f32 %v709_v7, %v717_v41 }
 0x34a   : > { %v746_v22 = vmul.f32 1.442695, %v744_v21  ;;  %v723_v43 = vmul.f32 1.442695, %v721_v42 }
 0x34c   : > { %1697 = vpow2.f32 %v746_v22 }
 0x34f   : > { %v743_v26 = vpop.xlane.xlu2 %742 }
 0x350   : > { %v745_v28 = vsub.f32 %v711_v10, %v743_v26 }
 0x352   : > { %v2213_v23 = vpop.eup %1697  ;;  %v748_v30 = vmul.f32 1.442695, %v745_v28 }
 0x353   : > { %752 = vrot.lane.b32.xlu1 %v2213_v23, %s1939_s26 }
 0x35f   : > { %v883_v24 = vpop.xlane.xlu1 %882 }
 0x360   : > { %v887_v25 = vsub.f32 %v854_v13, %v883_v24 }
 0x362   : > { %v889_v27 = vmul.f32 1.442695, %v887_v25 }
 0x364   : > { %1699 = vpow2.f32 %v889_v27 }
 0x365   : > { %1701 = vpow2.f32 %v748_v30 }
 0x367   : > { %v861_v29 = vpop.xlane.xlu1 %860  ;;  %v864_v59 = vpop.xlane.xlu0 %863 }
 0x368   : > { %v865_v47 = vsub.f32 %v854_v13, %v861_v29  ;;  %v866_v60 = vsub.f32 %v2205_v15, %v864_v59 }
 0x36a   : > { %v2216_v31 = vpop.eup %1699  ;;  %v867_v48 = vmul.f32 1.442695, %v865_v47  ;;  %v869_v63 = vmul.f32 1.442695, %v866_v60 }
 0x36b   : > { %895 = vrot.lane.b32.xlu2 %v2216_v31, %s1939_s26  ;;  %v2219_v34 = vpop.eup %1701 }
 0x36f   : > { %v720_v32 = vpop.xlane.xlu1 %719 }
 0x370   : > { %v722_v33 = vsub.f32 %v711_v10, %v720_v32 }
 0x372   : > { %v725_v35 = vmul.f32 1.442695, %v722_v33 }
 0x373   : > { %754 = vrot.lane.b32.xlu2 %v2219_v34, %s1939_s26 }
 0x374   : > { %1703 = vpow2.f32 %v725_v35 }
 0x377   : > { %v886_v38 = vpop.xlane.xlu1 %885 }
 0x378   : > { %v888_v39 = vsub.f32 %v2205_v15, %v886_v38 }
 0x37a   : > { %v2222_v36 = vpop.eup %1703  ;;  %v891_v40 = vmul.f32 1.442695, %v888_v39 }
 0x37b   : > { %v730_v37 = vsel %vm714_vm11, %v2222_v36, 0.0 }
 0x37c   : > { %731 = vadd.xlane.f32.xlu0 %v730_v37  ;;  %1705 = vpow2.f32 %v891_v40 }
 0x37d   : > { %1707 = vpow2.f32 %v723_v43 }
 0x37e   : > { %1709 = vpow2.f32 %v867_v48 }
 0x37f   : > { %1711 = vpow2.f32 %v869_v63 }
 0x382   : > { %v2227_v44 = vpop.eup %1705 }
 0x383   : > { %v1708_v45 = vpop.eup %1707 }
 0x384   : > { %v727_v46 = vsel %vm714_vm11, %v1708_v45, 0.0  ;;  %v2234_v52 = vpop.eup %1709 }
 0x385   : > { %v871_v54 = vsel %vm714_vm11, %v2234_v52, 0.0  ;;  %v2242_v0 = vpop.eup %1711 }
 0x386   : > { %v874_v1 = vsel %vm714_vm11, %v2242_v0, 0.0 }
 0x390   : > { %897 = vrot.lane.b32.xlu0 %v2227_v44, %s1939_s26 }
 0x39c   : > { %728 = vadd.xlane.f32.xlu2 %v727_v46 }
 0x3b4   : > { %1675 = vrot.lane.b32.xlu2 %v1674_v51, %s1940_s25 }
 0x3ba   : > { %872 = vadd.xlane.f32.xlu0 %v871_v54 }
 0x3c5   : > { %v896_v55 = vpop.permute.xlu2 %895  ;;  %v753_v56 = vpop.permute.xlu1 %752 }
 0x3c6   : > { %v901_v57 = vsel %vm714_vm11, %v896_v55, 0.0  ;;  %v758_v58 = vsel %vm714_vm11, %v753_v56, 0.0 }
 0x3c7   : > { %902 = vadd.xlane.f32.xlu0 %v901_v57  ;;  %759 = vadd.xlane.f32.xlu1 %v758_v58 }
 0x3cd   : > { %v755_v61 = vpop.permute.xlu2 %754 }
 0x3ce   : > { %v761_v62 = vsel %vm714_vm11, %v755_v61, 0.0 }
 0x3cf   : > { %762 = vadd.xlane.f32.xlu1 %v761_v62 }
 0x3db   : > { %1685 = vrot.lane.b32.xlu0 %v1674_v51, %s1941_s28 }
 0x3dd   : > { %875 = vadd.xlane.f32.xlu2 %v874_v1 }
 0x3e3   : > { %916 = vrot.lane.b32.xlu0 %v2190_v53, %s1940_s25 }
 0x3e8   : > { %1680 = vrot.lane.b32.xlu1 %v1679_v3, %s1938_s19 }
 0x3ef   : > { %v732_v5 = vpop.xlane.xlu0 %731 }
 0x402   : > { %v898_v6 = vpop.permute.xlu0 %897 }
 0x403   : > { %v904_v7 = vsel %vm714_vm11, %v898_v6, 0.0 }
 0x40f   : > { %v729_v13 = vpop.xlane.xlu2 %728 }
 0x412   : > { %905 = vadd.xlane.f32.xlu1 %v904_v7 }
 0x417   : > { %v1676_v53 = vpop.permute.xlu2 %1675 }
 0x418   : > { %v1677_v24 = vunpack.i.l.bf16 %v1676_v53  ;;  %v1678_v32 = vunpack.i.h.bf16 %v1676_v53 }
 0x42d   : > { %v873_v8 = vpop.xlane.xlu0 %872 }
 0x43a   : > { %v760_v9 = vpop.xlane.xlu1 %759  ;;  %v903_v10 = vpop.xlane.xlu0 %902 }
 0x442   : > { %v763_v11 = vpop.xlane.xlu1 %762 }
 0x443   : > { %1713 = vrcp.f32 %v763_v11 }
 0x444   : > { %1715 = vrcp.f32 %v732_v5 }
 0x445   : > { %1717 = vrcp.f32 %v760_v9 }
 0x446   : > { %1719 = vrcp.f32 %v729_v13 }
 0x447   : > { %1721 = vrcp.f32 %v903_v10 }
 0x448   : > { %1723 = vrcp.f32 %v873_v8 }
 0x449   : > { %v1714_v15 = vpop.eup %1713 }
 0x44a   : > { %v1716_v16 = vpop.eup %1715  ;;  %v767_v18 = vmul.f32 %v1714_v15, %v2219_v34 }
 0x44b   : > { %v1718_v50 = vpop.eup %1717  ;;  %v736_v22 = vmul.f32 %v1716_v16, %v2222_v36 }
 0x44c   : > { %v1720_v21 = vpop.eup %1719  ;;  %v766_v25 = vmul.f32 %v1718_v50, %v2213_v23 }
 0x44d   : > { %v1686_v14 = vpop.permute.xlu0 %1685  ;;  %v735_v27 = vmul.f32 %v1720_v21, %v1708_v45  ;;  %v769_v30 = vsel %vm714_vm11, %v736_v22, %v767_v18  ;;  %v1722_v57 = vpop.eup %1721 }
 0x44e   : > { %v1688_v19 = vunpack.i.h.bf16 %v1686_v14  ;;  %v1687_v20 = vunpack.i.l.bf16 %v1686_v14  ;;  %v789_v23 = vpack.c.bf16 %v769_v30, %v769_v30  ;;  %v1724_v59 = vpop.eup %1723  ;;  %v909_v60 = vmul.f32 %v1722_v57, %v2216_v31 }
 0x44f   : > { %v768_v37 = vsel %vm714_vm11, %v735_v27, %v766_v25  ;;  %v879_v61 = vmul.f32 %v1724_v59, %v2234_v52  ;;  %v1009_v27 = vld [vmem:[%s2399_s27] sm:$0x1] }
 0x450   : > { %v923_v29 = vsel %vm693_vm9, %v1688_v19, %v1677_v24  ;;  %v788_v43 = vpack.c.bf16 %v768_v37, %v768_v37  ;;  %v795_v48 = vunpack.c.l.b16 %v789_v23  ;;  %v876_v56 = vpop.xlane.xlu2 %875  ;;  %v1567_v19 = vld [vmem:[%s2108_s22] sm:$0xff] }
 0x451   : > { %v927_v39 = vpack.c.bf16 %v923_v29, %v923_v29  ;;  %1725 = vrcp.f32 %v876_v56  ;;  %v911_v63 = vsel %vm714_vm11, %v879_v61, %v909_v60 }
 0x452   : > { %v794_v54 = vunpack.c.l.b16 %v788_v43  ;;  %v924_v6 = vpack.c.bf16 %v911_v63, %v911_v63 }
 0x453   : > { %v936_v47 = vunpack.c.l.b16 %v927_v39 }
 0x454   : > { %v796_v55 = vpack.c.b16 %v795_v48, %v794_v54  ;;  %v930_v9 = vunpack.c.l.b16 %v924_v6  ;;  %v1570_v54 = vld [vmem:[%s2154_s4 + $0x8] sm:$0xff] }
 0x455   : > { %v917_v17 = vpop.permute.xlu0 %916 }
 0x456   : > { %v919_v26 = vsel %vm693_vm9, %v1687_v20, %v917_v17  ;;  %v1568_v17 = vld [vmem:[%s2108_s22 + $0x8] sm:$0xff]  ;;  %s2400_s22 = scalar_lea.vmem [#allocation8], %s2104_s7 }
 0x457   : > { %v926_v33 = vpack.c.bf16 %v919_v26, %v919_v26  ;;  %v1726_v62 = vpop.eup %1725  ;;  %1001 = vmatpush.bf16.msrb.mxu1 %v1568_v17 }
 0x458   : > { %v880_v3 = vmul.f32 %v1726_v62, %v2242_v0 }
 0x459   : > { %v935_v42 = vunpack.c.l.b16 %v926_v33 }
 0x45a   : > { %v1681_v28 = vpop.permute.xlu1 %1680 }
 0x45b   : > { %v1683_v35 = vunpack.i.h.bf16 %v1681_v28  ;;  %v1682_v34 = vunpack.i.l.bf16 %v1681_v28  ;;  %v937_v51 = vpack.c.b16 %v936_v47, %v935_v42  ;;  %1002 = vmatpush.bf16.msrb.mxu1 %v1567_v19  ;;  %v1011_v28 = vmul.f32 2.0, %v1009_v27  ;;  %v1575_v19 = vld [vmem:[%s2159_s29 + $0x10] sm:$0xff] }
 0x45d   : > { %v778_v38 = vsel %vm693_vm9, %v1677_v24, %v1682_v34  ;;  %v787_v36 = vsel %vm693_vm9, %v1678_v32, %v1683_v35  ;;  %v1013_v29 = vperm.slane %v1011_v28, 0 }
 0x45e   : > { %v790_v40 = vpack.c.bf16 %v778_v38, %v778_v38  ;;  %v791_v41 = vpack.c.bf16 %v787_v36, %v787_v36 }
 0x460   : > { %v799_v45 = vunpack.c.l.b16 %v790_v40  ;;  %v800_v46 = vunpack.c.l.b16 %v791_v41 }
 0x462   : > { %v801_v49 = vpack.c.b16 %v800_v46, %v799_v45 }
 0x464   : > { %813 = vmatpush.bf16.msra.mxu2 %v801_v49  ;;  %v1572_v49 = vld [vmem:[%s2154_s4 + $0x18] sm:$0xff] }
 0x465   : > { %1106 = vmatpush.bf16.msrb.mxu3 %v1572_v49 }
 0x467   : > { %1506 = vmatmul.msk.bf16.vlgmr.msra.gmra.mxu2 %vm693_vm9, %v796_v55  ;;  %v1569_v55 = vld [vmem:[%s2154_s4] sm:$0xff] }
 0x468   : > { %949 = vmatpush.bf16.msrb.mxu2 %v937_v51  ;;  %v1571_v51 = vld [vmem:[%s2154_s4 + $0x10] sm:$0xff] }
 0x469   : > { %1107 = vmatpush.bf16.msrb.mxu3 %v1571_v51 }
 0x46d   : > { %1108 = vmatpush.bf16.msrb.mxu3 %v1570_v54 }
 0x471   : > { %1109 = vmatpush.bf16.msrb.mxu3 %v1569_v55 }
 0x485   : > { %v906_v58 = vpop.xlane.xlu1 %905 }
 0x486   : > { %1727 = vrcp.f32 %v906_v58 }
 0x48c   : > { %v1728_v1 = vpop.eup %1727 }
 0x48d   : > { %v910_v5 = vmul.f32 %v1728_v1, %v2227_v44 }
 0x48f   : > { %v912_v7 = vsel %vm714_vm11, %v880_v3, %v910_v5 }
 0x490   : > { %v925_v8 = vpack.c.bf16 %v912_v7, %v912_v7 }
 0x492   : > { %v931_v10 = vunpack.c.l.b16 %v925_v8 }
 0x494   : > { %v932_v11 = vpack.c.b16 %v931_v10, %v930_v9 }
 0x496   : > { %1508 = vmatmul.msk.bf16.vlgmr.msrb.gmra.mxu2 %vm693_vm9, %v932_v11 }
 0x4ea   : > { %v815_v31 = vpop.f32.mrf.mxu2 }
 0x4f2   : > { %v817_v13 = vpop.f32.mrf.mxu2 }
 0x4f3   : > { %821 = vrot.lane.b32.xlu1 %v817_v13, %s1937_s9  ;;  %826 = vrot.lane.b32.xlu0 %v817_v13, %s1942_s24 }
 0x519   : > { %v951_v52 = vpop.f32.mrf.mxu2 }
 0x521   : > { %v953_v0 = vpop.f32.mrf.mxu2 }
 0x522   : > { %967 = vrot.lane.b32.xlu0 %v953_v0, %s1942_s24  ;;  %957 = vrot.lane.b32.xlu2 %v953_v0, %s1937_s9 }
 0x565   : > { %v822_v44 = vpop.permute.xlu1 %821  ;;  %v827_v14 = vpop.permute.xlu0 %826 }
 0x566   : > { %v824_v15 = vsub.f32 %v815_v31, %v822_v44  ;;  %v829_v16 = vadd.f32 %v827_v14, %v815_v31 }
 0x568   : > { %825 = vst.msk [vmem:[#allocation3] sm:$0xff] %vm693_vm9, %v824_v15  ;;  %831 = vrot.lane.b32.xlu0 %v829_v16, %s1937_s9  ;;  %v1576_v15 = vld [vmem:[%s2159_s29 + $0x18] sm:$0xff]  ;;  %v1689_v16 = vld [vmem:[%s2400_s22] ss:$0 sm:$0xff] }
 0x569   : > { %1174 = vmatpush.bf16.msrb.mxu0 %v1576_v15 }
 0x56d   : > { %1175 = vmatpush.bf16.msrb.mxu0 %v1575_v19 }
 0x57c   : > { %v958_v50 = vpop.permute.xlu2 %957 }
 0x57d   : > { %v960_v53 = vsub.f32 %v951_v52, %v958_v50 }
 0x57f   : > { %962 = vrot.lane.b32.xlu0 %v960_v53, %s1942_s24 }
 0x594   : > { %v968_v18 = vpop.permute.xlu0 %967 }
 0x595   : > { %v970_v20 = vadd.f32 %v968_v18, %v951_v52 }
 0x5da   : > { %v832_v21 = vpop.permute.xlu0 %831 }
 0x5db   : > { %834 = vst.msk [vmem:[#allocation3 + $0x8] sm:$0xff] %vm693_vm9, %v832_v21  ;;  %v1573_v21 = vld [vmem:[%s2159_s29] sm:$0xff] }
 0x5dc   : > { %971 = vst.msk [vmem:[#allocation3 + $0x8] sm:$0xff] %vm965_vm12, %v970_v20  ;;  %v1574_v20 = vld [vmem:[%s2159_s29 + $0x8] sm:$0xff] }
 0x5dd   : > { %1176 = vmatpush.bf16.msrb.mxu0 %v1574_v20 }
 0x5e1   : > { %1177 = vmatpush.bf16.msrb.mxu0 %v1573_v21 }
 0x5e3   : > { %v973_v25 = vld [vmem:[#allocation3 + $0x8] sm:$0xff] }
 0x5f1   : > { %v963_v22 = vpop.permute.xlu0 %962 }
 0x5f2   : > { %966 = vst.msk [vmem:[#allocation3] sm:$0xff] %vm965_vm12, %v963_v22 }
 0x5f9   : > { %v972_v24 = vld [vmem:[#allocation3] sm:$0xff] }
 0x5fa   : > { %v978_v26 = vpack.c.bf16 %v973_v25, %v972_v24 }
 0x5fc   : > { %1517 = vmatmul.msk.bf16.vlgmr.msrb.gmra.mxu1 %vm991_vm13, %v978_v26 }
 0x679   : > { %v1004_v30 = vpop.f32.mrf.mxu1 }
 0x67a   : > { %v1010_v32 = vadd.f32 %v1004_v30, %v2162_v2  ;;  %v1690_v30 = vld [vmem:[%s2401_s13] ss:$0 sm:$0xff] }
 0x67c   : > { %v1015_v33 = vsub.f32 %v1010_v32, %v1013_v29 }
 0x67e   : > { %1016 = vst.msk [vmem:[#allocation2] sm:$0xff] %vm573_vm1, %v1015_v33 }
 0x681   : > { %v1006_v35 = vpop.f32.mrf.mxu1 }
 0x682   : > { %v1017_v34 = vadd.f32 %v1006_v35, %v2166_v4 }
 0x684   : > { %v1018_v37 = vadd.f32 %v1017_v34, %v1013_v29 }
 0x685   : > { %v2281_v38 = vld [vmem:[#allocation2] sm:$0xff] }
 0x686   : > { %1019 = vst.msk [vmem:[#allocation2 + $0x8] sm:$0xff] %vm573_vm1, %v1018_v37  ;;  %v1022_v36 = vsel %vm573_vm1, %v2281_v38, 0.0 }
 0x687   : > { %1023 = vadd.xlane.f32.xlu2 %v1022_v36 }
 0x68d   : > { %v2286_v39 = vld [vmem:[#allocation2 + $0x8] sm:$0xff] }
 0x68e   : > { %v1025_v2 = vsel %vm573_vm1, %v2286_v39, 0.0 }
 0x68f   : > { %1026 = vadd.xlane.f32.xlu1 %v1025_v2 }
 0x6fa   : > { %v1024_v23 = vpop.xlane.xlu2 %1023 }
 0x6fb   : > { %v1028_v4 = vmul.f32 %v1024_v23, %v2170_v12 }
 0x6fd   : > { %v1030_v40 = vsub.f32 %v2281_v38, %v1028_v4 }
 0x6ff   : > { %v1032_v41 = vmul.f32 %v1030_v40, %v1030_v40 }
 0x701   : > { %v1034_v42 = vsel %vm573_vm1, %v1032_v41, 0.0 }
 0x702   : > { %1035 = vadd.xlane.f32.xlu0 %v1034_v42  ;;  %v1027_v43 = vpop.xlane.xlu1 %1026 }
 0x703   : > { %v1029_v45 = vmul.f32 %v1027_v43, %v2170_v12 }
 0x705   : > { %v1031_v46 = vsub.f32 %v2286_v39, %v1029_v45 }
 0x707   : > { %v1033_v47 = vmul.f32 %v1031_v46, %v1031_v46 }
 0x709   : > { %v1037_v48 = vsel %vm573_vm1, %v1033_v47, 0.0 }
 0x70a   : > { %1038 = vadd.xlane.f32.xlu2 %v1037_v48 }
 0x775   : > { %v1036_v56 = vpop.xlane.xlu0 %1035 }
 0x776   : > { %v1040_v57 = vmul.f32 %v1036_v56, %v2170_v12 }
 0x778   : > { %v1042_v58 = vadd.f32 1e-05, %v1040_v57 }
 0x77a   : > { %1729 = vrsqrt.f32 %v1042_v58  ;;  %vm1050_vm15 = vweird.f32 %v1042_v58 }
 0x77d   : > { %v1039_v59 = vpop.xlane.xlu2 %1038 }
 0x77e   : > { %v1041_v60 = vmul.f32 %v1039_v59, %v2170_v12 }
 0x780   : > { %v1730_v61 = vpop.eup %1729  ;;  %v1043_v62 = vadd.f32 1e-05, %v1041_v60 }
 0x781   : > { %v1045_v63 = vmul.f32 %v1730_v61, %v1042_v58  ;;  %vm1051_vm14 = vweird.f32 %v1730_v61 }
 0x782   : > { %1731 = vrsqrt.f32 %v1043_v62  ;;  %vm1052_vm2 = vmor %vm1050_vm15, %vm1051_vm14  ;;  %vm1060_vm3 = vweird.f32 %v1043_v62 }
 0x783   : > { %v1046_v1 = vmul.f32 %v1730_v61, %v1045_v63 }
 0x785   : > { %v1047_v3 = vmul.f32 0.5, %v1046_v1 }
 0x787   : > { %v1048_v6 = vsub.f32 1.5, %v1047_v3 }
 0x788   : > { %v1732_v5 = vpop.eup %1731 }
 0x789   : > { %v1055_v7 = vmul.f32 %v1732_v5, %v1043_v62  ;;  %v1049_v9 = vmul.f32 %v1730_v61, %v1048_v6  ;;  %vm1061_vm0 = vweird.f32 %v1732_v5 }
 0x78a   : > { %vm1062_vm4 = vmor %vm1060_vm3, %vm1061_vm0 }
 0x78b   : > { %v1056_v8 = vmul.f32 %v1732_v5, %v1055_v7  ;;  %v1053_v31 = vsel %vm1052_vm2, %v1730_v61, %v1049_v9 }
 0x78c   : > { %v1064_v0 = vmul.f32 %v1053_v31, %v1030_v40 }
 0x78d   : > { %v1057_v10 = vmul.f32 0.5, %v1056_v8 }
 0x78f   : > { %v1058_v11 = vsub.f32 1.5, %v1057_v10 }
 0x791   : > { %v1059_v13 = vmul.f32 %v1732_v5, %v1058_v11 }
 0x793   : > { %v1063_v52 = vsel %vm1062_vm4, %v1732_v5, %v1059_v13 }
 0x794   : > { %v1065_v44 = vmul.f32 %v1063_v52, %v1031_v46 }
 0x796   : > { %v1074_v14 = vpack.c.bf16 %v1065_v44, %v1064_v0 }
 0x798   : > { %1534 = vmatmul.msk.bf16.vlgmr.msrb.gmra.mxu3 %vm573_vm1, %v1074_v14 }
 0x81b   : > { %v1111_v50 = vpop.f32.mrf.mxu3 }
 0x81c   : > { %v1120_v53 = vadd.f32 %v1689_v16, %v1111_v50 }
 0x81e   : > { %1129 = vrot.lane.b32.xlu0 %v1120_v53, %s1940_s25 }
 0x823   : > { %v1113_v17 = vpop.f32.mrf.mxu3 }
 0x824   : > { %v1121_v18 = vadd.f32 %v1689_v16, %v1113_v17 }
 0x826   : > { %1123 = vrot.lane.b32.xlu1 %v1121_v18, %s1940_s25 }
 0x890   : > { %v1130_v22 = vpop.permute.xlu0 %1129 }
 0x891   : > { %v1132_v24 = vadd.f32 %v1130_v22, %v1121_v18 }
 0x893   : > { %v1133_v27 = vmax.f32 %v1132_v24, 0.0 }
 0x898   : > { %v1124_v25 = vpop.permute.xlu1 %1123 }
 0x899   : > { %v1126_v26 = vsub.f32 %v1120_v53, %v1124_v25 }
 0x89b   : > { %v1127_v28 = vmax.f32 %v1126_v26, 0.0 }
 0x89d   : > { %v1142_v29 = vpack.c.bf16 %v1133_v27, %v1127_v28 }
 0x89f   : > { %1551 = vmatmul.msk.bf16.vlgmr.msrb.gmra.mxu0 %vm573_vm1, %v1142_v29 }
 0x91c   : > { %v1179_v32 = vpop.f32.mrf.mxu0 }
 0x91d   : > { %v1188_v33 = vadd.f32 %v1690_v30, %v1179_v32 }
 0x91f   : > { %1199 = vrot.lane.b32.xlu0 %v1188_v33, %s1940_s25  ;;  %v1190_v37 = vadd.f32 %v1188_v33, %v2281_v38 }
 0x924   : > { %v1181_v35 = vpop.f32.mrf.mxu0 }
 0x925   : > { %v1189_v34 = vadd.f32 %v1690_v30, %v1181_v35 }
 0x927   : > { %1192 = vrot.lane.b32.xlu2 %v1189_v34, %s1940_s25  ;;  %v1197_v23 = vadd.f32 %v1189_v34, %v2286_v39 }
 0x981   : > { %v1193_v36 = vpop.permute.xlu2 %1192 }
 0x982   : > { %v1195_v2 = vsub.f32 %v1190_v37, %v1193_v36 }
 0x984   : > { %1196 = vst.msk [vmem:[#allocation2] sm:$0xff] %vm573_vm1, %v1195_v2 }
 0x990   : > { %1220 = sbr.rel (%p1555_p5) target bundleno = 2844 (0xb1c), region = 80 }
 0x991   : > { %v1200_v4 = vpop.permute.xlu0 %1199 }
 0x992   : > { %v1202_v40 = vadd.f32 %v1200_v4, %v1197_v23 }
 0x994   : > { %1203 = vst.msk [vmem:[#allocation2 + $0x8] sm:$0xff] %vm573_vm1, %v1202_v40 }
 0x995   : > { %v1221_v41 = vld [vmem:[#allocation2] sm:$0xff]  ;;  %s1943_s7 = smov (!%p1556_p6), 64  }
 0x996   : > { %v1223_v42 = vsel %vm573_vm1, %v1221_v41, 0.0 }
 0x997   : > { %1224 = vadd.xlane.f32.xlu0 %v1223_v42 }
 0x99b   : > { %v1222_v43 = vld [vmem:[#allocation2 + $0x8] sm:$0xff] }
 0x99c   : > { %v1226_v45 = vsel %vm573_vm1, %v1222_v43, 0.0 }
 0x99f   : > { %1227 = vadd.xlane.f32.xlu0 %v1226_v45 }
 0xa0a   : > { %v1225_v38 = vpop.xlane.xlu0 %1224 }
 0xa0b   : > { %v1229_v46 = vmul.f32 %v1225_v38, %v2170_v12 }
 0xa0d   : > { %v1231_v47 = vsub.f32 %v1221_v41, %v1229_v46 }
 0xa0f   : > { %v1233_v48 = vmul.f32 %v1231_v47, %v1231_v47 }
 0xa11   : > { %v1235_v39 = vsel %vm573_vm1, %v1233_v48, 0.0 }
 0xa12   : > { %1236 = vadd.xlane.f32.xlu1 %v1235_v39  ;;  %v1228_v49 = vpop.xlane.xlu0 %1227 }
 0xa13   : > { %v1230_v51 = vmul.f32 %v1228_v49, %v2170_v12 }
 0xa15   : > { %v1232_v54 = vsub.f32 %v1222_v43, %v1230_v51 }
 0xa17   : > { %v1234_v55 = vmul.f32 %v1232_v54, %v1232_v54 }
 0xa19   : > { %v1238_v56 = vsel %vm573_vm1, %v1234_v55, 0.0 }
 0xa1a   : > { %1239 = vadd.xlane.f32.xlu1 %v1238_v56 }
 0xa85   : > { %v1237_v57 = vpop.xlane.xlu1 %1236 }
 0xa86   : > { %v1241_v58 = vmul.f32 %v1237_v57, %v2170_v12 }
 0xa88   : > { %v1243_v59 = vadd.f32 1e-05, %v1241_v58 }
 0xa8a   : > { %1733 = vrsqrt.f32 %v1243_v59  ;;  %vm1251_vm6 = vweird.f32 %v1243_v59 }
 0xa8d   : > { %v1240_v60 = vpop.xlane.xlu1 %1239 }
 0xa8e   : > { %v1242_v61 = vmul.f32 %v1240_v60, %v2170_v12 }
 0xa90   : > { %v1734_v62 = vpop.eup %1733  ;;  %v1244_v63 = vadd.f32 1e-05, %v1242_v61 }
 0xa91   : > { %v1246_v1 = vmul.f32 %v1734_v62, %v1243_v59  ;;  %vm1252_vm5 = vweird.f32 %v1734_v62 }
 0xa92   : > { %1735 = vrsqrt.f32 %v1244_v63  ;;  %vm1253_vm7 = vmor %vm1251_vm6, %vm1252_vm5  ;;  %vm1261_vm9 = vweird.f32 %v1244_v63 }
 0xa93   : > { %v1247_v3 = vmul.f32 %v1734_v62, %v1246_v1 }
 0xa95   : > { %v1248_v5 = vmul.f32 0.5, %v1247_v3 }
 0xa97   : > { %v1249_v6 = vsub.f32 1.5, %v1248_v5 }
 0xa98   : > { %v1736_v7 = vpop.eup %1735 }
 0xa99   : > { %v1250_v8 = vmul.f32 %v1734_v62, %v1249_v6  ;;  %v1256_v9 = vmul.f32 %v1736_v7, %v1244_v63  ;;  %vm1262_vm8 = vweird.f32 %v1736_v7 }
 0xa9a   : > { %vm1263_vm10 = vmor %vm1261_vm9, %vm1262_vm8 }
 0xa9b   : > { %v1254_v10 = vsel %vm1253_vm7, %v1734_v62, %v1250_v8  ;;  %v1257_v11 = vmul.f32 %v1736_v7, %v1256_v9 }
 0xa9c   : > { %v1265_v31 = vmul.f32 %v1254_v10, %v1231_v47 }
 0xa9d   : > { %v1258_v13 = vmul.f32 0.5, %v1257_v11 }
 0xa9e   : > { %1267 = vst.msk [vmem:[#allocation2] sm:$0xff] %vm573_vm1, %v1265_v31 }
 0xa9f   : > { %v1259_v12 = vsub.f32 1.5, %v1258_v13 }
 0xaa1   : > { %v1260_v52 = vmul.f32 %v1736_v7, %v1259_v12 }
 0xaa2   : > { %1272 = sbr.rel (%p1556_p6) target bundleno = 2844 (0xb1c), region = 84 }
 0xaa3   : > { %v1264_v0 = vsel %vm1263_vm10, %v1736_v7, %v1260_v52 }
 0xaa4   : > { %v1266_v44 = vmul.f32 %v1264_v0, %v1232_v54 }
 0xaa6   : > { %1268 = vst.msk [vmem:[#allocation2 + $0x8] sm:$0xff] %vm573_vm1, %v1266_v44 }
 0xaa7   : > { %1274 = vrot.lane.b32.xlu0 %v1266_v44, %s1943_s7 }
 0xb19   : > { %v1275_v14 = vpop.permute.xlu0 %1274 }
 0xb1a   : > { %v1277_v15 = vsel %vm573_vm1, %v1265_v31, %v1275_v14 }
 0xb1b   : > { %1278 = vst [vmem:[%s560_s17] sm:$0xff] %v1277_v15 }
 0xb1c PF: > { %s28_s16 = sadd.s32 1, %s1931_s16   ;;  %s2403_s12 = sld [smem:[#allocation14_spill]] }
 0xb1d   : > { %p25_p7 = scmp.ge.s32.totalorder %s28_s16, 10   ;;  %s2404_s11 = sld [smem:[#allocation18_spill]] }
 0xb1e   : > { %s2405_s13 = sld [smem:[#allocation15_spill]]  ;;  %s2408_s30 = smov %s1907_s10 }
 0xb1f   : > { %s2406_s4 = sld [smem:[#allocation16_spill]] }
 0xb20   : > { %s2407_s15 = sld [smem:[#allocation17_spill]] }
 0xb21   :  { %27 = sbr.rel (!%p25_p7) target bundleno = 17 (0x11), region = 160 }
 0xb22   : > { %s2409_s10 = smov %s2403_s12  ;;  %s2410_s12 = smov %s1923_s14 }
 0xb25   : > { %s2411_s14 = smov %s2406_s4 }
 0xb26   :  { %1298 = vsyncpa [#allocation5], 1 }
 0xb27   :  { %1300 = vsyncpa [#allocation5 + $0x1], 1 }
 0xb28   :  { %1301 = vsyncpa [#allocation7], 1 }
 0xb29   :  { %1303 = vsyncpa [#allocation7 + $0x1], 1 }
 0xb2a   :  { %1304 = vsyncpa [#allocation10], 1 }
 0xb2b   :  { %1306 = vsyncpa [#allocation10 + $0x1], 1 }

// kernel: multi_scale_encoder.2
= control target key start
LH: loop header
LB: loop body
LE: loop exit
PB: predicated region body
PF: predicated region fallthrough
CT: control target
= control target key end

     0   :  { %s2855_s0 = inlined_call_operand.hbm [shape: f32[2,8,32], index: 0, kind: input, shape index: {}]   ;;  %s2856_s1 = inlined_call_operand.hbm [shape: f32[2,8,32], index: 1, kind: input, shape index: {}]   ;;  %s2857_s2 = inlined_call_operand.hbm [shape: bf16[4,32,96], index: 2, kind: input, shape index: {}]   ;;  %s2858_s3 = inlined_call_operand.hbm [shape: bf16[4,32,32], index: 3, kind: input, shape index: {}]   ;;  %s2859_s4 = inlined_call_operand.hbm [shape: f32[4,1,32], index: 4, kind: input, shape index: {}]   ;;  %s2860_s5 = inlined_call_operand.hbm [shape: bf16[4,32,128], index: 5, kind: input, shape index: {}]   ;;  %s2861_s6 = inlined_call_operand.hbm [shape: f32[4,1,128], index: 6, kind: input, shape index: {}]   ;;  %s2862_s7 = inlined_call_operand.hbm [shape: bf16[4,64,64], index: 7, kind: input, shape index: {}]   ;;  %s2863_s8 = inlined_call_operand.hbm [shape: f32[4,1,64], index: 8, kind: input, shape index: {}]   ;;  %s2864_s9 = inlined_call_operand.vmem [shape: f32[2,8,64], index: 9, kind: output, shape index: {}]  }
   0x1   :  { %2883 = sst [smem:[#allocation36_spill]] %s2856_s1 }
   0x2   :  { %2884 = sst [smem:[#allocation37_spill]] %s2858_s3 }
   0x3   :  { %2885 = sst [smem:[#allocation38_spill]] %s2860_s5 }
   0x4   :  { %2886 = sst [smem:[#allocation39_spill]] %s2864_s9 }
   0x5   :  { %14 = vsyncpa [#allocation5], 0 }
   0x6   :  { %16 = vsyncpa [#allocation5 + $0x1], 0 }
   0x7   :  { %17 = vsyncpa [#allocation7], 0 }
   0x8   :  { %19 = vsyncpa [#allocation7 + $0x1], 0 }
   0x9   :  { %20 = vsyncpa [#allocation10], 0 }
   0xa   :  { %22 = vsyncpa [#allocation10 + $0x1], 0 }
   0xb   :  { %23 = vsyncpa [#allocation13], 0 }
   0xc   :  { %25 = vsyncpa [#allocation13 + $0x1], 0 }
   0xd   :  { %26 = vsyncpa [#allocation16], 0 }
   0xe   :  { %28 = vsyncpa [#allocation16 + $0x1], 0  ;;  %s2334_s30 = smov 0   ;;  %s2336_s10 = smov 0  }
   0xf   :  { %s2338_s11 = smov 0   ;;  %s2340_s12 = smov 0  }
  0x10   :  { %s2342_s13 = smov 0   ;;  %s2344_s14 = smov 0  }
  0x11   :  { %s2346_s15 = smov 0   ;;  %s2348_s16 = smov 0  }
  0x12   :  { %s2350_s17 = smov 0   ;;  %s2352_s18 = smov 0  }
  0x13   :  { %s2354_s19 = smov 0  }
  0x14 LB: > { %2887 = sst [smem:[#allocation24_spill]] %s2235_s10  ;;  %s2865_s20 = sadd.s32 4294967295, %s2271_s19   ;;  %s2271_s19 = sphi %s2354_s19, %s34_s19   ;;  %s2267_s18 = sphi %s2352_s18, %s2940_s18   ;;  %s2263_s17 = sphi %s2350_s17, %s2939_s17   ;;  %s2259_s16 = sphi %s2348_s16, %s2938_s16   ;;  %s2255_s15 = sphi %s2346_s15, %s2937_s15   ;;  %s2251_s14 = sphi %s2344_s14, %s2936_s14   ;;  %s2247_s13 = sphi %s2342_s13, %s2935_s13   ;;  %s2243_s12 = sphi %s2340_s12, %s2931_s12   ;;  %s2239_s11 = sphi %s2338_s11, %s2930_s11   ;;  %s2235_s10 = sphi %s2336_s10, %s2929_s10   ;;  %s2231_s30 = sphi %s2334_s30, %s2928_s30  }
  0x15   : > { %2888 = sst [smem:[#allocation25_spill]] %s2239_s11  ;;  %s43_s21 = sadd.s32 1, %s2263_s17 }
  0x16   : > { %2889 = sst [smem:[#allocation26_spill]] %s2247_s13  ;;  %p44_p0 = scmp.ge.s32.totalorder %s43_s21, 4 }
  0x17   : > { %2890 = sst [smem:[#allocation27_spill]] %s2255_s15  ;;  %s46_s22 = sadd.s32 1, %s2267_s18 }
  0x18   : > { %2891 = sst [smem:[#allocation28_spill]] %s2259_s16  ;;  %s53_s23 = sadd.s32 1, %s2251_s14 }
  0x19   : > { %2892 = sst [smem:[#allocation29_spill]] %s2271_s19  ;;  %p60_p1 = scmp.ne.s32.totalorder %s2251_s14, %s2247_s13 }
  0x1a   : > { %s2942_s21 = smov (%p44_p0, %s43_s21), 0  ;;  %s2944_s22 = smov (!%p44_p0, %s46_s22), %s2267_s18 }
  0x1b   : > { %2893 = sst [smem:[#allocation30_spill]] %s2942_s21  ;;  %p61_p2 = scmp.eq.s32.totalorder %s2271_s19, 0 }
  0x1c   : > { %p66_p3 = scmp.ne.s32.totalorder %s2247_s13, %s2243_s12  ;;  %p48_p4 = scmp.ge.s32.totalorder %s2944_s22, 2 }
  0x1d   : > { %p2400_p5 = scmp.eq.s32.totalorder %s2865_s20, 0  ;;  %p2406_p6 = por %p61_p2, %p60_p1 }
  0x1e   : > { %s102_s26 = ssub.s32 %s2263_s17, %s2942_s21  ;;  %s2946_s22 = smov (%p48_p4, %s2944_s22), 0 }
  0x1f   : > { %2896 = sst [smem:[#allocation31_spill]] %s2946_s22  ;;  %p2416_p7 = por %p2400_p5, %p66_p3 }
  0x20   : > { %p103_p8 = scmp.eq.s32.totalorder %s102_s26, 0  ;;  %s50_s28 = ssub.s32 %s2267_s18, %s2946_s22 }
  0x21   : > { %s2897_s27 = scalar_select %p2416_p7, 1, 0 }
  0x22   : > { %s105_s29 = sadd.s32 1, %s2239_s11  ;;  %p51_p9 = scmp.eq.s32.totalorder %s50_s28, 0 }
  0x23   : > { %2898 = sst [smem:[#allocation32_spill]] %s2897_s27  ;;  %p112_p10 = scmp.ne.s32.totalorder %s2239_s11, %s2235_s10 }
  0x24   : > { %s2426_s12 = scalar_select %p103_p8, %s2239_s11, %s105_s29  }
  0x25   : > { %s2429_s20 = scalar_select %p51_p9, %s2251_s14, %s53_s23  }
  0x26   : > { %2899 = sst [smem:[#allocation33_spill]] %s2426_s12  ;;  %p2433_p11 = por %p112_p10, %p61_p2 }
  0x27   : > { %2900 = sst [smem:[#allocation34_spill]] %s2429_s20  ;;  %p118_p12 = scmp.ne.s32.totalorder %s2235_s10, %s2231_s30 }
  0x28   : > { %p1728_p13 = scmp.lt.s32.totalorder %s2271_s19, 8  ;;  %s2868_s28 = sand.u32 1, %s2251_s14  }
  0x29   : > { %p2442_p0 = por %p118_p12, %p2400_p5  ;;  %s2449_s23 = sshll.u32 %s2868_s28, 3 }
  0x2a   : > { %s2871_s29 = sshll.u32 %s2267_s18, 3  ;;  %p2456_p1 = pnand %p1728_p13, %p2406_p6 }
  0x2b   : > { %s2902_s26 = scalar_select %p2442_p0, 1, 0 }
  0x2c   : > { %s2461_s24 = sand.u32 1, %s2271_s19   ;;  %s2905_s1 = sld [smem:[#allocation36_spill]] }
  0x2d   : > { %2903 = sst [smem:[#allocation35_spill]] %s2902_s26  ;;  %s347_s15 = scalar_lea.vmem [#allocation6], %s2449_s23 }
  0x2e   : > { %s355_s9 = sshll.u32 %s347_s15, 4  ;;  %s2870_s25 = scalar_lea.sflag [#allocation7], %s2461_s24  ;;  %s356_s9 = int_to_ptr.vmem [resolvable:$true] %s355_s9 }
  0x2f   : > { %p2478_p2 = pnand %p1728_p13, %p2433_p11  ;;  %p1604_p3 = scmp.ge.s32.totalorder %s2271_s19, 1 }
  0x30   : > { %p499_p4 = scmp.lt.s32.totalorder %s2271_s19, 9  ;;  %s2485_s20 = sand.u32 1, %s2239_s11  }
  0x31   : > { %s2488_s15 = sshll.u32 %s2485_s20, 4  ;;  %s2908_s3 = sld [smem:[#allocation37_spill]] }
  0x32   : > { %s351_s28 = scalar_lea.hbm %s2905_s1, %s2871_s29  ;;  %p2490_p5 = pnand %p1604_p3, %p499_p4 }
  0x33   : > { %s353_s12 = sshll.u32 %s351_s28, 4  ;;  %s2879_s11 = scalar_lea.sflag [#allocation10], %s2461_s24  ;;  %s354_s12 = int_to_ptr.hbm [resolvable:$true] %s353_s12 }
  0x34   : > { %1706 = dma.hbm_to_vmem [thread:$0]  (!%p2456_p1), %s354_s12, 128, %s356_s9, %s2870_s25  }
  0x35   : > { %s2495_s9 = sshll.u32 %s2263_s17, 4  ;;  %s388_s25 = scalar_lea.vmem [#allocation9], %s2488_s15 }
  0x36   : > { %s396_s29 = sshll.u32 %s388_s25, 4  ;;  %s2273_s26 = smov 64   ;;  %s397_s29 = int_to_ptr.vmem [resolvable:$true] %s396_s29 }
  0x37   : > { %s393_s28 = scalar_lea.hbm %s2908_s3, %s2495_s9  ;;  %s2274_s10 = smov 4  }
  0x38   : > { %s394_s1 = sshll.u32 %s393_s28, 4  ;;  %s2909_s5 = sld [smem:[#allocation38_spill]]  ;;  %s395_s1 = int_to_ptr.hbm [resolvable:$true] %s394_s1 }
  0x39   : > { %1712 = dma.hbm_to_vmem [thread:$0]  (!%p2478_p2), %s395_s1, 256, %s397_s29, %s2879_s11, %s2273_s26, %s2273_s26, %s2274_s10  }
  0x3a   : > { %s427_s28 = scalar_lea.vmem [#allocation12], %s2488_s15  ;;  %s2881_s27 = scalar_lea.sflag [#allocation13], %s2461_s24 }
  0x3b   : > { %s435_s19 = sshll.u32 %s427_s28, 4  ;;  %s1601_s1 = sshll.u32 %s2485_s20, 5  ;;  %s436_s19 = int_to_ptr.vmem [resolvable:$true] %s435_s19 }
  0x3c   : > { %s1671_s29 = sshll.u32 %s2263_s17, 5  ;;  %s466_s28 = scalar_lea.vmem [#allocation15], %s1601_s1 }
  0x3d   : > { %s471_s12 = scalar_lea.hbm %s2862_s7, %s1671_s29  ;;  %s474_s11 = sshll.u32 %s466_s28, 4  ;;  %s475_s11 = int_to_ptr.vmem [resolvable:$true] %s474_s11 }
  0x3e   : > { %s432_s3 = scalar_lea.hbm %s2909_s5, %s2495_s9  ;;  %s472_s5 = sshll.u32 %s471_s12, 4  ;;  %s473_s5 = int_to_ptr.hbm [resolvable:$true] %s472_s5 }
  0x3f   : > { %s433_s25 = sshll.u32 %s432_s3, 4  ;;  %s2882_s13 = scalar_lea.sflag [#allocation16], %s2461_s24  ;;  %s434_s25 = int_to_ptr.hbm [resolvable:$true] %s433_s25 }
  0x40   : > { %1718 = dma.hbm_to_vmem [thread:$0]  (!%p2478_p2), %s434_s25, 256, %s436_s19, %s2881_s27, %s2273_s26, %s2273_s26, %s2274_s10  }
  0x41   : > { %1724 = dma.hbm_to_vmem [thread:$0]  (!%p2478_p2), %s473_s5, 512, %s475_s11, %s2882_s13, %s2273_s26, %s2273_s26, %s2274_s10  }
  0x42   : > { %s2910_s19 = sshll.u32 %s2267_s18, 3  ;;  %s328_s3 = scalar_lea.vmem [#allocation4], %s2449_s23 }
  0x43   : > { %s332_s1 = scalar_lea.hbm %s2855_s0, %s2910_s19  ;;  %s336_s12 = sshll.u32 %s328_s3, 4  ;;  %s337_s12 = int_to_ptr.vmem [resolvable:$true] %s336_s12 }
  0x44   : > { %s334_s29 = sshll.u32 %s332_s1, 4  ;;  %s2911_s28 = sand.u32 1, %s2251_s14   ;;  %s335_s29 = int_to_ptr.hbm [resolvable:$true] %s334_s29 }
  0x45   : > { %s325_s27 = scalar_lea.sflag [#allocation5], %s2911_s28  ;;  %s371_s13 = scalar_lea.hbm %s2857_s2, %s2495_s9 }
  0x46   : > { %1703 = dma.hbm_to_vmem [thread:$0]  (!%p2456_p1), %s335_s29, 128, %s337_s12, %s325_s27  }
  0x47   : > { %s372_s25 = sshll.u32 %s371_s13, 4  ;;  %s366_s19 = scalar_lea.vmem [#allocation8], %s2488_s15  ;;  %s373_s25 = int_to_ptr.hbm [resolvable:$true] %s372_s25 }
  0x48   : > { %s374_s21 = sshll.u32 %s366_s19, 4  ;;  %s2912_s23 = scalar_lea.sflag [#allocation7], %s2461_s24  ;;  %s375_s21 = int_to_ptr.vmem [resolvable:$true] %s374_s21 }
  0x49   : > { %1709 = dma.hbm_to_vmem [thread:$0]  (!%p2478_p2), %s373_s25, 256, %s375_s21, %s2912_s23, %s2273_s26, %s2273_s26, %s2274_s10  }
  0x4a   : > { %s412_s1 = scalar_lea.hbm %s2859_s4, %s2263_s17  ;;  %s409_s13 = scalar_lea.vmem [#allocation11], %s2485_s20 }
  0x4b   : > { %s414_s9 = sshll.u32 %s412_s1, 4  ;;  %s416_s15 = sshll.u32 %s409_s13, 4  ;;  %s415_s9 = int_to_ptr.hbm [resolvable:$true] %s414_s9  ;;  %s417_s15 = int_to_ptr.vmem [resolvable:$true] %s416_s15 }
  0x4c   : > { %s2913_s29 = scalar_lea.sflag [#allocation10], %s2461_s24  ;;  %s451_s28 = scalar_lea.hbm %s2861_s6, %s2263_s17 }
  0x4d   : > { %1715 = dma.hbm_to_vmem [thread:$0]  (!%p2478_p2), %s415_s9, 16, %s417_s15, %s2913_s29  }
  0x4e   : > { %s453_s10 = sshll.u32 %s451_s28, 4  ;;  %s448_s26 = scalar_lea.vmem [#allocation14], %s2485_s20  ;;  %s454_s10 = int_to_ptr.hbm [resolvable:$true] %s453_s10 }
  0x4f   : > { %s455_s5 = sshll.u32 %s448_s26, 4  ;;  %s2914_s11 = scalar_lea.sflag [#allocation13], %s2461_s24  ;;  %s456_s5 = int_to_ptr.vmem [resolvable:$true] %s455_s5 }
  0x50   : > { %1721 = dma.hbm_to_vmem [thread:$0]  (!%p2478_p2), %s454_s10, 16, %s456_s5, %s2914_s11  }
  0x51   : > { %s490_s21 = scalar_lea.hbm %s2863_s8, %s2263_s17  ;;  %s487_s27 = scalar_lea.vmem [#allocation17], %s2485_s20 }
  0x52   : > { %s492_s23 = sshll.u32 %s490_s21, 4  ;;  %s494_s30 = sshll.u32 %s487_s27, 4  ;;  %s493_s23 = int_to_ptr.hbm [resolvable:$true] %s492_s23  ;;  %s495_s30 = int_to_ptr.vmem [resolvable:$true] %s494_s30 }
  0x53   : > { %s2915_s1 = scalar_lea.sflag [#allocation16], %s2461_s24  ;;  %503 = sbr.rel (%p2490_p5) target bundleno = 2907 (0xb5b), region = 56 }
  0x54   : > { %1727 = dma.hbm_to_vmem [thread:$0]  (!%p2478_p2), %s493_s23, 16, %s495_s30, %s2915_s1  }
  0x55   : > { %s2916_s9 = sld [smem:[#allocation26_spill]] (!%p2490_p5) }
  0x5b   : > { %s505_s15 = sand.u32 1, %s2916_s9  }
  0x5c   : > { %s2588_s29 = sshll.u32 %s505_s15, 3  ;;  %s506_s3 = scalar_lea.sflag [#allocation5], %s505_s15 }
  0x5d   : > { %s509_s12 = scalar_lea.vmem [#allocation4], %s2588_s29 }
  0x5e   : > { %2206 = dma.done.wait (%p2416_p7), %s506_s3, 128  }
  0x5f   : > { %2208 = vsyncadd (%p2416_p7), %s506_s3, 4294967168  ;;  %s2918_s20 = sld [smem:[#allocation29_spill]]  ;;  %s519_s28 = scalar_lea.vmem [#allocation6], %s2588_s29 }
  0x65   : > { %s2919_s16 = sadd.s32 4294967295, %s2918_s20  }
  0x66   : > { %s515_s24 = sand.u32 1, %s2919_s16  }
  0x67   : > { %s516_s22 = scalar_lea.sflag [#allocation7], %s515_s24 }
  0x68   : > { %2210 = dma.done.wait (%p2416_p7), %s516_s22, 128  }
  0x69   : > { %2212 = vsyncadd (%p2416_p7), %s516_s22, 4294967168  ;;  %s2920_s10 = sld [smem:[#allocation24_spill]] }
  0x6f   : > { %s2603_s5 = sand.u32 1, %s2920_s10  }
  0x70   : > { %s2606_s11 = sshll.u32 %s2603_s5, 4 }
  0x71   : > { %s529_s25 = scalar_lea.vmem [#allocation8], %s2606_s11 }
  0x72   : > { %2214 = dma.done.wait (%p2442_p0), %s516_s22, 256  }
  0x73   : > { %2216 = vsyncadd (%p2442_p0), %s516_s22, 4294967040  ;;  %s536_s19 = scalar_lea.sflag [#allocation10], %s515_s24  ;;  %s539_s21 = scalar_lea.vmem [#allocation9], %s2606_s11 }
  0x74   : > { %2218 = dma.done.wait (%p2442_p0), %s536_s19, 272  }
  0x75   : > { %2220 = vsyncadd (%p2442_p0), %s536_s19, 4294967024  ;;  %s548_s23 = scalar_lea.vmem [#allocation11], %s2603_s5  ;;  %s555_s27 = scalar_lea.sflag [#allocation13], %s515_s24 }
  0x76   : > { %s558_s30 = scalar_lea.vmem [#allocation12], %s2606_s11 }
  0x77   : > { %2222 = dma.done.wait (%p2442_p0), %s555_s27, 272  }
  0x78   : > { %2224 = vsyncadd (%p2442_p0), %s555_s27, 4294967024  ;;  %s1610_s1 = sshll.u32 %s2603_s5, 5  ;;  %s567_s9 = scalar_lea.vmem [#allocation14], %s2603_s5 }
  0x79   : > { %s574_s13 = scalar_lea.sflag [#allocation16], %s515_s24  ;;  %s2626_s15 = scalar_lea.vmem [#allocation15], %s1610_s1 }
  0x7a   : > { %2226 = dma.done.wait (%p2442_p0), %s574_s13, 528  }
  0x7b   : > { %2228 = vsyncadd (%p2442_p0), %s574_s13, 4294966768  ;;  %s2922_s3 = sld [smem:[#allocation28_spill]]  ;;  %s586_s27 = scalar_lea.vmem [#allocation17], %s2603_s5 }
  0x7c   : > { %s2923_s10 = sld [smem:[#allocation39_spill]] }
  0x7d   : > { %s2924_s24 = sld [smem:[#allocation27_spill]] }
  0x81   : > { %p658_p6 = scmp.lt.s32.totalorder %s2922_s3, 1 }
  0x83   : > { %s2948_s3 = smov (!%p658_p6, %s2922_s3), 1  ;;  %p1612_p7 = scmp.ne.s32.totalorder %s2924_s24, 0 }
  0x84   : > { %s1611_s20 = sshll.u32 %s2948_s3, 3 }
  0x85   : > { %s2637_s19 = scalar_lea.vmem %s2923_s10, %s1611_s20  ;;  %666 = sbr.rel (%p1612_p7) target bundleno = 141 (0x8d), region = 96 }
  0x8a   : > { %v667_v0 = vld [vmem:[%s509_s12] sm:$0xff]  ;;  %vm668_vm0 = vcmask 261120   ;;  %v670_v1 = vld [vmem:[%s519_s28] sm:$0xff] }
  0x8b   : > { %669 = vst.msk [vmem:[#allocation2] sm:$0xff] %vm668_vm0, %v667_v0 }
  0x8c   : > { %671 = vst.msk [vmem:[#allocation2 + $0x8] sm:$0xff] %vm668_vm0, %v670_v1 }
  0x8d PF: > { %vm674_vm1 = vcmask 261120   ;;  %v2275_v6 = vmov 32.0   ;;  %v1673_v23 = vld [vmem:[%s529_s25 + $0x8] sm:$0xff]  ;;  %v1672_v24 = vld [vmem:[%s529_s25] sm:$0xff]  ;;  %s2276_s29 = smov 96   ;;  %s2277_s12 = smov 112  }
  0x8e   : > { %1845 = vrcp.f32 %v2275_v6  ;;  %752 = vmatpush.bf16.msra.mxu0 %v1673_v23  ;;  %s2278_s28 = smov 80   ;;  %vm778_vm9 = vcmask 130048   ;;  %vm822_vm10 = vcmask 130112   ;;  %vm799_vm11 = vcmask 64512   ;;  %s2279_s26 = smov 120  }
  0x8f   : > { %s2280_s25 = smov 64   ;;  %s2281_s1 = smov 48   ;;  %vm1050_vm12 = vcmask 261248  }
  0x90   : > { %s2282_s13 = smov 16   ;;  %s2925_s11 = sld [smem:[#allocation27_spill]] }
  0x92   : > { %v2645_v2 = vld [vmem:[#allocation2] sm:$0xff]  ;;  %753 = vmatpush.bf16.msra.mxu0 %v1672_v24 }
  0x93   : > { %v675_v3 = vsel %vm674_vm1, %v2645_v2, 0.0  ;;  %v2649_v4 = vld [vmem:[#allocation2 + $0x8] sm:$0xff] }
  0x94   : > { %676 = vadd.xlane.f32.xlu0 %v675_v3  ;;  %v678_v5 = vsel %vm674_vm1, %v2649_v4, 0.0  ;;  %v1846_v7 = vpop.eup %1845 }
  0x95   : > { %v682_v8 = vmul.f32 32.0, %v1846_v7  ;;  %vm686_vm2 = vweird.f32 %v1846_v7 }
  0x97   : > { %v683_v9 = vsub.f32 1.0, %v682_v8 }
  0x99   : > { %v684_v10 = vmul.f32 %v1846_v7, %v683_v9 }
  0x9b   : > { %v685_v11 = vadd.f32 %v1846_v7, %v684_v10 }
  0x9c   : > { %679 = vadd.xlane.f32.xlu0 %v678_v5 }
  0x9d   : > { %v2653_v12 = vsel %vm686_vm2, %v1846_v7, %v685_v11 }
 0x107   : > { %v677_v13 = vpop.xlane.xlu0 %676 }
 0x108   : > { %v688_v14 = vmul.f32 %v2653_v12, %v677_v13 }
 0x10a   : > { %v690_v15 = vsub.f32 %v2645_v2, %v688_v14 }
 0x10c   : > { %v692_v16 = vmul.f32 %v690_v15, %v690_v15 }
 0x10e   : > { %v694_v17 = vsel %vm674_vm1, %v692_v16, 0.0 }
 0x10f   : > { %695 = vadd.xlane.f32.xlu1 %v694_v17  ;;  %v680_v18 = vpop.xlane.xlu0 %679 }
 0x110   : > { %v689_v19 = vmul.f32 %v2653_v12, %v680_v18 }
 0x112   : > { %v691_v20 = vsub.f32 %v2649_v4, %v689_v19 }
 0x114   : > { %v693_v21 = vmul.f32 %v691_v20, %v691_v20 }
 0x116   : > { %v697_v22 = vsel %vm674_vm1, %v693_v21, 0.0 }
 0x117   : > { %698 = vadd.xlane.f32.xlu1 %v697_v22 }
 0x182   : > { %v696_v25 = vpop.xlane.xlu1 %695 }
 0x183   : > { %v700_v26 = vmul.f32 %v696_v25, %v2653_v12 }
 0x185   : > { %v702_v27 = vadd.f32 1e-05, %v700_v26 }
 0x187   : > { %1847 = vrsqrt.f32 %v702_v27  ;;  %vm710_vm4 = vweird.f32 %v702_v27 }
 0x18a   : > { %v699_v28 = vpop.xlane.xlu1 %698 }
 0x18b   : > { %v701_v29 = vmul.f32 %v699_v28, %v2653_v12 }
 0x18d   : > { %v1848_v30 = vpop.eup %1847  ;;  %v703_v31 = vadd.f32 1e-05, %v701_v29 }
 0x18e   : > { %v705_v32 = vmul.f32 %v1848_v30, %v702_v27  ;;  %vm711_vm3 = vweird.f32 %v1848_v30 }
 0x18f   : > { %1849 = vrsqrt.f32 %v703_v31  ;;  %vm712_vm6 = vmor %vm710_vm4, %vm711_vm3  ;;  %vm720_vm7 = vweird.f32 %v703_v31  ;;  %vm1235_vm4 = vcmask 523264  }
 0x190   : > { %v706_v33 = vmul.f32 %v1848_v30, %v705_v32 }
 0x192   : > { %v707_v34 = vmul.f32 0.5, %v706_v33 }
 0x194   : > { %v708_v36 = vsub.f32 1.5, %v707_v34 }
 0x195   : > { %v1850_v35 = vpop.eup %1849 }
 0x196   : > { %v715_v37 = vmul.f32 %v1850_v35, %v703_v31  ;;  %v709_v39 = vmul.f32 %v1848_v30, %v708_v36  ;;  %vm721_vm5 = vweird.f32 %v1850_v35 }
 0x197   : > { %vm722_vm8 = vmor %vm720_vm7, %vm721_vm5 }
 0x198   : > { %v716_v38 = vmul.f32 %v1850_v35, %v715_v37  ;;  %v713_v43 = vsel %vm712_vm6, %v1848_v30, %v709_v39 }
 0x199   : > { %v724_v45 = vmul.f32 %v713_v43, %v690_v15 }
 0x19a   : > { %v717_v40 = vmul.f32 0.5, %v716_v38 }
 0x19c   : > { %v718_v41 = vsub.f32 1.5, %v717_v40 }
 0x19e   : > { %v719_v42 = vmul.f32 %v1850_v35, %v718_v41 }
 0x1a0   : > { %v723_v44 = vsel %vm722_vm8, %v1850_v35, %v719_v42 }
 0x1a1   : > { %v725_v46 = vmul.f32 %v723_v44, %v691_v20 }
 0x1a3   : > { %v730_v47 = vpack.c.bf16 %v725_v46, %v724_v45 }
 0x1a5   : > { %1621 = vmatmul.msk.bf16.vlgmr.msra.gmra.mxu0 %vm674_vm1, %v730_v47 }
 0x222   : > { %v2668_v48 = vpop.f32.mrf.mxu0 }
 0x223   : > { %v760_v49 = vmul.f32 0.25, %v2668_v48  ;;  %v764_v50 = vpack.c.bf16 %v2668_v48, %v2668_v48 }
 0x225   : > { %v762_v54 = vpack.c.bf16 %v760_v49, %v760_v49  ;;  %v773_v55 = vunpack.c.l.b16 %v764_v50 }
 0x227   : > { %v768_v59 = vunpack.c.l.b16 %v762_v54 }
 0x22a   : > { %v2673_v51 = vpop.f32.mrf.mxu0 }
 0x22b   : > { %v765_v52 = vpack.c.bf16 %v2673_v51, %v2673_v51  ;;  %v761_v53 = vmul.f32 0.25, %v2673_v51  ;;  %v864_v47 = vsub.f32 0.0, %v2673_v51 }
 0x22d   : > { %v774_v56 = vunpack.c.l.b16 %v765_v52  ;;  %v763_v57 = vpack.c.bf16 %v761_v53, %v761_v53  ;;  %v1828_v49 = vpack.i.bf16 %v864_v47, %v2668_v48 }
 0x22f   : > { %v775_v58 = vpack.c.b16 %v774_v56, %v773_v55  ;;  %v769_v60 = vunpack.c.l.b16 %v763_v57 }
 0x231   : > { %776 = vrot.lane.b32.xlu2 %v775_v58, %s2276_s29  ;;  %v770_v61 = vpack.c.b16 %v769_v60, %v768_v59 }
 0x233   : > { %920 = vrot.lane.b32.xlu0 %v770_v61, %s2277_s12 }
 0x239   : > { %922 = vrot.lane.b32.xlu2 %v775_v58, %s2278_s28 }
 0x28b   : > { %v777_v62 = vpop.permute.xlu2 %776 }
 0x28c   : > { %v783_v63 = vsel %vm778_vm9, %v777_v62, 0 }
 0x28d   : > { %792 = vmatpush.bf16.xpose.msra.mxu1 %v783_v63 }
 0x293   : > { %v923_v0 = vpop.permute.xlu2 %922 }
 0x294   : > { %1622 = vmatmul.msk.bf16.vlgmr.msra.gmra.mxu1 %vm778_vm9, %v770_v61  ;;  %v928_v1 = vsel %vm778_vm9, %v923_v0, 0  ;;  %v1833_v0 = vpack.i.bf16 %v2668_v48, %v2673_v51 }
 0x295   : > { %937 = vmatpush.bf16.xpose.msra.mxu3 %v928_v1 }
 0x2a5   : > { %v921_v3 = vpop.permute.xlu0 %920 }
 0x2a6   : > { %1624 = vmatmul.msk.bf16.vlgmr.msra.gmra.mxu3 %vm778_vm9, %v921_v3 }
 0x311   : > { %v794_v5 = vpop.f32.mrf.mxu1 }
 0x312   : > { %v823_v6 = vsel %vm822_vm10, %v794_v5, -inf  ;;  %v800_v7 = vsel %vm799_vm11, %v794_v5, -inf }
 0x313   : > { %824 = vmax.xlane.f32.xlu1 %v823_v6  ;;  %801 = vmax.xlane.f32.xlu0 %v800_v7 }
 0x319   : > { %v796_v8 = vpop.f32.mrf.mxu1 }
 0x31a   : > { %v826_v9 = vsel %vm822_vm10, %v796_v8, -inf  ;;  %v803_v16 = vsel %vm799_vm11, %v796_v8, -inf }
 0x31b   : > { %827 = vmax.xlane.f32.xlu2 %v826_v9 }
 0x329   : > { %v939_v10 = vpop.f32.mrf.mxu3 }
 0x32a   : > { %v966_v11 = vsel %vm822_vm10, %v939_v10, -inf  ;;  %v944_v14 = vsel %vm799_vm11, %v939_v10, -inf }
 0x32b   : > { %967 = vmax.xlane.f32.xlu1 %v966_v11 }
 0x331   : > { %v2689_v13 = vpop.f32.mrf.mxu3 }
 0x332   : > { %v947_v15 = vsel %vm799_vm11, %v2689_v13, -inf  ;;  %v969_v17 = vsel %vm822_vm10, %v2689_v13, -inf }
 0x333   : > { %945 = vmax.xlane.f32.xlu1 %v944_v14  ;;  %948 = vmax.xlane.f32.xlu0 %v947_v15 }
 0x33b   : > { %804 = vmax.xlane.f32.xlu1 %v803_v16 }
 0x343   : > { %970 = vmax.xlane.f32.xlu1 %v969_v17 }
 0x386   : > { %v825_v18 = vpop.xlane.xlu1 %824  ;;  %v802_v39 = vpop.xlane.xlu0 %801 }
 0x387   : > { %v829_v19 = vsub.f32 %v794_v5, %v825_v18  ;;  %v806_v40 = vsub.f32 %v794_v5, %v802_v39 }
 0x389   : > { %v831_v20 = vmul.f32 1.442695, %v829_v19  ;;  %v808_v41 = vmul.f32 1.442695, %v806_v40 }
 0x38b   : > { %1851 = vpow2.f32 %v831_v20 }
 0x38e   : > { %v828_v24 = vpop.xlane.xlu2 %827 }
 0x38f   : > { %v830_v26 = vsub.f32 %v796_v8, %v828_v24 }
 0x391   : > { %v2697_v21 = vpop.eup %1851  ;;  %v833_v28 = vmul.f32 1.442695, %v830_v26 }
 0x392   : > { %837 = vrot.lane.b32.xlu1 %v2697_v21, %s2279_s26 }
 0x39e   : > { %v968_v22 = vpop.xlane.xlu1 %967 }
 0x39f   : > { %v972_v23 = vsub.f32 %v939_v10, %v968_v22 }
 0x3a1   : > { %v974_v25 = vmul.f32 1.442695, %v972_v23 }
 0x3a3   : > { %1853 = vpow2.f32 %v974_v25 }
 0x3a4   : > { %1855 = vpow2.f32 %v833_v28 }
 0x3a6   : > { %v946_v27 = vpop.xlane.xlu1 %945  ;;  %v949_v57 = vpop.xlane.xlu0 %948 }
 0x3a7   : > { %v950_v45 = vsub.f32 %v939_v10, %v946_v27  ;;  %v951_v58 = vsub.f32 %v2689_v13, %v949_v57 }
 0x3a9   : > { %v2700_v29 = vpop.eup %1853  ;;  %v952_v46 = vmul.f32 1.442695, %v950_v45  ;;  %v954_v61 = vmul.f32 1.442695, %v951_v58 }
 0x3aa   : > { %980 = vrot.lane.b32.xlu2 %v2700_v29, %s2279_s26  ;;  %v2703_v32 = vpop.eup %1855 }
 0x3ae   : > { %v805_v30 = vpop.xlane.xlu1 %804 }
 0x3af   : > { %v807_v31 = vsub.f32 %v796_v8, %v805_v30 }
 0x3b1   : > { %v810_v33 = vmul.f32 1.442695, %v807_v31 }
 0x3b2   : > { %839 = vrot.lane.b32.xlu2 %v2703_v32, %s2279_s26 }
 0x3b3   : > { %1857 = vpow2.f32 %v810_v33 }
 0x3b6   : > { %v971_v36 = vpop.xlane.xlu1 %970 }
 0x3b7   : > { %v973_v37 = vsub.f32 %v2689_v13, %v971_v36 }
 0x3b9   : > { %v2706_v34 = vpop.eup %1857  ;;  %v976_v38 = vmul.f32 1.442695, %v973_v37 }
 0x3ba   : > { %v815_v35 = vsel %vm799_vm11, %v2706_v34, 0.0 }
 0x3bb   : > { %816 = vadd.xlane.f32.xlu0 %v815_v35  ;;  %1859 = vpow2.f32 %v976_v38 }
 0x3bc   : > { %1861 = vpow2.f32 %v808_v41 }
 0x3bd   : > { %1863 = vpow2.f32 %v952_v46 }
 0x3be   : > { %1865 = vpow2.f32 %v954_v61 }
 0x3c1   : > { %v2711_v42 = vpop.eup %1859 }
 0x3c2   : > { %v1862_v43 = vpop.eup %1861 }
 0x3c3   : > { %v812_v44 = vsel %vm799_vm11, %v1862_v43, 0.0  ;;  %v2718_v50 = vpop.eup %1863 }
 0x3c4   : > { %v956_v52 = vsel %vm799_vm11, %v2718_v50, 0.0  ;;  %v2726_v62 = vpop.eup %1865 }
 0x3c5   : > { %v959_v63 = vsel %vm799_vm11, %v2726_v62, 0.0 }
 0x3cf   : > { %982 = vrot.lane.b32.xlu0 %v2711_v42, %s2279_s26 }
 0x3db   : > { %813 = vadd.xlane.f32.xlu2 %v812_v44 }
 0x3f3   : > { %1829 = vrot.lane.b32.xlu2 %v1828_v49, %s2280_s25 }
 0x3f9   : > { %957 = vadd.xlane.f32.xlu0 %v956_v52 }
 0x404   : > { %v981_v53 = vpop.permute.xlu2 %980  ;;  %v838_v54 = vpop.permute.xlu1 %837 }
 0x405   : > { %v986_v55 = vsel %vm799_vm11, %v981_v53, 0.0  ;;  %v843_v56 = vsel %vm799_vm11, %v838_v54, 0.0 }
 0x406   : > { %987 = vadd.xlane.f32.xlu0 %v986_v55  ;;  %844 = vadd.xlane.f32.xlu1 %v843_v56 }
 0x40c   : > { %v840_v59 = vpop.permute.xlu2 %839 }
 0x40d   : > { %v846_v60 = vsel %vm799_vm11, %v840_v59, 0.0 }
 0x40e   : > { %847 = vadd.xlane.f32.xlu1 %v846_v60 }
 0x41a   : > { %1839 = vrot.lane.b32.xlu0 %v1828_v49, %s2281_s1 }
 0x41c   : > { %960 = vadd.xlane.f32.xlu2 %v959_v63 }
 0x422   : > { %1001 = vrot.lane.b32.xlu0 %v2673_v51, %s2280_s25 }
 0x427   : > { %1834 = vrot.lane.b32.xlu1 %v1833_v0, %s2278_s28 }
 0x42e   : > { %v817_v1 = vpop.xlane.xlu0 %816 }
 0x441   : > { %v983_v3 = vpop.permute.xlu0 %982 }
 0x442   : > { %v989_v5 = vsel %vm799_vm11, %v983_v3, 0.0 }
 0x44e   : > { %v814_v10 = vpop.xlane.xlu2 %813 }
 0x451   : > { %990 = vadd.xlane.f32.xlu1 %v989_v5 }
 0x456   : > { %v1830_v51 = vpop.permute.xlu2 %1829 }
 0x457   : > { %v1831_v22 = vunpack.i.l.bf16 %v1830_v51  ;;  %v1832_v30 = vunpack.i.h.bf16 %v1830_v51 }
 0x46c   : > { %v958_v6 = vpop.xlane.xlu0 %957 }
 0x479   : > { %v845_v7 = vpop.xlane.xlu1 %844  ;;  %v988_v8 = vpop.xlane.xlu0 %987 }
 0x481   : > { %v848_v9 = vpop.xlane.xlu1 %847 }
 0x482   : > { %1867 = vrcp.f32 %v848_v9 }
 0x483   : > { %1869 = vrcp.f32 %v817_v1 }
 0x484   : > { %1871 = vrcp.f32 %v845_v7 }
 0x485   : > { %1873 = vrcp.f32 %v814_v10 }
 0x486   : > { %1875 = vrcp.f32 %v988_v8 }
 0x487   : > { %1877 = vrcp.f32 %v958_v6 }
 0x488   : > { %v1868_v13 = vpop.eup %1867 }
 0x489   : > { %v1870_v14 = vpop.eup %1869  ;;  %v852_v16 = vmul.f32 %v1868_v13, %v2703_v32 }
 0x48a   : > { %v1872_v48 = vpop.eup %1871  ;;  %v821_v20 = vmul.f32 %v1870_v14, %v2706_v34 }
 0x48b   : > { %v1874_v19 = vpop.eup %1873  ;;  %v851_v23 = vmul.f32 %v1872_v48, %v2697_v21 }
 0x48c   : > { %v1840_v11 = vpop.permute.xlu0 %1839  ;;  %v820_v25 = vmul.f32 %v1874_v19, %v1862_v43  ;;  %v854_v28 = vsel %vm799_vm11, %v821_v20, %v852_v16  ;;  %v1876_v55 = vpop.eup %1875 }
 0x48d   : > { %v1842_v17 = vunpack.i.h.bf16 %v1840_v11  ;;  %v1841_v18 = vunpack.i.l.bf16 %v1840_v11  ;;  %v874_v21 = vpack.c.bf16 %v854_v28, %v854_v28  ;;  %v1878_v57 = vpop.eup %1877  ;;  %v994_v58 = vmul.f32 %v1876_v55, %v2700_v29 }
 0x48e   : > { %v853_v35 = vsel %vm799_vm11, %v820_v25, %v851_v23  ;;  %v964_v59 = vmul.f32 %v1878_v57, %v2718_v50  ;;  %v1093_v25 = vld [vmem:[%s548_s23] sm:$0x1] }
 0x48f   : > { %v1008_v27 = vsel %vm778_vm9, %v1842_v17, %v1831_v22  ;;  %v873_v41 = vpack.c.bf16 %v853_v35, %v853_v35  ;;  %v880_v46 = vunpack.c.l.b16 %v874_v21  ;;  %v961_v54 = vpop.xlane.xlu2 %960  ;;  %v1674_v17 = vld [vmem:[%s539_s21] sm:$0xff] }
 0x490   : > { %v1012_v37 = vpack.c.bf16 %v1008_v27, %v1008_v27  ;;  %1879 = vrcp.f32 %v961_v54  ;;  %v996_v61 = vsel %vm799_vm11, %v964_v59, %v994_v58 }
 0x491   : > { %v879_v52 = vunpack.c.l.b16 %v873_v41  ;;  %v1009_v3 = vpack.c.bf16 %v996_v61, %v996_v61 }
 0x492   : > { %v1021_v45 = vunpack.c.l.b16 %v1012_v37 }
 0x493   : > { %v881_v53 = vpack.c.b16 %v880_v46, %v879_v52  ;;  %v1015_v7 = vunpack.c.l.b16 %v1009_v3 }
 0x494   : > { %v1002_v15 = vpop.permute.xlu0 %1001 }
 0x495   : > { %v1004_v24 = vsel %vm778_vm9, %v1841_v18, %v1002_v15  ;;  %v1675_v15 = vld [vmem:[%s539_s21 + $0x8] sm:$0xff]  ;;  %s1273_s21 = sadd.s32 1, %s2925_s11 }
 0x496   : > { %v1011_v31 = vpack.c.bf16 %v1004_v24, %v1004_v24  ;;  %v1880_v60 = vpop.eup %1879  ;;  %1085 = vmatpush.bf16.msrb.mxu0 %v1675_v15  ;;  %v1680_v15 = vld [vmem:[%s2626_s15 + $0x10] sm:$0xff]  ;;  %s1275_s23 = ssub.s32 0, %s1273_s21  ;;  %p1274_p8 = scmp.lt.s32.totalorder %s1273_s21, 0 }
 0x497   : > { %v965_v0 = vmul.f32 %v1880_v60, %v2726_v62 }
 0x498   : > { %v1020_v40 = vunpack.c.l.b16 %v1011_v31 }
 0x499   : > { %v1835_v26 = vpop.permute.xlu1 %1834 }
 0x49a   : > { %v1837_v33 = vunpack.i.h.bf16 %v1835_v26  ;;  %v1836_v32 = vunpack.i.l.bf16 %v1835_v26  ;;  %v1022_v49 = vpack.c.b16 %v1021_v45, %v1020_v40  ;;  %1086 = vmatpush.bf16.msrb.mxu0 %v1674_v17  ;;  %v1095_v26 = vmul.f32 2.0, %v1093_v25  ;;  %v1678_v17 = vld [vmem:[%s2626_s15] sm:$0xff] }
 0x49c   : > { %v863_v36 = vsel %vm778_vm9, %v1831_v22, %v1836_v32  ;;  %v872_v34 = vsel %vm778_vm9, %v1832_v30, %v1837_v33  ;;  %v1097_v27 = vperm.slane %v1095_v26, 0  ;;  %v1844_v26 = vld [vmem:[%s586_s27] ss:$0 sm:$0xff] }
 0x49d   : > { %v875_v38 = vpack.c.bf16 %v863_v36, %v863_v36  ;;  %v876_v39 = vpack.c.bf16 %v872_v34, %v872_v34 }
 0x49f   : > { %v884_v43 = vunpack.c.l.b16 %v875_v38  ;;  %v885_v44 = vunpack.c.l.b16 %v876_v39 }
 0x4a1   : > { %v886_v47 = vpack.c.b16 %v885_v44, %v884_v43 }
 0x4a3   : > { %898 = vmatpush.bf16.msra.mxu2 %v886_v47  ;;  %v1677_v47 = vld [vmem:[%s558_s30 + $0x8] sm:$0xff] }
 0x4a4   : > { %1176 = vmatpush.bf16.msrb.mxu1 %v1677_v47 }
 0x4a6   : > { %1623 = vmatmul.msk.bf16.vlgmr.msra.gmra.mxu2 %vm778_vm9, %v881_v53 }
 0x4a7   : > { %1034 = vmatpush.bf16.msrb.mxu2 %v1022_v49  ;;  %v1676_v49 = vld [vmem:[%s558_s30] sm:$0xff]  ;;  %s1661_s30 = smin.u32 %s1275_s23, %s1273_s21 }
 0x4a8   : > { %1177 = vmatpush.bf16.msrb.mxu1 %v1676_v49 }
 0x4c4   : > { %v991_v56 = vpop.xlane.xlu1 %990 }
 0x4c5   : > { %1881 = vrcp.f32 %v991_v56 }
 0x4cb   : > { %v1882_v63 = vpop.eup %1881 }
 0x4cc   : > { %v995_v1 = vmul.f32 %v1882_v63, %v2711_v42 }
 0x4ce   : > { %v997_v5 = vsel %vm799_vm11, %v965_v0, %v995_v1 }
 0x4cf   : > { %v1010_v6 = vpack.c.bf16 %v997_v5, %v997_v5 }
 0x4d1   : > { %v1016_v8 = vunpack.c.l.b16 %v1010_v6 }
 0x4d3   : > { %v1017_v9 = vpack.c.b16 %v1016_v8, %v1015_v7 }
 0x4d5   : > { %1625 = vmatmul.msk.bf16.vlgmr.msrb.gmra.mxu2 %vm778_vm9, %v1017_v9 }
 0x529   : > { %v900_v29 = vpop.f32.mrf.mxu2 }
 0x531   : > { %v902_v10 = vpop.f32.mrf.mxu2 }
 0x532   : > { %906 = vrot.lane.b32.xlu1 %v902_v10, %s2277_s12  ;;  %911 = vrot.lane.b32.xlu0 %v902_v10, %s2282_s13 }
 0x558   : > { %v1036_v50 = vpop.f32.mrf.mxu2 }
 0x560   : > { %v1038_v62 = vpop.f32.mrf.mxu2 }
 0x561   : > { %1052 = vrot.lane.b32.xlu0 %v1038_v62, %s2282_s13  ;;  %1042 = vrot.lane.b32.xlu2 %v1038_v62, %s2277_s12 }
 0x5a4   : > { %v907_v42 = vpop.permute.xlu1 %906  ;;  %v912_v11 = vpop.permute.xlu0 %911 }
 0x5a5   : > { %v909_v13 = vsub.f32 %v900_v29, %v907_v42  ;;  %v914_v14 = vadd.f32 %v912_v11, %v900_v29  ;;  %v1681_v42 = vld [vmem:[%s2626_s15 + $0x18] sm:$0xff] }
 0x5a6   : > { %1243 = vmatpush.bf16.msrb.mxu3 %v1681_v42  ;;  %v1843_v11 = vld [vmem:[%s567_s9] ss:$0 sm:$0xff]  ;;  %s1277_s9 = sand.u32 1, %s1661_s30  }
 0x5a7   : > { %910 = vst.msk [vmem:[#allocation3] sm:$0xff] %vm778_vm9, %v909_v13  ;;  %916 = vrot.lane.b32.xlu0 %v914_v14, %s2277_s12  ;;  %s1278_s3 = ssub.s32 0, %s1277_s9 }
 0x5a8   : > { %s2950_s3 = smov (!%p1274_p8, %s1278_s3), %s1277_s9 }
 0x5a9   : > { %p1663_p9 = scmp.lt.s32.totalorder %s2950_s3, 0 }
 0x5aa   : > { %1244 = vmatpush.bf16.msrb.mxu3 %v1680_v15 }
 0x5bb   : > { %v1043_v48 = vpop.permute.xlu2 %1042 }
 0x5bc   : > { %v1045_v51 = vsub.f32 %v1036_v50, %v1043_v48 }
 0x5be   : > { %1047 = vrot.lane.b32.xlu0 %v1045_v51, %s2282_s13 }
 0x5d3   : > { %v1053_v16 = vpop.permute.xlu0 %1052 }
 0x5d4   : > { %v1055_v18 = vadd.f32 %v1053_v16, %v1036_v50  ;;  %v1679_v16 = vld [vmem:[%s2626_s15 + $0x8] sm:$0xff]  ;;  %s1284_s15 = sadd.s32 2, %s2950_s3 }
 0x5d5   : > { %1245 = vmatpush.bf16.msrb.mxu3 %v1679_v16  ;;  %s2952_s15 = smov (!%p1663_p9, %s1284_s15), %s2950_s3 }
 0x5d6   : > { %p1664_p10 = scmp.ne.s32.totalorder %s2952_s15, 0 }
 0x5d7   : > { %s2926_s5 = sld [smem:[#allocation27_spill]] (!%p1664_p10) }
 0x5d9   : > { %1246 = vmatpush.bf16.msrb.mxu3 %v1678_v17 }
 0x5dd   : > { %p1665_p11 = scmp.ne.s32.totalorder (!%p1664_p10), %s2926_s5, 3 }
 0x619   : > { %v917_v19 = vpop.permute.xlu0 %916 }
 0x61a   : > { %919 = vst.msk [vmem:[#allocation3 + $0x8] sm:$0xff] %vm778_vm9, %v917_v19 }
 0x61b   : > { %1056 = vst.msk [vmem:[#allocation3 + $0x8] sm:$0xff] %vm1050_vm12, %v1055_v18 }
 0x622   : > { %v1058_v23 = vld [vmem:[#allocation3 + $0x8] sm:$0xff] }
 0x630   : > { %v1048_v20 = vpop.permute.xlu0 %1047 }
 0x631   : > { %1051 = vst.msk [vmem:[#allocation3] sm:$0xff] %vm1050_vm12, %v1048_v20 }
 0x638   : > { %v1057_v22 = vld [vmem:[#allocation3] sm:$0xff] }
 0x639   : > { %v1063_v24 = vpack.c.bf16 %v1058_v23, %v1057_v22 }
 0x63b   : > { %1634 = vmatmul.msk.bf16.vlgmr.msrb.gmra.mxu0 %vm674_vm1, %v1063_v24 }
 0x6b8   : > { %v1088_v28 = vpop.f32.mrf.mxu0 }
 0x6b9   : > { %v1094_v30 = vadd.f32 %v1088_v28, %v2645_v2 }
 0x6bb   : > { %v1099_v31 = vsub.f32 %v1094_v30, %v1097_v27 }
 0x6bd   : > { %1100 = vst.msk [vmem:[#allocation2] sm:$0xff] %vm674_vm1, %v1099_v31 }
 0x6c0   : > { %v1090_v33 = vpop.f32.mrf.mxu0 }
 0x6c1   : > { %v1101_v32 = vadd.f32 %v1090_v33, %v2649_v4 }
 0x6c3   : > { %v1102_v35 = vadd.f32 %v1101_v32, %v1097_v27 }
 0x6c4   : > { %v2768_v36 = vld [vmem:[#allocation2] sm:$0xff] }
 0x6c5   : > { %1103 = vst.msk [vmem:[#allocation2 + $0x8] sm:$0xff] %vm674_vm1, %v1102_v35  ;;  %v1106_v34 = vsel %vm674_vm1, %v2768_v36, 0.0 }
 0x6c6   : > { %1107 = vadd.xlane.f32.xlu2 %v1106_v34 }
 0x6cc   : > { %v2773_v37 = vld [vmem:[#allocation2 + $0x8] sm:$0xff] }
 0x6cd   : > { %v1109_v2 = vsel %vm674_vm1, %v2773_v37, 0.0 }
 0x6ce   : > { %1110 = vadd.xlane.f32.xlu1 %v1109_v2 }
 0x739   : > { %v1108_v21 = vpop.xlane.xlu2 %1107 }
 0x73a   : > { %v1112_v4 = vmul.f32 %v1108_v21, %v2653_v12 }
 0x73c   : > { %v1114_v38 = vsub.f32 %v2768_v36, %v1112_v4 }
 0x73e   : > { %v1116_v39 = vmul.f32 %v1114_v38, %v1114_v38 }
 0x740   : > { %v1118_v40 = vsel %vm674_vm1, %v1116_v39, 0.0 }
 0x741   : > { %1119 = vadd.xlane.f32.xlu0 %v1118_v40  ;;  %v1111_v41 = vpop.xlane.xlu1 %1110 }
 0x742   : > { %v1113_v43 = vmul.f32 %v1111_v41, %v2653_v12 }
 0x744   : > { %v1115_v44 = vsub.f32 %v2773_v37, %v1113_v43 }
 0x746   : > { %v1117_v45 = vmul.f32 %v1115_v44, %v1115_v44 }
 0x748   : > { %v1121_v46 = vsel %vm674_vm1, %v1117_v45, 0.0 }
 0x749   : > { %1122 = vadd.xlane.f32.xlu2 %v1121_v46 }
 0x7b4   : > { %v1120_v52 = vpop.xlane.xlu0 %1119 }
 0x7b5   : > { %v1124_v53 = vmul.f32 %v1120_v52, %v2653_v12 }
 0x7b7   : > { %v1126_v54 = vadd.f32 1e-05, %v1124_v53 }
 0x7b9   : > { %1883 = vrsqrt.f32 %v1126_v54  ;;  %vm1134_vm14 = vweird.f32 %v1126_v54 }
 0x7bc   : > { %v1123_v55 = vpop.xlane.xlu2 %1122 }
 0x7bd   : > { %v1125_v56 = vmul.f32 %v1123_v55, %v2653_v12 }
 0x7bf   : > { %v1884_v57 = vpop.eup %1883  ;;  %v1127_v58 = vadd.f32 1e-05, %v1125_v56 }
 0x7c0   : > { %v1129_v59 = vmul.f32 %v1884_v57, %v1126_v54  ;;  %vm1135_vm13 = vweird.f32 %v1884_v57 }
 0x7c1   : > { %1885 = vrsqrt.f32 %v1127_v58  ;;  %vm1136_vm0 = vmor %vm1134_vm14, %vm1135_vm13  ;;  %vm1144_vm2 = vweird.f32 %v1127_v58 }
 0x7c2   : > { %v1130_v60 = vmul.f32 %v1884_v57, %v1129_v59 }
 0x7c4   : > { %v1131_v61 = vmul.f32 0.5, %v1130_v60 }
 0x7c6   : > { %v1132_v0 = vsub.f32 1.5, %v1131_v61 }
 0x7c7   : > { %v1886_v63 = vpop.eup %1885 }
 0x7c8   : > { %v1139_v1 = vmul.f32 %v1886_v63, %v1127_v58  ;;  %v1133_v5 = vmul.f32 %v1884_v57, %v1132_v0  ;;  %vm1145_vm15 = vweird.f32 %v1886_v63 }
 0x7c9   : > { %vm1146_vm3 = vmor %vm1144_vm2, %vm1145_vm15 }
 0x7ca   : > { %v1140_v3 = vmul.f32 %v1886_v63, %v1139_v1  ;;  %v1137_v8 = vsel %vm1136_vm0, %v1884_v57, %v1133_v5 }
 0x7cb   : > { %v1148_v10 = vmul.f32 %v1137_v8, %v1114_v38 }
 0x7cc   : > { %v1141_v6 = vmul.f32 0.5, %v1140_v3 }
 0x7ce   : > { %v1142_v7 = vsub.f32 1.5, %v1141_v6 }
 0x7d0   : > { %v1143_v9 = vmul.f32 %v1886_v63, %v1142_v7 }
 0x7d2   : > { %v1147_v29 = vsel %vm1146_vm3, %v1886_v63, %v1143_v9 }
 0x7d3   : > { %v1149_v50 = vmul.f32 %v1147_v29, %v1115_v44 }
 0x7d5   : > { %v1154_v62 = vpack.c.bf16 %v1149_v50, %v1148_v10 }
 0x7d7   : > { %1643 = vmatmul.msk.bf16.vlgmr.msrb.gmra.mxu1 %vm674_vm1, %v1154_v62 }
 0x854   : > { %v1179_v13 = vpop.f32.mrf.mxu1 }
 0x855   : > { %v1188_v14 = vadd.f32 %v1843_v11, %v1179_v13 }
 0x857   : > { %1197 = vrot.lane.b32.xlu0 %v1188_v14, %s2280_s25 }
 0x85c   : > { %v1181_v48 = vpop.f32.mrf.mxu1 }
 0x85d   : > { %v1189_v51 = vadd.f32 %v1843_v11, %v1181_v48 }
 0x85f   : > { %1191 = vrot.lane.b32.xlu1 %v1189_v51, %s2280_s25 }
 0x8c9   : > { %v1198_v18 = vpop.permute.xlu0 %1197 }
 0x8ca   : > { %v1200_v19 = vadd.f32 %v1198_v18, %v1189_v51 }
 0x8cc   : > { %v1201_v23 = vmax.f32 %v1200_v19, 0.0 }
 0x8d1   : > { %v1192_v20 = vpop.permute.xlu1 %1191 }
 0x8d2   : > { %v1194_v22 = vsub.f32 %v1188_v14, %v1192_v20 }
 0x8d4   : > { %v1195_v24 = vmax.f32 %v1194_v22, 0.0 }
 0x8d6   : > { %v1210_v25 = vpack.c.bf16 %v1201_v23, %v1195_v24 }
 0x8d8   : > { %1660 = vmatmul.msk.bf16.vlgmr.msrb.gmra.mxu3 %vm1235_vm4, %v1210_v25 }
 0x95b   : > { %v1248_v27 = vpop.f32.mrf.mxu3 }
 0x95c   : > { %v1257_v28 = vadd.f32 %v1844_v26, %v1248_v27 }
 0x95e   : > { %1268 = vrot.lane.b32.xlu0 %v1257_v28, %s2276_s29  ;;  %v1259_v33 = vadd.f32 %v1257_v28, %v2768_v36 }
 0x963   : > { %v1250_v30 = vpop.f32.mrf.mxu3 }
 0x964   : > { %v1258_v31 = vadd.f32 %v1844_v26, %v1250_v30 }
 0x966   : > { %1261 = vrot.lane.b32.xlu2 %v1258_v31, %s2276_s29  ;;  %v1266_v34 = vadd.f32 %v1258_v31, %v2773_v37 }
 0x9c0   : > { %v1262_v32 = vpop.permute.xlu2 %1261 }
 0x9c1   : > { %v1264_v35 = vsub.f32 %v1259_v33, %v1262_v32 }
 0x9c3   : > { %1265 = vst.msk [vmem:[#allocation2] sm:$0xff] %vm674_vm1, %v1264_v35 }
 0x9cf   : > { %1289 = sbr.rel (%p1664_p10) target bundleno = 2907 (0xb5b), region = 100 }
 0x9d0   : > { %v1269_v2 = vpop.permute.xlu0 %1268 }
 0x9d1   : > { %v1271_v21 = vadd.f32 %v1269_v2, %v1266_v34 }
 0x9d3   : > { %1272 = vst.msk [vmem:[#allocation2 + $0x8] sm:$0xff] %vm674_vm1, %v1271_v21 }
 0x9d4   : > { %v1290_v4 = vld [vmem:[#allocation2] sm:$0xff]  ;;  %s2283_s20 = smov (!%p1665_p11), 32  }
 0x9d5   : > { %v1292_v38 = vsel %vm674_vm1, %v1290_v4, 0.0 }
 0x9d6   : > { %1293 = vadd.xlane.f32.xlu0 %v1292_v38 }
 0x9da   : > { %v1291_v39 = vld [vmem:[#allocation2 + $0x8] sm:$0xff] }
 0x9db   : > { %v1295_v40 = vsel %vm674_vm1, %v1291_v39, 0.0 }
 0x9de   : > { %1296 = vadd.xlane.f32.xlu0 %v1295_v40 }
 0xa49   : > { %v1294_v36 = vpop.xlane.xlu0 %1293 }
 0xa4a   : > { %v1298_v41 = vmul.f32 %v1294_v36, %v2653_v12 }
 0xa4c   : > { %v1300_v43 = vsub.f32 %v1290_v4, %v1298_v41 }
 0xa4e   : > { %v1302_v44 = vmul.f32 %v1300_v43, %v1300_v43 }
 0xa50   : > { %v1304_v37 = vsel %vm674_vm1, %v1302_v44, 0.0 }
 0xa51   : > { %1305 = vadd.xlane.f32.xlu1 %v1304_v37  ;;  %v1297_v45 = vpop.xlane.xlu0 %1296 }
 0xa52   : > { %v1299_v46 = vmul.f32 %v1297_v45, %v2653_v12 }
 0xa54   : > { %v1301_v47 = vsub.f32 %v1291_v39, %v1299_v46 }
 0xa56   : > { %v1303_v49 = vmul.f32 %v1301_v47, %v1301_v47 }
 0xa58   : > { %v1307_v52 = vsel %vm674_vm1, %v1303_v49, 0.0 }
 0xa59   : > { %1308 = vadd.xlane.f32.xlu1 %v1307_v52 }
 0xac4   : > { %v1306_v53 = vpop.xlane.xlu1 %1305 }
 0xac5   : > { %v1310_v54 = vmul.f32 %v1306_v53, %v2653_v12 }
 0xac7   : > { %v1312_v55 = vadd.f32 1e-05, %v1310_v54 }
 0xac9   : > { %1887 = vrsqrt.f32 %v1312_v55  ;;  %vm1320_vm6 = vweird.f32 %v1312_v55 }
 0xacc   : > { %v1309_v56 = vpop.xlane.xlu1 %1308 }
 0xacd   : > { %v1311_v57 = vmul.f32 %v1309_v56, %v2653_v12 }
 0xacf   : > { %v1888_v58 = vpop.eup %1887  ;;  %v1313_v59 = vadd.f32 1e-05, %v1311_v57 }
 0xad0   : > { %v1315_v60 = vmul.f32 %v1888_v58, %v1312_v55  ;;  %vm1321_vm5 = vweird.f32 %v1888_v58 }
 0xad1   : > { %1889 = vrsqrt.f32 %v1313_v59  ;;  %vm1322_vm7 = vmor %vm1320_vm6, %vm1321_vm5  ;;  %vm1330_vm9 = vweird.f32 %v1313_v59 }
 0xad2   : > { %v1316_v61 = vmul.f32 %v1888_v58, %v1315_v60 }
 0xad4   : > { %v1317_v63 = vmul.f32 0.5, %v1316_v61 }
 0xad6   : > { %v1318_v0 = vsub.f32 1.5, %v1317_v63 }
 0xad7   : > { %v1890_v1 = vpop.eup %1889 }
 0xad8   : > { %v1319_v3 = vmul.f32 %v1888_v58, %v1318_v0  ;;  %v1325_v5 = vmul.f32 %v1890_v1, %v1313_v59  ;;  %vm1331_vm8 = vweird.f32 %v1890_v1 }
 0xad9   : > { %vm1332_vm10 = vmor %vm1330_vm9, %vm1331_vm8 }
 0xada   : > { %v1323_v6 = vsel %vm1322_vm7, %v1888_v58, %v1319_v3  ;;  %v1326_v7 = vmul.f32 %v1890_v1, %v1325_v5 }
 0xadb   : > { %v1334_v8 = vmul.f32 %v1323_v6, %v1300_v43 }
 0xadc   : > { %v1327_v9 = vmul.f32 0.5, %v1326_v7 }
 0xadd   : > { %1336 = vst.msk [vmem:[#allocation2] sm:$0xff] %vm674_vm1, %v1334_v8 }
 0xade   : > { %v1328_v12 = vsub.f32 1.5, %v1327_v9 }
 0xae0   : > { %v1329_v29 = vmul.f32 %v1890_v1, %v1328_v12 }
 0xae1   : > { %1341 = sbr.rel (%p1665_p11) target bundleno = 2907 (0xb5b), region = 104 }
 0xae2   : > { %v1333_v10 = vsel %vm1332_vm10, %v1890_v1, %v1329_v29 }
 0xae3   : > { %v1335_v50 = vmul.f32 %v1333_v10, %v1301_v47 }
 0xae5   : > { %1337 = vst.msk [vmem:[#allocation2 + $0x8] sm:$0xff] %vm674_vm1, %v1335_v50 }
 0xae6   : > { %1343 = vrot.lane.b32.xlu0 %v1335_v50, %s2283_s20 }
 0xb58   : > { %v1344_v62 = vpop.permute.xlu0 %1343 }
 0xb59   : > { %v1346_v42 = vsel %vm674_vm1, %v1334_v8, %v1344_v62 }
 0xb5a   : > { %1347 = vst.msk [vmem:[%s2637_s19] sm:$0xff] %vm1235_vm4, %v1346_v42 }
 0xb5b PF: > { %s2927_s16 = sld [smem:[#allocation29_spill]]  ;;  %s2935_s13 = smov %s2251_s14 }
 0xb5c   : > { %s2928_s30 = sld [smem:[#allocation24_spill]]  ;;  %s2937_s15 = smov %s2263_s17 }
 0xb5d   : > { %s2929_s10 = sld [smem:[#allocation25_spill]] }
 0xb5e   : > { %s2930_s11 = sld [smem:[#allocation33_spill]] }
 0xb5f   : > { %s2931_s12 = sld [smem:[#allocation26_spill]] }
 0xb60   : > { %s2932_s22 = sld [smem:[#allocation34_spill]] }
 0xb61   : > { %s34_s19 = sadd.s32 1, %s2927_s16   ;;  %s2933_s27 = sld [smem:[#allocation30_spill]] }
 0xb62   : > { %p31_p12 = scmp.ge.s32.totalorder %s34_s19, 10   ;;  %s2934_s24 = sld [smem:[#allocation31_spill]] }
 0xb63   : > { %s2938_s16 = smov %s2267_s18 }
 0xb64   :  { %33 = sbr.rel (!%p31_p12) target bundleno = 20 (0x14), region = 204 }
 0xb66   : > { %s2936_s14 = smov %s2932_s22 }
 0xb67   : > { %s2939_s17 = smov %s2933_s27 }
 0xb68   : > { %s2940_s18 = smov %s2934_s24 }
 0xb69   :  { %1367 = vsyncpa [#allocation5], 1 }
 0xb6a   :  { %1369 = vsyncpa [#allocation5 + $0x1], 1 }
 0xb6b   :  { %1370 = vsyncpa [#allocation7], 1 }
 0xb6c   :  { %1372 = vsyncpa [#allocation7 + $0x1], 1 }
 0xb6d   :  { %1373 = vsyncpa [#allocation10], 1 }
 0xb6e   :  { %1375 = vsyncpa [#allocation10 + $0x1], 1 }
 0xb6f   :  { %1376 = vsyncpa [#allocation13], 1 }
 0xb70   :  { %1378 = vsyncpa [#allocation13 + $0x1], 1 }
 0xb71   :  { %1379 = vsyncpa [#allocation16], 1 }
 0xb72   :  { %1381 = vsyncpa [#allocation16 + $0x1], 1 }

</bundles_post_ra>
